<compile_context>
chip_gen: v6e
topology: v6e:2x2x1
jax: 0.10.0
libtpu: 0.0.40
codegen_flags: <defaults>
</compile_context>

<pallas_src>
import functools

import jax
import jax.numpy as jnp
from jax.experimental import pallas as pl
from jax.experimental.pallas import tpu as pltpu

KSIZE = 7
PAD = 3
HW_TILE = 512          # lane-tile for the bulk passes (keeps live set small)


def _spatial_attn_kernel(w_ref, x_ref, o_ref, pad_ref, amap_ref, mm_ref, *,
                         C, H, W, Nb, chunk, n_full, tail, hw_tiles, mul_bf16):
    # w_ref:    SMEM (2*7*7 + 1,) f32     conv weights (flattened OIHW) + bias
    # x_ref:    VMEM (Nb, C, H*W)         lane-dense input block
    # o_ref:    VMEM (Nb, C, H*W)         lane-dense output block
    # pad_ref:  VMEM (2, H+6, W+6) f32    zero-padded mean/max planes
    # amap_ref: VMEM (1, H*W) f32         flattened conv output (attention map)
    # mm_ref:   VMEM (2, H*W) f32         flattened mean / max maps
    Hp = H + 2 * PAD
    Wp = W + 2 * PAD
    unroll = min(8, n_full) if n_full > 1 else 1
    inv_c = jnp.float32(1.0 / C)
    mul_dtype = (jnp.bfloat16
                 if (mul_bf16 and o_ref.dtype == jnp.bfloat16)
                 else jnp.float32)
    bias = w_ref[2 * KSIZE * KSIZE]

    for b in range(Nb):
        x_view = x_ref.at[b]                       # (C, HW) view, zero cost
        o_view = o_ref.at[b]

        # ---- pass 1: channel mean / max, lane-tiled, VALU-only inner loop ----
        for (t0, tsz) in hw_tiles:
            s_row = None
            m_row = None
            if n_full > 0:
                def red_body(i, carry):
                    s, m = carry
                    c0 = pl.multiple_of(i * chunk, chunk)
                    xc = x_view[pl.ds(c0, chunk), t0:t0 + tsz].astype(jnp.float32)
                    return s + xc, jnp.maximum(m, xc)

                s0 = jnp.zeros((chunk, tsz), jnp.float32)
                m0 = jnp.full((chunk, tsz), -jnp.inf, jnp.float32)
                s, m = jax.lax.fori_loop(0, n_full, red_body, (s0, m0),
                                         unroll=unroll)
                # single cross-sublane (XLU) reduce per tile, off the hot loop
                s_row = jnp.sum(s, axis=0, keepdims=True)
                m_row = jnp.max(m, axis=0, keepdims=True)
            if tail > 0:
                c0 = n_full * chunk
                xt = x_view[c0:c0 + tail, t0:t0 + tsz].astype(jnp.float32)
                st = jnp.sum(xt, axis=0, keepdims=True)
                mt = jnp.max(xt, axis=0, keepdims=True)
                s_row = st if s_row is None else s_row + st
                m_row = mt if m_row is None else jnp.maximum(m_row, mt)
            mm_ref[0:1, t0:t0 + tsz] = s_row * inv_c
            mm_ref[1:2, t0:t0 + tsz] = m_row

        # ---- zero-pad planes (single full-plane zero) + per-row scatter ----
        pad_ref[...] = jnp.zeros((2, Hp, Wp), jnp.float32)
        for h in range(H):
            lo = h * W
            pad_ref[0, PAD + h:PAD + h + 1, PAD:PAD + W] = mm_ref[0:1, lo:lo + W]
            pad_ref[1, PAD + h:PAD + h + 1, PAD:PAD + W] = mm_ref[1:2, lo:lo + W]

        # ---- 7x7 conv (2 -> 1 channels) on the VPU ----
        # Hoist the kw (lane) shift: 7 sliced reads per plane, reused across kh.
        # 4 partial accumulators break the 98-term serial add chain (VALU ILP).
        accs = [jnp.zeros((H, W), jnp.float32) for _ in range(4)]
        for c in range(2):
            for kw in range(KSIZE):
                col = pad_ref[c, 0:Hp, kw:kw + W]              # (Hp, W)
                for kh in range(KSIZE):
                    wgt = w_ref[c * KSIZE * KSIZE + kh * KSIZE + kw]
                    a_i = 2 * c + (kh & 1)
                    accs[a_i] = accs[a_i] + wgt * col[kh:kh + H, :]
        amap2d = (accs[0] + accs[1]) + (accs[2] + accs[3]) + bias   # (H, W)

        # ---- relayout (H, W) -> (1, H*W) via scratch (no in-kernel reshape) --
        for h in range(H):
            amap_ref[0:1, h * W:(h + 1) * W] = amap2d[h:h + 1, :]

        # ---- pass 2: lane-tiled multiply + lane-dense store ----
        for (t0, tsz) in hw_tiles:
            # per-tile broadcast only (small, bounded working set)
            a_tile = jnp.broadcast_to(
                amap_ref[0:1, t0:t0 + tsz].astype(mul_dtype), (chunk, tsz))
            if n_full > 0:
                def mul_body(i, carry):
                    c0 = pl.multiple_of(i * chunk, chunk)
                    xc = x_view[pl.ds(c0, chunk), t0:t0 + tsz].astype(mul_dtype)
                    o_view[pl.ds(c0, chunk), t0:t0 + tsz] = (
                        xc * a_tile).astype(o_ref.dtype)
                    return carry

                jax.lax.fori_loop(0, n_full, mul_body, 0, unroll=unroll)
            if tail > 0:
                c0 = n_full * chunk
                xt = x_view[c0:c0 + tail, t0:t0 + tsz].astype(mul_dtype)
                o_view[c0:c0 + tail, t0:t0 + tsz] = (
                    xt * a_tile[:tail]).astype(o_ref.dtype)


def _chip_supports_bf16_vpu():
    try:
        kind = jax.devices()[0].device_kind.lower()
    except Exception:
        return False
    return ("v6" in kind) or ("v7" in kind)


def _vmem_limit_bytes(block_bytes, scratch_bytes):
    cap = 64 << 20                                   # conservative fallback
    try:
        info = pltpu.get_tpu_info()
        cap = int(getattr(info, "vmem_capacity_bytes", cap) or cap)
    except Exception:
        pass
    headroom = 8 << 20                               # compiler-internal scratch
    need = 4 * block_bytes + scratch_bytes + (4 << 20)
    hi = max(cap - headroom, 16 << 20)
    return int(min(max(need, 16 << 20), hi))


def _pick_batch_block(N, elem_bytes, target_bytes=(2 << 20), max_nb=8):
    """Largest divisor of N that keeps the block small and >=2 grid steps."""
    best = 1
    for nb in range(1, min(N, max_nb) + 1):
        if N % nb:
            continue
        if nb * elem_bytes > target_bytes:
            continue
        if N >= 2 and N // nb < 2:
            continue        # keep >= 2 grid steps so v7x megacore can shard N
        best = nb
    return best


def spatial_attention(x, conv_w, conv_b):
    """x: (N, C, H, W); conv_w: (1, 2, 7, 7); conv_b: (1,)."""
    N, C, H, W = x.shape
    HW = H * W
    Hp, Wp = H + 2 * PAD, W + 2 * PAD

    x_flat = x.reshape(N, C, HW)                    # lane-dense view (free in XLA)
    w_flat = jnp.concatenate(
        [conv_w.reshape(-1), conv_b.reshape(-1)]).astype(jnp.float32)  # (99,)

    itemsize = jnp.dtype(x.dtype).itemsize
    base_chunk = 16 if x.dtype == jnp.bfloat16 else 8   # full packed sublanes
    chunk = min(base_chunk, C)
    n_full = C // chunk
    tail = C - n_full * chunk

    # Static lane tiles covering [0, HW).
    hw_tiles = []
    t0 = 0
    while t0 < HW:
        tsz = min(HW_TILE, HW - t0)
        hw_tiles.append((t0, tsz))
        t0 += tsz
    hw_tiles = tuple(hw_tiles)

    elem_bytes = C * HW * itemsize
    Nb = _pick_batch_block(N, elem_bytes)
    grid_n = N // Nb
    block_bytes = Nb * elem_bytes
    scratch_bytes = (2 * Hp * Wp + HW + 2 * HW) * 4
    vmem_limit = _vmem_limit_bytes(block_bytes, scratch_bytes)

    mul_bf16 = _chip_supports_bf16_vpu() and x.dtype == jnp.bfloat16

    kernel = functools.partial(
        _spatial_attn_kernel, C=C, H=H, W=W, Nb=Nb, chunk=chunk,
        n_full=n_full, tail=tail, hw_tiles=hw_tiles, mul_bf16=mul_bf16)

    out_flat = pl.pallas_call(
        kernel,
        out_shape=jax.ShapeDtypeStruct((N, C, HW), x.dtype),
        grid_spec=pltpu.PrefetchScalarGridSpec(
            num_scalar_prefetch=0,
            grid=(grid_n,),
            in_specs=[
                pl.BlockSpec(memory_space=pltpu.MemorySpace.SMEM),    # weights
                pl.BlockSpec((Nb, C, HW), lambda n: (n, 0, 0)),       # x
            ],
            out_specs=pl.BlockSpec((Nb, C, HW), lambda n: (n, 0, 0)),
            scratch_shapes=[
                pltpu.VMEM((2, Hp, Wp), jnp.float32),   # padded mean/max planes
                pltpu.VMEM((1, HW), jnp.float32),       # flattened attention map
                pltpu.VMEM((2, HW), jnp.float32),       # flattened mean/max maps
            ],
        ),
        compiler_params=pltpu.CompilerParams(
            dimension_semantics=("parallel",),
            vmem_limit_bytes=vmem_limit),
    )(w_flat, x_flat)

    return out_flat.reshape(N, C, H, W)


def _reference(x, conv_w, conv_b):
    avg = jnp.mean(x, axis=1, keepdims=True)
    mx = jnp.max(x, axis=1, keepdims=True)
    cat = jnp.concatenate([avg, mx], axis=1)
    out = jax.lax.conv_general_dilated(
        cat, conv_w, window_strides=(1, 1),
        padding=[(PAD, PAD), (PAD, PAD)],
        dimension_numbers=("NCHW", "OIHW", "NCHW"))
    out = out + conv_b.reshape(1, -1, 1, 1)
    return out * x


if __name__ == "__main__":
    N, C, H, W = 2, 4, 16, 16

    key = jax.random.PRNGKey(0)
    kx, kw, kb = jax.random.split(key, 3)

    x = jax.random.normal(kx, (N, C, H, W), dtype=jnp.float32)
    # Deterministic synthetic conv params (nn.Conv2d(2, 1, 7, padding=3) shapes).
    fan_in = 2 * KSIZE * KSIZE
    bound = 1.0 / jnp.sqrt(jnp.float32(fan_in))
    conv_w = jax.random.uniform(kw, (1, 2, KSIZE, KSIZE), jnp.float32,
                                minval=-bound, maxval=bound)
    conv_b = jax.random.uniform(kb, (1,), jnp.float32,
                                minval=-bound, maxval=bound)

    out = spatial_attention(x, conv_w, conv_b)
    out = jax.block_until_ready(out)

    ref = _reference(x, conv_w, conv_b)
    assert out.shape == (N, C, H, W)
    assert jnp.allclose(out, ref, atol=1e-4, rtol=1e-4), (
        float(jnp.max(jnp.abs(out - ref))))

    print("KERNEL_OK")
</pallas_src>

<mosaic_0001>
module attributes {stable_mosaic.version = 11 : i64} {
  func.func @_spatial_attn_kernel(%arg0: i32, %arg1: memref<99xf32, #tpu.memory_space<smem>>, %arg2: memref<1x4x256xf32, #tpu.memory_space<vmem>>, %arg3: memref<1x4x256xf32, #tpu.memory_space<vmem>>, %arg4: memref<2x22x22xf32, #tpu.memory_space<vmem>>, %arg5: memref<1x256xf32, #tpu.memory_space<vmem>>, %arg6: memref<2x256xf32, #tpu.memory_space<vmem>>) attributes {dimension_semantics = [#tpu.dimension_semantics<parallel>], iteration_bounds = array<i64: 2>, scalar_prefetch = 0 : i64, scratch_operands = 3 : i64, tpu.core_type = #tpu.core_type<tc>, window_params = [{transform_indices = @transform_0, window_bounds = array<i64: 99>}, {transform_indices = @transform_1, window_bounds = array<i64: 1, 4, 256>}, {transform_indices = @transform_2, window_bounds = array<i64: 1, 4, 256>}]} {
    %c98 = arith.constant 98 : index
    %0 = memref.load %arg1[%c98] : memref<99xf32, #tpu.memory_space<smem>>
    %cst = arith.constant 0.000000e+00 : f32
    %1 = vector.broadcast %cst : f32 to vector<4x256xf32>
    %cst_0 = arith.constant 0xFF800000 : f32
    %2 = vector.broadcast %cst_0 : f32 to vector<4x256xf32>
    %c0_i32 = arith.constant 0 : i32
    %c0_i32_1 = arith.constant 0 : i32
    %c4_i32 = arith.constant 4 : i32
    %3 = arith.muli %c0_i32_1, %c4_i32 : i32
    %4 = tpu.assume_multiple %3, 4 : i32
    %c0_i32_2 = arith.constant 0 : i32
    %c0_i32_3 = arith.constant 0 : i32
    %5 = tpu.memref_slice %arg2[%c0_i32, %c0_i32_2, %c0_i32_3] : memref<1x4x256xf32, #tpu.memory_space<vmem>> -> memref<1x4x256xf32, #tpu.memory_space<vmem>>
    %6 = tpu.memref_squeeze %5 : memref<1x4x256xf32, #tpu.memory_space<vmem>> -> memref<4x256xf32, #tpu.memory_space<vmem>>
    %7 = arith.index_cast %4 : i32 to index
    %c0 = arith.constant 0 : index
    %8 = vector.load %6[%7, %c0] : memref<4x256xf32, #tpu.memory_space<vmem>>, vector<4x256xf32>
    %9 = arith.addf %1, %8 : vector<4x256xf32>
    %10 = arith.maximumf %2, %8 : vector<4x256xf32>
    %c1_i32 = arith.constant 1 : i32
    %cst_4 = arith.constant dense<0.000000e+00> : vector<256xf32>
    %11 = vector.multi_reduction <add>, %9, %cst_4 [0] : vector<4x256xf32> to vector<256xf32>
    %12 = vector.shape_cast %11 : vector<256xf32> to vector<1x256xf32>
    %cst_5 = arith.constant dense<0xFF800000> : vector<256xf32>
    %13 = vector.multi_reduction <maximumf>, %10, %cst_5 [0] : vector<4x256xf32> to vector<256xf32>
    %14 = vector.shape_cast %13 : vector<256xf32> to vector<1x256xf32>
    %cst_6 = arith.constant 2.500000e-01 : f32
    %15 = vector.broadcast %cst_6 : f32 to vector<1x256xf32>
    %16 = arith.mulf %12, %15 : vector<1x256xf32>
    %c0_7 = arith.constant 0 : index
    %c0_8 = arith.constant 0 : index
    %17 = vector.load %arg6[%c0_7, %c0_8] : memref<2x256xf32, #tpu.memory_space<vmem>>, vector<1x256xf32>
    tpu.vector_store %arg6[%c0_7, %c0_8], %16 {strides = array<i32>} : memref<2x256xf32, #tpu.memory_space<vmem>>, vector<1x256xf32>,
    %c1 = arith.constant 1 : index
    %c0_9 = arith.constant 0 : index
    %18 = vector.load %arg6[%c1, %c0_9] : memref<2x256xf32, #tpu.memory_space<vmem>>, vector<1x256xf32>
    tpu.vector_store %arg6[%c1, %c0_9], %14 {strides = array<i32>} : memref<2x256xf32, #tpu.memory_space<vmem>>, vector<1x256xf32>,
    %cst_10 = arith.constant 0.000000e+00 : f32
    %19 = vector.broadcast %cst_10 : f32 to vector<2x22x22xf32>
    %c0_11 = arith.constant 0 : index
    %c0_12 = arith.constant 0 : index
    %c0_13 = arith.constant 0 : index
    %20 = vector.load %arg4[%c0_11, %c0_12, %c0_13] : memref<2x22x22xf32, #tpu.memory_space<vmem>>, vector<2x22x22xf32>
    tpu.vector_store %arg4[%c0_11, %c0_12, %c0_13], %19 {strides = array<i32>} : memref<2x22x22xf32, #tpu.memory_space<vmem>>, vector<2x22x22xf32>,
    %c0_14 = arith.constant 0 : index
    %c0_15 = arith.constant 0 : index
    %21 = vector.load %arg6[%c0_14, %c0_15] : memref<2x256xf32, #tpu.memory_space<vmem>>, vector<1x16xf32>
    %c0_16 = arith.constant 0 : index
    %c3 = arith.constant 3 : index
    %c3_17 = arith.constant 3 : index
    %22 = vector.load %arg4[%c0_16, %c3, %c3_17] : memref<2x22x22xf32, #tpu.memory_space<vmem>>, vector<1x1x16xf32>
    %23 = vector.shape_cast %22 : vector<1x1x16xf32> to vector<1x16xf32>
    %24 = vector.shape_cast %21 : vector<1x16xf32> to vector<1x1x16xf32>
    tpu.vector_store %arg4[%c0_16, %c3, %c3_17], %24 {strides = array<i32>} : memref<2x22x22xf32, #tpu.memory_space<vmem>>, vector<1x1x16xf32>,
    %c1_18 = arith.constant 1 : index
    %c0_19 = arith.constant 0 : index
    %25 = vector.load %arg6[%c1_18, %c0_19] : memref<2x256xf32, #tpu.memory_space<vmem>>, vector<1x16xf32>
    %c1_20 = arith.constant 1 : index
    %c3_21 = arith.constant 3 : index
    %c3_22 = arith.constant 3 : index
    %26 = vector.load %arg4[%c1_20, %c3_21, %c3_22] : memref<2x22x22xf32, #tpu.memory_space<vmem>>, vector<1x1x16xf32>
    %27 = vector.shape_cast %26 : vector<1x1x16xf32> to vector<1x16xf32>
    %28 = vector.shape_cast %25 : vector<1x16xf32> to vector<1x1x16xf32>
    tpu.vector_store %arg4[%c1_20, %c3_21, %c3_22], %28 {strides = array<i32>} : memref<2x22x22xf32, #tpu.memory_space<vmem>>, vector<1x1x16xf32>,
    %c0_23 = arith.constant 0 : index
    %c16 = arith.constant 16 : index
    %29 = vector.load %arg6[%c0_23, %c16] : memref<2x256xf32, #tpu.memory_space<vmem>>, vector<1x16xf32>
    %c0_24 = arith.constant 0 : index
    %c4 = arith.constant 4 : index
    %c3_25 = arith.constant 3 : index
    %30 = vector.load %arg4[%c0_24, %c4, %c3_25] : memref<2x22x22xf32, #tpu.memory_space<vmem>>, vector<1x1x16xf32>
    %31 = vector.shape_cast %30 : vector<1x1x16xf32> to vector<1x16xf32>
    %32 = vector.shape_cast %29 : vector<1x16xf32> to vector<1x1x16xf32>
    tpu.vector_store %arg4[%c0_24, %c4, %c3_25], %32 {strides = array<i32>} : memref<2x22x22xf32, #tpu.memory_space<vmem>>, vector<1x1x16xf32>,
    %c1_26 = arith.constant 1 : index
    %c16_27 = arith.constant 16 : index
    %33 = vector.load %arg6[%c1_26, %c16_27] : memref<2x256xf32, #tpu.memory_space<vmem>>, vector<1x16xf32>
    %c1_28 = arith.constant 1 : index
    %c4_29 = arith.constant 4 : index
    %c3_30 = arith.constant 3 : index
    %34 = vector.load %arg4[%c1_28, %c4_29, %c3_30] : memref<2x22x22xf32, #tpu.memory_space<vmem>>, vector<1x1x16xf32>
    %35 = vector.shape_cast %34 : vector<1x1x16xf32> to vector<1x16xf32>
    %36 = vector.shape_cast %33 : vector<1x16xf32> to vector<1x1x16xf32>
    tpu.vector_store %arg4[%c1_28, %c4_29, %c3_30], %36 {strides = array<i32>} : memref<2x22x22xf32, #tpu.memory_space<vmem>>, vector<1x1x16xf32>,
    %c0_31 = arith.constant 0 : index
    %c32 = arith.constant 32 : index
    %37 = vector.load %arg6[%c0_31, %c32] : memref<2x256xf32, #tpu.memory_space<vmem>>, vector<1x16xf32>
    %c0_32 = arith.constant 0 : index
    %c5 = arith.constant 5 : index
    %c3_33 = arith.constant 3 : index
    %38 = vector.load %arg4[%c0_32, %c5, %c3_33] : memref<2x22x22xf32, #tpu.memory_space<vmem>>, vector<1x1x16xf32>
    %39 = vector.shape_cast %38 : vector<1x1x16xf32> to vector<1x16xf32>
    %40 = vector.shape_cast %37 : vector<1x16xf32> to vector<1x1x16xf32>
    tpu.vector_store %arg4[%c0_32, %c5, %c3_33], %40 {strides = array<i32>} : memref<2x22x22xf32, #tpu.memory_space<vmem>>, vector<1x1x16xf32>,
    %c1_34 = arith.constant 1 : index
    %c32_35 = arith.constant 32 : index
    %41 = vector.load %arg6[%c1_34, %c32_35] : memref<2x256xf32, #tpu.memory_space<vmem>>, vector<1x16xf32>
    %c1_36 = arith.constant 1 : index
    %c5_37 = arith.constant 5 : index
    %c3_38 = arith.constant 3 : index
    %42 = vector.load %arg4[%c1_36, %c5_37, %c3_38] : memref<2x22x22xf32, #tpu.memory_space<vmem>>, vector<1x1x16xf32>
    %43 = vector.shape_cast %42 : vector<1x1x16xf32> to vector<1x16xf32>
    %44 = vector.shape_cast %41 : vector<1x16xf32> to vector<1x1x16xf32>
    tpu.vector_store %arg4[%c1_36, %c5_37, %c3_38], %44 {strides = array<i32>} : memref<2x22x22xf32, #tpu.memory_space<vmem>>, vector<1x1x16xf32>,
    %c0_39 = arith.constant 0 : index
    %c48 = arith.constant 48 : index
    %45 = vector.load %arg6[%c0_39, %c48] : memref<2x256xf32, #tpu.memory_space<vmem>>, vector<1x16xf32>
    %c0_40 = arith.constant 0 : index
    %c6 = arith.constant 6 : index
    %c3_41 = arith.constant 3 : index
    %46 = vector.load %arg4[%c0_40, %c6, %c3_41] : memref<2x22x22xf32, #tpu.memory_space<vmem>>, vector<1x1x16xf32>
    %47 = vector.shape_cast %46 : vector<1x1x16xf32> to vector<1x16xf32>
    %48 = vector.shape_cast %45 : vector<1x16xf32> to vector<1x1x16xf32>
    tpu.vector_store %arg4[%c0_40, %c6, %c3_41], %48 {strides = array<i32>} : memref<2x22x22xf32, #tpu.memory_space<vmem>>, vector<1x1x16xf32>,
    %c1_42 = arith.constant 1 : index
    %c48_43 = arith.constant 48 : index
    %49 = vector.load %arg6[%c1_42, %c48_43] : memref<2x256xf32, #tpu.memory_space<vmem>>, vector<1x16xf32>
    %c1_44 = arith.constant 1 : index
    %c6_45 = arith.constant 6 : index
    %c3_46 = arith.constant 3 : index
    %50 = vector.load %arg4[%c1_44, %c6_45, %c3_46] : memref<2x22x22xf32, #tpu.memory_space<vmem>>, vector<1x1x16xf32>
    %51 = vector.shape_cast %50 : vector<1x1x16xf32> to vector<1x16xf32>
    %52 = vector.shape_cast %49 : vector<1x16xf32> to vector<1x1x16xf32>
    tpu.vector_store %arg4[%c1_44, %c6_45, %c3_46], %52 {strides = array<i32>} : memref<2x22x22xf32, #tpu.memory_space<vmem>>, vector<1x1x16xf32>,
    %c0_47 = arith.constant 0 : index
    %c64 = arith.constant 64 : index
    %53 = vector.load %arg6[%c0_47, %c64] : memref<2x256xf32, #tpu.memory_space<vmem>>, vector<1x16xf32>
    %c0_48 = arith.constant 0 : index
    %c7 = arith.constant 7 : index
    %c3_49 = arith.constant 3 : index
    %54 = vector.load %arg4[%c0_48, %c7, %c3_49] : memref<2x22x22xf32, #tpu.memory_space<vmem>>, vector<1x1x16xf32>
    %55 = vector.shape_cast %54 : vector<1x1x16xf32> to vector<1x16xf32>
    %56 = vector.shape_cast %53 : vector<1x16xf32> to vector<1x1x16xf32>
    tpu.vector_store %arg4[%c0_48, %c7, %c3_49], %56 {strides = array<i32>} : memref<2x22x22xf32, #tpu.memory_space<vmem>>, vector<1x1x16xf32>,
    %c1_50 = arith.constant 1 : index
    %c64_51 = arith.constant 64 : index
    %57 = vector.load %arg6[%c1_50, %c64_51] : memref<2x256xf32, #tpu.memory_space<vmem>>, vector<1x16xf32>
    %c1_52 = arith.constant 1 : index
    %c7_53 = arith.constant 7 : index
    %c3_54 = arith.constant 3 : index
    %58 = vector.load %arg4[%c1_52, %c7_53, %c3_54] : memref<2x22x22xf32, #tpu.memory_space<vmem>>, vector<1x1x16xf32>
    %59 = vector.shape_cast %58 : vector<1x1x16xf32> to vector<1x16xf32>
    %60 = vector.shape_cast %57 : vector<1x16xf32> to vector<1x1x16xf32>
    tpu.vector_store %arg4[%c1_52, %c7_53, %c3_54], %60 {strides = array<i32>} : memref<2x22x22xf32, #tpu.memory_space<vmem>>, vector<1x1x16xf32>,
    %c0_55 = arith.constant 0 : index
    %c80 = arith.constant 80 : index
    %61 = vector.load %arg6[%c0_55, %c80] : memref<2x256xf32, #tpu.memory_space<vmem>>, vector<1x16xf32>
    %c0_56 = arith.constant 0 : index
    %c8 = arith.constant 8 : index
    %c3_57 = arith.constant 3 : index
    %62 = vector.load %arg4[%c0_56, %c8, %c3_57] : memref<2x22x22xf32, #tpu.memory_space<vmem>>, vector<1x1x16xf32>
    %63 = vector.shape_cast %62 : vector<1x1x16xf32> to vector<1x16xf32>
    %64 = vector.shape_cast %61 : vector<1x16xf32> to vector<1x1x16xf32>
    tpu.vector_store %arg4[%c0_56, %c8, %c3_57], %64 {strides = array<i32>} : memref<2x22x22xf32, #tpu.memory_space<vmem>>, vector<1x1x16xf32>,
    %c1_58 = arith.constant 1 : index
    %c80_59 = arith.constant 80 : index
    %65 = vector.load %arg6[%c1_58, %c80_59] : memref<2x256xf32, #tpu.memory_space<vmem>>, vector<1x16xf32>
    %c1_60 = arith.constant 1 : index
    %c8_61 = arith.constant 8 : index
    %c3_62 = arith.constant 3 : index
    %66 = vector.load %arg4[%c1_60, %c8_61, %c3_62] : memref<2x22x22xf32, #tpu.memory_space<vmem>>, vector<1x1x16xf32>
    %67 = vector.shape_cast %66 : vector<1x1x16xf32> to vector<1x16xf32>
    %68 = vector.shape_cast %65 : vector<1x16xf32> to vector<1x1x16xf32>
    tpu.vector_store %arg4[%c1_60, %c8_61, %c3_62], %68 {strides = array<i32>} : memref<2x22x22xf32, #tpu.memory_space<vmem>>, vector<1x1x16xf32>,
    %c0_63 = arith.constant 0 : index
    %c96 = arith.constant 96 : index
    %69 = vector.load %arg6[%c0_63, %c96] : memref<2x256xf32, #tpu.memory_space<vmem>>, vector<1x16xf32>
    %c0_64 = arith.constant 0 : index
    %c9 = arith.constant 9 : index
    %c3_65 = arith.constant 3 : index
    %70 = vector.load %arg4[%c0_64, %c9, %c3_65] : memref<2x22x22xf32, #tpu.memory_space<vmem>>, vector<1x1x16xf32>
    %71 = vector.shape_cast %70 : vector<1x1x16xf32> to vector<1x16xf32>
    %72 = vector.shape_cast %69 : vector<1x16xf32> to vector<1x1x16xf32>
    tpu.vector_store %arg4[%c0_64, %c9, %c3_65], %72 {strides = array<i32>} : memref<2x22x22xf32, #tpu.memory_space<vmem>>, vector<1x1x16xf32>,
    %c1_66 = arith.constant 1 : index
    %c96_67 = arith.constant 96 : index
    %73 = vector.load %arg6[%c1_66, %c96_67] : memref<2x256xf32, #tpu.memory_space<vmem>>, vector<1x16xf32>
    %c1_68 = arith.constant 1 : index
    %c9_69 = arith.constant 9 : index
    %c3_70 = arith.constant 3 : index
    %74 = vector.load %arg4[%c1_68, %c9_69, %c3_70] : memref<2x22x22xf32, #tpu.memory_space<vmem>>, vector<1x1x16xf32>
    %75 = vector.shape_cast %74 : vector<1x1x16xf32> to vector<1x16xf32>
    %76 = vector.shape_cast %73 : vector<1x16xf32> to vector<1x1x16xf32>
    tpu.vector_store %arg4[%c1_68, %c9_69, %c3_70], %76 {strides = array<i32>} : memref<2x22x22xf32, #tpu.memory_space<vmem>>, vector<1x1x16xf32>,
    %c0_71 = arith.constant 0 : index
    %c112 = arith.constant 112 : index
    %77 = vector.load %arg6[%c0_71, %c112] : memref<2x256xf32, #tpu.memory_space<vmem>>, vector<1x16xf32>
    %c0_72 = arith.constant 0 : index
    %c10 = arith.constant 10 : index
    %c3_73 = arith.constant 3 : index
    %78 = vector.load %arg4[%c0_72, %c10, %c3_73] : memref<2x22x22xf32, #tpu.memory_space<vmem>>, vector<1x1x16xf32>
    %79 = vector.shape_cast %78 : vector<1x1x16xf32> to vector<1x16xf32>
    %80 = vector.shape_cast %77 : vector<1x16xf32> to vector<1x1x16xf32>
    tpu.vector_store %arg4[%c0_72, %c10, %c3_73], %80 {strides = array<i32>} : memref<2x22x22xf32, #tpu.memory_space<vmem>>, vector<1x1x16xf32>,
    %c1_74 = arith.constant 1 : index
    %c112_75 = arith.constant 112 : index
    %81 = vector.load %arg6[%c1_74, %c112_75] : memref<2x256xf32, #tpu.memory_space<vmem>>, vector<1x16xf32>
    %c1_76 = arith.constant 1 : index
    %c10_77 = arith.constant 10 : index
    %c3_78 = arith.constant 3 : index
    %82 = vector.load %arg4[%c1_76, %c10_77, %c3_78] : memref<2x22x22xf32, #tpu.memory_space<vmem>>, vector<1x1x16xf32>
    %83 = vector.shape_cast %82 : vector<1x1x16xf32> to vector<1x16xf32>
    %84 = vector.shape_cast %81 : vector<1x16xf32> to vector<1x1x16xf32>
    tpu.vector_store %arg4[%c1_76, %c10_77, %c3_78], %84 {strides = array<i32>} : memref<2x22x22xf32, #tpu.memory_space<vmem>>, vector<1x1x16xf32>,
    %c0_79 = arith.constant 0 : index
    %c128 = arith.constant 128 : index
    %85 = vector.load %arg6[%c0_79, %c128] : memref<2x256xf32, #tpu.memory_space<vmem>>, vector<1x16xf32>
    %c0_80 = arith.constant 0 : index
    %c11 = arith.constant 11 : index
    %c3_81 = arith.constant 3 : index
    %86 = vector.load %arg4[%c0_80, %c11, %c3_81] : memref<2x22x22xf32, #tpu.memory_space<vmem>>, vector<1x1x16xf32>
    %87 = vector.shape_cast %86 : vector<1x1x16xf32> to vector<1x16xf32>
    %88 = vector.shape_cast %85 : vector<1x16xf32> to vector<1x1x16xf32>
    tpu.vector_store %arg4[%c0_80, %c11, %c3_81], %88 {strides = array<i32>} : memref<2x22x22xf32, #tpu.memory_space<vmem>>, vector<1x1x16xf32>,
    %c1_82 = arith.constant 1 : index
    %c128_83 = arith.constant 128 : index
    %89 = vector.load %arg6[%c1_82, %c128_83] : memref<2x256xf32, #tpu.memory_space<vmem>>, vector<1x16xf32>
    %c1_84 = arith.constant 1 : index
    %c11_85 = arith.constant 11 : index
    %c3_86 = arith.constant 3 : index
    %90 = vector.load %arg4[%c1_84, %c11_85, %c3_86] : memref<2x22x22xf32, #tpu.memory_space<vmem>>, vector<1x1x16xf32>
    %91 = vector.shape_cast %90 : vector<1x1x16xf32> to vector<1x16xf32>
    %92 = vector.shape_cast %89 : vector<1x16xf32> to vector<1x1x16xf32>
    tpu.vector_store %arg4[%c1_84, %c11_85, %c3_86], %92 {strides = array<i32>} : memref<2x22x22xf32, #tpu.memory_space<vmem>>, vector<1x1x16xf32>,
    %c0_87 = arith.constant 0 : index
    %c144 = arith.constant 144 : index
    %93 = vector.load %arg6[%c0_87, %c144] : memref<2x256xf32, #tpu.memory_space<vmem>>, vector<1x16xf32>
    %c0_88 = arith.constant 0 : index
    %c12 = arith.constant 12 : index
    %c3_89 = arith.constant 3 : index
    %94 = vector.load %arg4[%c0_88, %c12, %c3_89] : memref<2x22x22xf32, #tpu.memory_space<vmem>>, vector<1x1x16xf32>
    %95 = vector.shape_cast %94 : vector<1x1x16xf32> to vector<1x16xf32>
    %96 = vector.shape_cast %93 : vector<1x16xf32> to vector<1x1x16xf32>
    tpu.vector_store %arg4[%c0_88, %c12, %c3_89], %96 {strides = array<i32>} : memref<2x22x22xf32, #tpu.memory_space<vmem>>, vector<1x1x16xf32>,
    %c1_90 = arith.constant 1 : index
    %c144_91 = arith.constant 144 : index
    %97 = vector.load %arg6[%c1_90, %c144_91] : memref<2x256xf32, #tpu.memory_space<vmem>>, vector<1x16xf32>
    %c1_92 = arith.constant 1 : index
    %c12_93 = arith.constant 12 : index
    %c3_94 = arith.constant 3 : index
    %98 = vector.load %arg4[%c1_92, %c12_93, %c3_94] : memref<2x22x22xf32, #tpu.memory_space<vmem>>, vector<1x1x16xf32>
    %99 = vector.shape_cast %98 : vector<1x1x16xf32> to vector<1x16xf32>
    %100 = vector.shape_cast %97 : vector<1x16xf32> to vector<1x1x16xf32>
    tpu.vector_store %arg4[%c1_92, %c12_93, %c3_94], %100 {strides = array<i32>} : memref<2x22x22xf32, #tpu.memory_space<vmem>>, vector<1x1x16xf32>,
    %c0_95 = arith.constant 0 : index
    %c160 = arith.constant 160 : index
    %101 = vector.load %arg6[%c0_95, %c160] : memref<2x256xf32, #tpu.memory_space<vmem>>, vector<1x16xf32>
    %c0_96 = arith.constant 0 : index
    %c13 = arith.constant 13 : index
    %c3_97 = arith.constant 3 : index
    %102 = vector.load %arg4[%c0_96, %c13, %c3_97] : memref<2x22x22xf32, #tpu.memory_space<vmem>>, vector<1x1x16xf32>
    %103 = vector.shape_cast %102 : vector<1x1x16xf32> to vector<1x16xf32>
    %104 = vector.shape_cast %101 : vector<1x16xf32> to vector<1x1x16xf32>
    tpu.vector_store %arg4[%c0_96, %c13, %c3_97], %104 {strides = array<i32>} : memref<2x22x22xf32, #tpu.memory_space<vmem>>, vector<1x1x16xf32>,
    %c1_98 = arith.constant 1 : index
    %c160_99 = arith.constant 160 : index
    %105 = vector.load %arg6[%c1_98, %c160_99] : memref<2x256xf32, #tpu.memory_space<vmem>>, vector<1x16xf32>
    %c1_100 = arith.constant 1 : index
    %c13_101 = arith.constant 13 : index
    %c3_102 = arith.constant 3 : index
    %106 = vector.load %arg4[%c1_100, %c13_101, %c3_102] : memref<2x22x22xf32, #tpu.memory_space<vmem>>, vector<1x1x16xf32>
    %107 = vector.shape_cast %106 : vector<1x1x16xf32> to vector<1x16xf32>
    %108 = vector.shape_cast %105 : vector<1x16xf32> to vector<1x1x16xf32>
    tpu.vector_store %arg4[%c1_100, %c13_101, %c3_102], %108 {strides = array<i32>} : memref<2x22x22xf32, #tpu.memory_space<vmem>>, vector<1x1x16xf32>,
    %c0_103 = arith.constant 0 : index
    %c176 = arith.constant 176 : index
    %109 = vector.load %arg6[%c0_103, %c176] : memref<2x256xf32, #tpu.memory_space<vmem>>, vector<1x16xf32>
    %c0_104 = arith.constant 0 : index
    %c14 = arith.constant 14 : index
    %c3_105 = arith.constant 3 : index
    %110 = vector.load %arg4[%c0_104, %c14, %c3_105] : memref<2x22x22xf32, #tpu.memory_space<vmem>>, vector<1x1x16xf32>
    %111 = vector.shape_cast %110 : vector<1x1x16xf32> to vector<1x16xf32>
    %112 = vector.shape_cast %109 : vector<1x16xf32> to vector<1x1x16xf32>
    tpu.vector_store %arg4[%c0_104, %c14, %c3_105], %112 {strides = array<i32>} : memref<2x22x22xf32, #tpu.memory_space<vmem>>, vector<1x1x16xf32>,
    %c1_106 = arith.constant 1 : index
    %c176_107 = arith.constant 176 : index
    %113 = vector.load %arg6[%c1_106, %c176_107] : memref<2x256xf32, #tpu.memory_space<vmem>>, vector<1x16xf32>
    %c1_108 = arith.constant 1 : index
    %c14_109 = arith.constant 14 : index
    %c3_110 = arith.constant 3 : index
    %114 = vector.load %arg4[%c1_108, %c14_109, %c3_110] : memref<2x22x22xf32, #tpu.memory_space<vmem>>, vector<1x1x16xf32>
    %115 = vector.shape_cast %114 : vector<1x1x16xf32> to vector<1x16xf32>
    %116 = vector.shape_cast %113 : vector<1x16xf32> to vector<1x1x16xf32>
    tpu.vector_store %arg4[%c1_108, %c14_109, %c3_110], %116 {strides = array<i32>} : memref<2x22x22xf32, #tpu.memory_space<vmem>>, vector<1x1x16xf32>,
    %c0_111 = arith.constant 0 : index
    %c192 = arith.constant 192 : index
    %117 = vector.load %arg6[%c0_111, %c192] : memref<2x256xf32, #tpu.memory_space<vmem>>, vector<1x16xf32>
    %c0_112 = arith.constant 0 : index
    %c15 = arith.constant 15 : index
    %c3_113 = arith.constant 3 : index
    %118 = vector.load %arg4[%c0_112, %c15, %c3_113] : memref<2x22x22xf32, #tpu.memory_space<vmem>>, vector<1x1x16xf32>
    %119 = vector.shape_cast %118 : vector<1x1x16xf32> to vector<1x16xf32>
    %120 = vector.shape_cast %117 : vector<1x16xf32> to vector<1x1x16xf32>
    tpu.vector_store %arg4[%c0_112, %c15, %c3_113], %120 {strides = array<i32>} : memref<2x22x22xf32, #tpu.memory_space<vmem>>, vector<1x1x16xf32>,
    %c1_114 = arith.constant 1 : index
    %c192_115 = arith.constant 192 : index
    %121 = vector.load %arg6[%c1_114, %c192_115] : memref<2x256xf32, #tpu.memory_space<vmem>>, vector<1x16xf32>
    %c1_116 = arith.constant 1 : index
    %c15_117 = arith.constant 15 : index
    %c3_118 = arith.constant 3 : index
    %122 = vector.load %arg4[%c1_116, %c15_117, %c3_118] : memref<2x22x22xf32, #tpu.memory_space<vmem>>, vector<1x1x16xf32>
    %123 = vector.shape_cast %122 : vector<1x1x16xf32> to vector<1x16xf32>
    %124 = vector.shape_cast %121 : vector<1x16xf32> to vector<1x1x16xf32>
    tpu.vector_store %arg4[%c1_116, %c15_117, %c3_118], %124 {strides = array<i32>} : memref<2x22x22xf32, #tpu.memory_space<vmem>>, vector<1x1x16xf32>,
    %c0_119 = arith.constant 0 : index
    %c208 = arith.constant 208 : index
    %125 = vector.load %arg6[%c0_119, %c208] : memref<2x256xf32, #tpu.memory_space<vmem>>, vector<1x16xf32>
    %c0_120 = arith.constant 0 : index
    %c16_121 = arith.constant 16 : index
    %c3_122 = arith.constant 3 : index
    %126 = vector.load %arg4[%c0_120, %c16_121, %c3_122] : memref<2x22x22xf32, #tpu.memory_space<vmem>>, vector<1x1x16xf32>
    %127 = vector.shape_cast %126 : vector<1x1x16xf32> to vector<1x16xf32>
    %128 = vector.shape_cast %125 : vector<1x16xf32> to vector<1x1x16xf32>
    tpu.vector_store %arg4[%c0_120, %c16_121, %c3_122], %128 {strides = array<i32>} : memref<2x22x22xf32, #tpu.memory_space<vmem>>, vector<1x1x16xf32>,
    %c1_123 = arith.constant 1 : index
    %c208_124 = arith.constant 208 : index
    %129 = vector.load %arg6[%c1_123, %c208_124] : memref<2x256xf32, #tpu.memory_space<vmem>>, vector<1x16xf32>
    %c1_125 = arith.constant 1 : index
    %c16_126 = arith.constant 16 : index
    %c3_127 = arith.constant 3 : index
    %130 = vector.load %arg4[%c1_125, %c16_126, %c3_127] : memref<2x22x22xf32, #tpu.memory_space<vmem>>, vector<1x1x16xf32>
    %131 = vector.shape_cast %130 : vector<1x1x16xf32> to vector<1x16xf32>
    %132 = vector.shape_cast %129 : vector<1x16xf32> to vector<1x1x16xf32>
    tpu.vector_store %arg4[%c1_125, %c16_126, %c3_127], %132 {strides = array<i32>} : memref<2x22x22xf32, #tpu.memory_space<vmem>>, vector<1x1x16xf32>,
    %c0_128 = arith.constant 0 : index
    %c224 = arith.constant 224 : index
    %133 = vector.load %arg6[%c0_128, %c224] : memref<2x256xf32, #tpu.memory_space<vmem>>, vector<1x16xf32>
    %c0_129 = arith.constant 0 : index
    %c17 = arith.constant 17 : index
    %c3_130 = arith.constant 3 : index
    %134 = vector.load %arg4[%c0_129, %c17, %c3_130] : memref<2x22x22xf32, #tpu.memory_space<vmem>>, vector<1x1x16xf32>
    %135 = vector.shape_cast %134 : vector<1x1x16xf32> to vector<1x16xf32>
    %136 = vector.shape_cast %133 : vector<1x16xf32> to vector<1x1x16xf32>
    tpu.vector_store %arg4[%c0_129, %c17, %c3_130], %136 {strides = array<i32>} : memref<2x22x22xf32, #tpu.memory_space<vmem>>, vector<1x1x16xf32>,
    %c1_131 = arith.constant 1 : index
    %c224_132 = arith.constant 224 : index
    %137 = vector.load %arg6[%c1_131, %c224_132] : memref<2x256xf32, #tpu.memory_space<vmem>>, vector<1x16xf32>
    %c1_133 = arith.constant 1 : index
    %c17_134 = arith.constant 17 : index
    %c3_135 = arith.constant 3 : index
    %138 = vector.load %arg4[%c1_133, %c17_134, %c3_135] : memref<2x22x22xf32, #tpu.memory_space<vmem>>, vector<1x1x16xf32>
    %139 = vector.shape_cast %138 : vector<1x1x16xf32> to vector<1x16xf32>
    %140 = vector.shape_cast %137 : vector<1x16xf32> to vector<1x1x16xf32>
    tpu.vector_store %arg4[%c1_133, %c17_134, %c3_135], %140 {strides = array<i32>} : memref<2x22x22xf32, #tpu.memory_space<vmem>>, vector<1x1x16xf32>,
    %c0_136 = arith.constant 0 : index
    %c240 = arith.constant 240 : index
    %141 = vector.load %arg6[%c0_136, %c240] : memref<2x256xf32, #tpu.memory_space<vmem>>, vector<1x16xf32>
    %c0_137 = arith.constant 0 : index
    %c18 = arith.constant 18 : index
    %c3_138 = arith.constant 3 : index
    %142 = vector.load %arg4[%c0_137, %c18, %c3_138] : memref<2x22x22xf32, #tpu.memory_space<vmem>>, vector<1x1x16xf32>
    %143 = vector.shape_cast %142 : vector<1x1x16xf32> to vector<1x16xf32>
    %144 = vector.shape_cast %141 : vector<1x16xf32> to vector<1x1x16xf32>
    tpu.vector_store %arg4[%c0_137, %c18, %c3_138], %144 {strides = array<i32>} : memref<2x22x22xf32, #tpu.memory_space<vmem>>, vector<1x1x16xf32>,
    %c1_139 = arith.constant 1 : index
    %c240_140 = arith.constant 240 : index
    %145 = vector.load %arg6[%c1_139, %c240_140] : memref<2x256xf32, #tpu.memory_space<vmem>>, vector<1x16xf32>
    %c1_141 = arith.constant 1 : index
    %c18_142 = arith.constant 18 : index
    %c3_143 = arith.constant 3 : index
    %146 = vector.load %arg4[%c1_141, %c18_142, %c3_143] : memref<2x22x22xf32, #tpu.memory_space<vmem>>, vector<1x1x16xf32>
    %147 = vector.shape_cast %146 : vector<1x1x16xf32> to vector<1x16xf32>
    %148 = vector.shape_cast %145 : vector<1x16xf32> to vector<1x1x16xf32>
    tpu.vector_store %arg4[%c1_141, %c18_142, %c3_143], %148 {strides = array<i32>} : memref<2x22x22xf32, #tpu.memory_space<vmem>>, vector<1x1x16xf32>,
    %cst_144 = arith.constant 0.000000e+00 : f32
    %149 = vector.broadcast %cst_144 : f32 to vector<16x16xf32>
    %cst_145 = arith.constant 0.000000e+00 : f32
    %150 = vector.broadcast %cst_145 : f32 to vector<16x16xf32>
    %cst_146 = arith.constant 0.000000e+00 : f32
    %151 = vector.broadcast %cst_146 : f32 to vector<16x16xf32>
    %cst_147 = arith.constant 0.000000e+00 : f32
    %152 = vector.broadcast %cst_147 : f32 to vector<16x16xf32>
    %c0_148 = arith.constant 0 : index
    %c0_149 = arith.constant 0 : index
    %c0_150 = arith.constant 0 : index
    %153 = vector.load %arg4[%c0_148, %c0_149, %c0_150] : memref<2x22x22xf32, #tpu.memory_space<vmem>>, vector<1x22x16xf32>
    %154 = vector.shape_cast %153 : vector<1x22x16xf32> to vector<22x16xf32>
    %c0_151 = arith.constant 0 : index
    %155 = memref.load %arg1[%c0_151] : memref<99xf32, #tpu.memory_space<smem>>
    %156 = vector.extract_strided_slice %154 {offsets = [0, 0], sizes = [16, 16], strides = [1, 1]} : vector<22x16xf32> to vector<16x16xf32>
    %157 = vector.broadcast %155 : f32 to vector<16x16xf32>
    %158 = arith.mulf %157, %156 : vector<16x16xf32>
    %159 = arith.addf %149, %158 : vector<16x16xf32>
    %c7_152 = arith.constant 7 : index
    %160 = memref.load %arg1[%c7_152] : memref<99xf32, #tpu.memory_space<smem>>
    %161 = vector.extract_strided_slice %154 {offsets = [1, 0], sizes = [16, 16], strides = [1, 1]} : vector<22x16xf32> to vector<16x16xf32>
    %162 = vector.broadcast %160 : f32 to vector<16x16xf32>
    %163 = arith.mulf %162, %161 : vector<16x16xf32>
    %164 = arith.addf %150, %163 : vector<16x16xf32>
    %c14_153 = arith.constant 14 : index
    %165 = memref.load %arg1[%c14_153] : memref<99xf32, #tpu.memory_space<smem>>
    %166 = vector.extract_strided_slice %154 {offsets = [2, 0], sizes = [16, 16], strides = [1, 1]} : vector<22x16xf32> to vector<16x16xf32>
    %167 = vector.broadcast %165 : f32 to vector<16x16xf32>
    %168 = arith.mulf %167, %166 : vector<16x16xf32>
    %169 = arith.addf %159, %168 : vector<16x16xf32>
    %c21 = arith.constant 21 : index
    %170 = memref.load %arg1[%c21] : memref<99xf32, #tpu.memory_space<smem>>
    %171 = vector.extract_strided_slice %154 {offsets = [3, 0], sizes = [16, 16], strides = [1, 1]} : vector<22x16xf32> to vector<16x16xf32>
    %172 = vector.broadcast %170 : f32 to vector<16x16xf32>
    %173 = arith.mulf %172, %171 : vector<16x16xf32>
    %174 = arith.addf %164, %173 : vector<16x16xf32>
    %c28 = arith.constant 28 : index
    %175 = memref.load %arg1[%c28] : memref<99xf32, #tpu.memory_space<smem>>
    %176 = vector.extract_strided_slice %154 {offsets = [4, 0], sizes = [16, 16], strides = [1, 1]} : vector<22x16xf32> to vector<16x16xf32>
    %177 = vector.broadcast %175 : f32 to vector<16x16xf32>
    %178 = arith.mulf %177, %176 : vector<16x16xf32>
    %179 = arith.addf %169, %178 : vector<16x16xf32>
    %c35 = arith.constant 35 : index
    %180 = memref.load %arg1[%c35] : memref<99xf32, #tpu.memory_space<smem>>
    %181 = vector.extract_strided_slice %154 {offsets = [5, 0], sizes = [16, 16], strides = [1, 1]} : vector<22x16xf32> to vector<16x16xf32>
    %182 = vector.broadcast %180 : f32 to vector<16x16xf32>
    %183 = arith.mulf %182, %181 : vector<16x16xf32>
    %184 = arith.addf %174, %183 : vector<16x16xf32>
    %c42 = arith.constant 42 : index
    %185 = memref.load %arg1[%c42] : memref<99xf32, #tpu.memory_space<smem>>
    %186 = vector.extract_strided_slice %154 {offsets = [6, 0], sizes = [16, 16], strides = [1, 1]} : vector<22x16xf32> to vector<16x16xf32>
    %187 = vector.broadcast %185 : f32 to vector<16x16xf32>
    %188 = arith.mulf %187, %186 : vector<16x16xf32>
    %189 = arith.addf %179, %188 : vector<16x16xf32>
    %c0_154 = arith.constant 0 : index
    %c0_155 = arith.constant 0 : index
    %c1_156 = arith.constant 1 : index
    %190 = vector.load %arg4[%c0_154, %c0_155, %c1_156] : memref<2x22x22xf32, #tpu.memory_space<vmem>>, vector<1x22x16xf32>
    %191 = vector.shape_cast %190 : vector<1x22x16xf32> to vector<22x16xf32>
    %c1_157 = arith.constant 1 : index
    %192 = memref.load %arg1[%c1_157] : memref<99xf32, #tpu.memory_space<smem>>
    %193 = vector.extract_strided_slice %191 {offsets = [0, 0], sizes = [16, 16], strides = [1, 1]} : vector<22x16xf32> to vector<16x16xf32>
    %194 = vector.broadcast %192 : f32 to vector<16x16xf32>
    %195 = arith.mulf %194, %193 : vector<16x16xf32>
    %196 = arith.addf %189, %195 : vector<16x16xf32>
    %c8_158 = arith.constant 8 : index
    %197 = memref.load %arg1[%c8_158] : memref<99xf32, #tpu.memory_space<smem>>
    %198 = vector.extract_strided_slice %191 {offsets = [1, 0], sizes = [16, 16], strides = [1, 1]} : vector<22x16xf32> to vector<16x16xf32>
    %199 = vector.broadcast %197 : f32 to vector<16x16xf32>
    %200 = arith.mulf %199, %198 : vector<16x16xf32>
    %201 = arith.addf %184, %200 : vector<16x16xf32>
    %c15_159 = arith.constant 15 : index
    %202 = memref.load %arg1[%c15_159] : memref<99xf32, #tpu.memory_space<smem>>
    %203 = vector.extract_strided_slice %191 {offsets = [2, 0], sizes = [16, 16], strides = [1, 1]} : vector<22x16xf32> to vector<16x16xf32>
    %204 = vector.broadcast %202 : f32 to vector<16x16xf32>
    %205 = arith.mulf %204, %203 : vector<16x16xf32>
    %206 = arith.addf %196, %205 : vector<16x16xf32>
    %c22 = arith.constant 22 : index
    %207 = memref.load %arg1[%c22] : memref<99xf32, #tpu.memory_space<smem>>
    %208 = vector.extract_strided_slice %191 {offsets = [3, 0], sizes = [16, 16], strides = [1, 1]} : vector<22x16xf32> to vector<16x16xf32>
    %209 = vector.broadcast %207 : f32 to vector<16x16xf32>
    %210 = arith.mulf %209, %208 : vector<16x16xf32>
    %211 = arith.addf %201, %210 : vector<16x16xf32>
    %c29 = arith.constant 29 : index
    %212 = memref.load %arg1[%c29] : memref<99xf32, #tpu.memory_space<smem>>
    %213 = vector.extract_strided_slice %191 {offsets = [4, 0], sizes = [16, 16], strides = [1, 1]} : vector<22x16xf32> to vector<16x16xf32>
    %214 = vector.broadcast %212 : f32 to vector<16x16xf32>
    %215 = arith.mulf %214, %213 : vector<16x16xf32>
    %216 = arith.addf %206, %215 : vector<16x16xf32>
    %c36 = arith.constant 36 : index
    %217 = memref.load %arg1[%c36] : memref<99xf32, #tpu.memory_space<smem>>
    %218 = vector.extract_strided_slice %191 {offsets = [5, 0], sizes = [16, 16], strides = [1, 1]} : vector<22x16xf32> to vector<16x16xf32>
    %219 = vector.broadcast %217 : f32 to vector<16x16xf32>
    %220 = arith.mulf %219, %218 : vector<16x16xf32>
    %221 = arith.addf %211, %220 : vector<16x16xf32>
    %c43 = arith.constant 43 : index
    %222 = memref.load %arg1[%c43] : memref<99xf32, #tpu.memory_space<smem>>
    %223 = vector.extract_strided_slice %191 {offsets = [6, 0], sizes = [16, 16], strides = [1, 1]} : vector<22x16xf32> to vector<16x16xf32>
    %224 = vector.broadcast %222 : f32 to vector<16x16xf32>
    %225 = arith.mulf %224, %223 : vector<16x16xf32>
    %226 = arith.addf %216, %225 : vector<16x16xf32>
    %c0_160 = arith.constant 0 : index
    %c0_161 = arith.constant 0 : index
    %c2 = arith.constant 2 : index
    %227 = vector.load %arg4[%c0_160, %c0_161, %c2] : memref<2x22x22xf32, #tpu.memory_space<vmem>>, vector<1x22x16xf32>
    %228 = vector.shape_cast %227 : vector<1x22x16xf32> to vector<22x16xf32>
    %c2_162 = arith.constant 2 : index
    %229 = memref.load %arg1[%c2_162] : memref<99xf32, #tpu.memory_space<smem>>
    %230 = vector.extract_strided_slice %228 {offsets = [0, 0], sizes = [16, 16], strides = [1, 1]} : vector<22x16xf32> to vector<16x16xf32>
    %231 = vector.broadcast %229 : f32 to vector<16x16xf32>
    %232 = arith.mulf %231, %230 : vector<16x16xf32>
    %233 = arith.addf %226, %232 : vector<16x16xf32>
    %c9_163 = arith.constant 9 : index
    %234 = memref.load %arg1[%c9_163] : memref<99xf32, #tpu.memory_space<smem>>
    %235 = vector.extract_strided_slice %228 {offsets = [1, 0], sizes = [16, 16], strides = [1, 1]} : vector<22x16xf32> to vector<16x16xf32>
    %236 = vector.broadcast %234 : f32 to vector<16x16xf32>
    %237 = arith.mulf %236, %235 : vector<16x16xf32>
    %238 = arith.addf %221, %237 : vector<16x16xf32>
    %c16_164 = arith.constant 16 : index
    %239 = memref.load %arg1[%c16_164] : memref<99xf32, #tpu.memory_space<smem>>
    %240 = vector.extract_strided_slice %228 {offsets = [2, 0], sizes = [16, 16], strides = [1, 1]} : vector<22x16xf32> to vector<16x16xf32>
    %241 = vector.broadcast %239 : f32 to vector<16x16xf32>
    %242 = arith.mulf %241, %240 : vector<16x16xf32>
    %243 = arith.addf %233, %242 : vector<16x16xf32>
    %c23 = arith.constant 23 : index
    %244 = memref.load %arg1[%c23] : memref<99xf32, #tpu.memory_space<smem>>
    %245 = vector.extract_strided_slice %228 {offsets = [3, 0], sizes = [16, 16], strides = [1, 1]} : vector<22x16xf32> to vector<16x16xf32>
    %246 = vector.broadcast %244 : f32 to vector<16x16xf32>
    %247 = arith.mulf %246, %245 : vector<16x16xf32>
    %248 = arith.addf %238, %247 : vector<16x16xf32>
    %c30 = arith.constant 30 : index
    %249 = memref.load %arg1[%c30] : memref<99xf32, #tpu.memory_space<smem>>
    %250 = vector.extract_strided_slice %228 {offsets = [4, 0], sizes = [16, 16], strides = [1, 1]} : vector<22x16xf32> to vector<16x16xf32>
    %251 = vector.broadcast %249 : f32 to vector<16x16xf32>
    %252 = arith.mulf %251, %250 : vector<16x16xf32>
    %253 = arith.addf %243, %252 : vector<16x16xf32>
    %c37 = arith.constant 37 : index
    %254 = memref.load %arg1[%c37] : memref<99xf32, #tpu.memory_space<smem>>
    %255 = vector.extract_strided_slice %228 {offsets = [5, 0], sizes = [16, 16], strides = [1, 1]} : vector<22x16xf32> to vector<16x16xf32>
    %256 = vector.broadcast %254 : f32 to vector<16x16xf32>
    %257 = arith.mulf %256, %255 : vector<16x16xf32>
    %258 = arith.addf %248, %257 : vector<16x16xf32>
    %c44 = arith.constant 44 : index
    %259 = memref.load %arg1[%c44] : memref<99xf32, #tpu.memory_space<smem>>
    %260 = vector.extract_strided_slice %228 {offsets = [6, 0], sizes = [16, 16], strides = [1, 1]} : vector<22x16xf32> to vector<16x16xf32>
    %261 = vector.broadcast %259 : f32 to vector<16x16xf32>
    %262 = arith.mulf %261, %260 : vector<16x16xf32>
    %263 = arith.addf %253, %262 : vector<16x16xf32>
    %c0_165 = arith.constant 0 : index
    %c0_166 = arith.constant 0 : index
    %c3_167 = arith.constant 3 : index
    %264 = vector.load %arg4[%c0_165, %c0_166, %c3_167] : memref<2x22x22xf32, #tpu.memory_space<vmem>>, vector<1x22x16xf32>
    %265 = vector.shape_cast %264 : vector<1x22x16xf32> to vector<22x16xf32>
    %c3_168 = arith.constant 3 : index
    %266 = memref.load %arg1[%c3_168] : memref<99xf32, #tpu.memory_space<smem>>
    %267 = vector.extract_strided_slice %265 {offsets = [0, 0], sizes = [16, 16], strides = [1, 1]} : vector<22x16xf32> to vector<16x16xf32>
    %268 = vector.broadcast %266 : f32 to vector<16x16xf32>
    %269 = arith.mulf %268, %267 : vector<16x16xf32>
    %270 = arith.addf %263, %269 : vector<16x16xf32>
    %c10_169 = arith.constant 10 : index
    %271 = memref.load %arg1[%c10_169] : memref<99xf32, #tpu.memory_space<smem>>
    %272 = vector.extract_strided_slice %265 {offsets = [1, 0], sizes = [16, 16], strides = [1, 1]} : vector<22x16xf32> to vector<16x16xf32>
    %273 = vector.broadcast %271 : f32 to vector<16x16xf32>
    %274 = arith.mulf %273, %272 : vector<16x16xf32>
    %275 = arith.addf %258, %274 : vector<16x16xf32>
    %c17_170 = arith.constant 17 : index
    %276 = memref.load %arg1[%c17_170] : memref<99xf32, #tpu.memory_space<smem>>
    %277 = vector.extract_strided_slice %265 {offsets = [2, 0], sizes = [16, 16], strides = [1, 1]} : vector<22x16xf32> to vector<16x16xf32>
    %278 = vector.broadcast %276 : f32 to vector<16x16xf32>
    %279 = arith.mulf %278, %277 : vector<16x16xf32>
    %280 = arith.addf %270, %279 : vector<16x16xf32>
    %c24 = arith.constant 24 : index
    %281 = memref.load %arg1[%c24] : memref<99xf32, #tpu.memory_space<smem>>
    %282 = vector.extract_strided_slice %265 {offsets = [3, 0], sizes = [16, 16], strides = [1, 1]} : vector<22x16xf32> to vector<16x16xf32>
    %283 = vector.broadcast %281 : f32 to vector<16x16xf32>
    %284 = arith.mulf %283, %282 : vector<16x16xf32>
    %285 = arith.addf %275, %284 : vector<16x16xf32>
    %c31 = arith.constant 31 : index
    %286 = memref.load %arg1[%c31] : memref<99xf32, #tpu.memory_space<smem>>
    %287 = vector.extract_strided_slice %265 {offsets = [4, 0], sizes = [16, 16], strides = [1, 1]} : vector<22x16xf32> to vector<16x16xf32>
    %288 = vector.broadcast %286 : f32 to vector<16x16xf32>
    %289 = arith.mulf %288, %287 : vector<16x16xf32>
    %290 = arith.addf %280, %289 : vector<16x16xf32>
    %c38 = arith.constant 38 : index
    %291 = memref.load %arg1[%c38] : memref<99xf32, #tpu.memory_space<smem>>
    %292 = vector.extract_strided_slice %265 {offsets = [5, 0], sizes = [16, 16], strides = [1, 1]} : vector<22x16xf32> to vector<16x16xf32>
    %293 = vector.broadcast %291 : f32 to vector<16x16xf32>
    %294 = arith.mulf %293, %292 : vector<16x16xf32>
    %295 = arith.addf %285, %294 : vector<16x16xf32>
    %c45 = arith.constant 45 : index
    %296 = memref.load %arg1[%c45] : memref<99xf32, #tpu.memory_space<smem>>
    %297 = vector.extract_strided_slice %265 {offsets = [6, 0], sizes = [16, 16], strides = [1, 1]} : vector<22x16xf32> to vector<16x16xf32>
    %298 = vector.broadcast %296 : f32 to vector<16x16xf32>
    %299 = arith.mulf %298, %297 : vector<16x16xf32>
    %300 = arith.addf %290, %299 : vector<16x16xf32>
    %c0_171 = arith.constant 0 : index
    %c0_172 = arith.constant 0 : index
    %c4_173 = arith.constant 4 : index
    %301 = vector.load %arg4[%c0_171, %c0_172, %c4_173] : memref<2x22x22xf32, #tpu.memory_space<vmem>>, vector<1x22x16xf32>
    %302 = vector.shape_cast %301 : vector<1x22x16xf32> to vector<22x16xf32>
    %c4_174 = arith.constant 4 : index
    %303 = memref.load %arg1[%c4_174] : memref<99xf32, #tpu.memory_space<smem>>
    %304 = vector.extract_strided_slice %302 {offsets = [0, 0], sizes = [16, 16], strides = [1, 1]} : vector<22x16xf32> to vector<16x16xf32>
    %305 = vector.broadcast %303 : f32 to vector<16x16xf32>
    %306 = arith.mulf %305, %304 : vector<16x16xf32>
    %307 = arith.addf %300, %306 : vector<16x16xf32>
    %c11_175 = arith.constant 11 : index
    %308 = memref.load %arg1[%c11_175] : memref<99xf32, #tpu.memory_space<smem>>
    %309 = vector.extract_strided_slice %302 {offsets = [1, 0], sizes = [16, 16], strides = [1, 1]} : vector<22x16xf32> to vector<16x16xf32>
    %310 = vector.broadcast %308 : f32 to vector<16x16xf32>
    %311 = arith.mulf %310, %309 : vector<16x16xf32>
    %312 = arith.addf %295, %311 : vector<16x16xf32>
    %c18_176 = arith.constant 18 : index
    %313 = memref.load %arg1[%c18_176] : memref<99xf32, #tpu.memory_space<smem>>
    %314 = vector.extract_strided_slice %302 {offsets = [2, 0], sizes = [16, 16], strides = [1, 1]} : vector<22x16xf32> to vector<16x16xf32>
    %315 = vector.broadcast %313 : f32 to vector<16x16xf32>
    %316 = arith.mulf %315, %314 : vector<16x16xf32>
    %317 = arith.addf %307, %316 : vector<16x16xf32>
    %c25 = arith.constant 25 : index
    %318 = memref.load %arg1[%c25] : memref<99xf32, #tpu.memory_space<smem>>
    %319 = vector.extract_strided_slice %302 {offsets = [3, 0], sizes = [16, 16], strides = [1, 1]} : vector<22x16xf32> to vector<16x16xf32>
    %320 = vector.broadcast %318 : f32 to vector<16x16xf32>
    %321 = arith.mulf %320, %319 : vector<16x16xf32>
    %322 = arith.addf %312, %321 : vector<16x16xf32>
    %c32_177 = arith.constant 32 : index
    %323 = memref.load %arg1[%c32_177] : memref<99xf32, #tpu.memory_space<smem>>
    %324 = vector.extract_strided_slice %302 {offsets = [4, 0], sizes = [16, 16], strides = [1, 1]} : vector<22x16xf32> to vector<16x16xf32>
    %325 = vector.broadcast %323 : f32 to vector<16x16xf32>
    %326 = arith.mulf %325, %324 : vector<16x16xf32>
    %327 = arith.addf %317, %326 : vector<16x16xf32>
    %c39 = arith.constant 39 : index
    %328 = memref.load %arg1[%c39] : memref<99xf32, #tpu.memory_space<smem>>
    %329 = vector.extract_strided_slice %302 {offsets = [5, 0], sizes = [16, 16], strides = [1, 1]} : vector<22x16xf32> to vector<16x16xf32>
    %330 = vector.broadcast %328 : f32 to vector<16x16xf32>
    %331 = arith.mulf %330, %329 : vector<16x16xf32>
    %332 = arith.addf %322, %331 : vector<16x16xf32>
    %c46 = arith.constant 46 : index
    %333 = memref.load %arg1[%c46] : memref<99xf32, #tpu.memory_space<smem>>
    %334 = vector.extract_strided_slice %302 {offsets = [6, 0], sizes = [16, 16], strides = [1, 1]} : vector<22x16xf32> to vector<16x16xf32>
    %335 = vector.broadcast %333 : f32 to vector<16x16xf32>
    %336 = arith.mulf %335, %334 : vector<16x16xf32>
    %337 = arith.addf %327, %336 : vector<16x16xf32>
    %c0_178 = arith.constant 0 : index
    %c0_179 = arith.constant 0 : index
    %c5_180 = arith.constant 5 : index
    %338 = vector.load %arg4[%c0_178, %c0_179, %c5_180] : memref<2x22x22xf32, #tpu.memory_space<vmem>>, vector<1x22x16xf32>
    %339 = vector.shape_cast %338 : vector<1x22x16xf32> to vector<22x16xf32>
    %c5_181 = arith.constant 5 : index
    %340 = memref.load %arg1[%c5_181] : memref<99xf32, #tpu.memory_space<smem>>
    %341 = vector.extract_strided_slice %339 {offsets = [0, 0], sizes = [16, 16], strides = [1, 1]} : vector<22x16xf32> to vector<16x16xf32>
    %342 = vector.broadcast %340 : f32 to vector<16x16xf32>
    %343 = arith.mulf %342, %341 : vector<16x16xf32>
    %344 = arith.addf %337, %343 : vector<16x16xf32>
    %c12_182 = arith.constant 12 : index
    %345 = memref.load %arg1[%c12_182] : memref<99xf32, #tpu.memory_space<smem>>
    %346 = vector.extract_strided_slice %339 {offsets = [1, 0], sizes = [16, 16], strides = [1, 1]} : vector<22x16xf32> to vector<16x16xf32>
    %347 = vector.broadcast %345 : f32 to vector<16x16xf32>
    %348 = arith.mulf %347, %346 : vector<16x16xf32>
    %349 = arith.addf %332, %348 : vector<16x16xf32>
    %c19 = arith.constant 19 : index
    %350 = memref.load %arg1[%c19] : memref<99xf32, #tpu.memory_space<smem>>
    %351 = vector.extract_strided_slice %339 {offsets = [2, 0], sizes = [16, 16], strides = [1, 1]} : vector<22x16xf32> to vector<16x16xf32>
    %352 = vector.broadcast %350 : f32 to vector<16x16xf32>
    %353 = arith.mulf %352, %351 : vector<16x16xf32>
    %354 = arith.addf %344, %353 : vector<16x16xf32>
    %c26 = arith.constant 26 : index
    %355 = memref.load %arg1[%c26] : memref<99xf32, #tpu.memory_space<smem>>
    %356 = vector.extract_strided_slice %339 {offsets = [3, 0], sizes = [16, 16], strides = [1, 1]} : vector<22x16xf32> to vector<16x16xf32>
    %357 = vector.broadcast %355 : f32 to vector<16x16xf32>
    %358 = arith.mulf %357, %356 : vector<16x16xf32>
    %359 = arith.addf %349, %358 : vector<16x16xf32>
    %c33 = arith.constant 33 : index
    %360 = memref.load %arg1[%c33] : memref<99xf32, #tpu.memory_space<smem>>
    %361 = vector.extract_strided_slice %339 {offsets = [4, 0], sizes = [16, 16], strides = [1, 1]} : vector<22x16xf32> to vector<16x16xf32>
    %362 = vector.broadcast %360 : f32 to vector<16x16xf32>
    %363 = arith.mulf %362, %361 : vector<16x16xf32>
    %364 = arith.addf %354, %363 : vector<16x16xf32>
    %c40 = arith.constant 40 : index
    %365 = memref.load %arg1[%c40] : memref<99xf32, #tpu.memory_space<smem>>
    %366 = vector.extract_strided_slice %339 {offsets = [5, 0], sizes = [16, 16], strides = [1, 1]} : vector<22x16xf32> to vector<16x16xf32>
    %367 = vector.broadcast %365 : f32 to vector<16x16xf32>
    %368 = arith.mulf %367, %366 : vector<16x16xf32>
    %369 = arith.addf %359, %368 : vector<16x16xf32>
    %c47 = arith.constant 47 : index
    %370 = memref.load %arg1[%c47] : memref<99xf32, #tpu.memory_space<smem>>
    %371 = vector.extract_strided_slice %339 {offsets = [6, 0], sizes = [16, 16], strides = [1, 1]} : vector<22x16xf32> to vector<16x16xf32>
    %372 = vector.broadcast %370 : f32 to vector<16x16xf32>
    %373 = arith.mulf %372, %371 : vector<16x16xf32>
    %374 = arith.addf %364, %373 : vector<16x16xf32>
    %c0_183 = arith.constant 0 : index
    %c0_184 = arith.constant 0 : index
    %c6_185 = arith.constant 6 : index
    %375 = vector.load %arg4[%c0_183, %c0_184, %c6_185] : memref<2x22x22xf32, #tpu.memory_space<vmem>>, vector<1x22x16xf32>
    %376 = vector.shape_cast %375 : vector<1x22x16xf32> to vector<22x16xf32>
    %c6_186 = arith.constant 6 : index
    %377 = memref.load %arg1[%c6_186] : memref<99xf32, #tpu.memory_space<smem>>
    %378 = vector.extract_strided_slice %376 {offsets = [0, 0], sizes = [16, 16], strides = [1, 1]} : vector<22x16xf32> to vector<16x16xf32>
    %379 = vector.broadcast %377 : f32 to vector<16x16xf32>
    %380 = arith.mulf %379, %378 : vector<16x16xf32>
    %381 = arith.addf %374, %380 : vector<16x16xf32>
    %c13_187 = arith.constant 13 : index
    %382 = memref.load %arg1[%c13_187] : memref<99xf32, #tpu.memory_space<smem>>
    %383 = vector.extract_strided_slice %376 {offsets = [1, 0], sizes = [16, 16], strides = [1, 1]} : vector<22x16xf32> to vector<16x16xf32>
    %384 = vector.broadcast %382 : f32 to vector<16x16xf32>
    %385 = arith.mulf %384, %383 : vector<16x16xf32>
    %386 = arith.addf %369, %385 : vector<16x16xf32>
    %c20 = arith.constant 20 : index
    %387 = memref.load %arg1[%c20] : memref<99xf32, #tpu.memory_space<smem>>
    %388 = vector.extract_strided_slice %376 {offsets = [2, 0], sizes = [16, 16], strides = [1, 1]} : vector<22x16xf32> to vector<16x16xf32>
    %389 = vector.broadcast %387 : f32 to vector<16x16xf32>
    %390 = arith.mulf %389, %388 : vector<16x16xf32>
    %391 = arith.addf %381, %390 : vector<16x16xf32>
    %c27 = arith.constant 27 : index
    %392 = memref.load %arg1[%c27] : memref<99xf32, #tpu.memory_space<smem>>
    %393 = vector.extract_strided_slice %376 {offsets = [3, 0], sizes = [16, 16], strides = [1, 1]} : vector<22x16xf32> to vector<16x16xf32>
    %394 = vector.broadcast %392 : f32 to vector<16x16xf32>
    %395 = arith.mulf %394, %393 : vector<16x16xf32>
    %396 = arith.addf %386, %395 : vector<16x16xf32>
    %c34 = arith.constant 34 : index
    %397 = memref.load %arg1[%c34] : memref<99xf32, #tpu.memory_space<smem>>
    %398 = vector.extract_strided_slice %376 {offsets = [4, 0], sizes = [16, 16], strides = [1, 1]} : vector<22x16xf32> to vector<16x16xf32>
    %399 = vector.broadcast %397 : f32 to vector<16x16xf32>
    %400 = arith.mulf %399, %398 : vector<16x16xf32>
    %401 = arith.addf %391, %400 : vector<16x16xf32>
    %c41 = arith.constant 41 : index
    %402 = memref.load %arg1[%c41] : memref<99xf32, #tpu.memory_space<smem>>
    %403 = vector.extract_strided_slice %376 {offsets = [5, 0], sizes = [16, 16], strides = [1, 1]} : vector<22x16xf32> to vector<16x16xf32>
    %404 = vector.broadcast %402 : f32 to vector<16x16xf32>
    %405 = arith.mulf %404, %403 : vector<16x16xf32>
    %406 = arith.addf %396, %405 : vector<16x16xf32>
    %c48_188 = arith.constant 48 : index
    %407 = memref.load %arg1[%c48_188] : memref<99xf32, #tpu.memory_space<smem>>
    %408 = vector.extract_strided_slice %376 {offsets = [6, 0], sizes = [16, 16], strides = [1, 1]} : vector<22x16xf32> to vector<16x16xf32>
    %409 = vector.broadcast %407 : f32 to vector<16x16xf32>
    %410 = arith.mulf %409, %408 : vector<16x16xf32>
    %411 = arith.addf %401, %410 : vector<16x16xf32>
    %c1_189 = arith.constant 1 : index
    %c0_190 = arith.constant 0 : index
    %c0_191 = arith.constant 0 : index
    %412 = vector.load %arg4[%c1_189, %c0_190, %c0_191] : memref<2x22x22xf32, #tpu.memory_space<vmem>>, vector<1x22x16xf32>
    %413 = vector.shape_cast %412 : vector<1x22x16xf32> to vector<22x16xf32>
    %c49 = arith.constant 49 : index
    %414 = memref.load %arg1[%c49] : memref<99xf32, #tpu.memory_space<smem>>
    %415 = vector.extract_strided_slice %413 {offsets = [0, 0], sizes = [16, 16], strides = [1, 1]} : vector<22x16xf32> to vector<16x16xf32>
    %416 = vector.broadcast %414 : f32 to vector<16x16xf32>
    %417 = arith.mulf %416, %415 : vector<16x16xf32>
    %418 = arith.addf %151, %417 : vector<16x16xf32>
    %c56 = arith.constant 56 : index
    %419 = memref.load %arg1[%c56] : memref<99xf32, #tpu.memory_space<smem>>
    %420 = vector.extract_strided_slice %413 {offsets = [1, 0], sizes = [16, 16], strides = [1, 1]} : vector<22x16xf32> to vector<16x16xf32>
    %421 = vector.broadcast %419 : f32 to vector<16x16xf32>
    %422 = arith.mulf %421, %420 : vector<16x16xf32>
    %423 = arith.addf %152, %422 : vector<16x16xf32>
    %c63 = arith.constant 63 : index
    %424 = memref.load %arg1[%c63] : memref<99xf32, #tpu.memory_space<smem>>
    %425 = vector.extract_strided_slice %413 {offsets = [2, 0], sizes = [16, 16], strides = [1, 1]} : vector<22x16xf32> to vector<16x16xf32>
    %426 = vector.broadcast %424 : f32 to vector<16x16xf32>
    %427 = arith.mulf %426, %425 : vector<16x16xf32>
    %428 = arith.addf %418, %427 : vector<16x16xf32>
    %c70 = arith.constant 70 : index
    %429 = memref.load %arg1[%c70] : memref<99xf32, #tpu.memory_space<smem>>
    %430 = vector.extract_strided_slice %413 {offsets = [3, 0], sizes = [16, 16], strides = [1, 1]} : vector<22x16xf32> to vector<16x16xf32>
    %431 = vector.broadcast %429 : f32 to vector<16x16xf32>
    %432 = arith.mulf %431, %430 : vector<16x16xf32>
    %433 = arith.addf %423, %432 : vector<16x16xf32>
    %c77 = arith.constant 77 : index
    %434 = memref.load %arg1[%c77] : memref<99xf32, #tpu.memory_space<smem>>
    %435 = vector.extract_strided_slice %413 {offsets = [4, 0], sizes = [16, 16], strides = [1, 1]} : vector<22x16xf32> to vector<16x16xf32>
    %436 = vector.broadcast %434 : f32 to vector<16x16xf32>
    %437 = arith.mulf %436, %435 : vector<16x16xf32>
    %438 = arith.addf %428, %437 : vector<16x16xf32>
    %c84 = arith.constant 84 : index
    %439 = memref.load %arg1[%c84] : memref<99xf32, #tpu.memory_space<smem>>
    %440 = vector.extract_strided_slice %413 {offsets = [5, 0], sizes = [16, 16], strides = [1, 1]} : vector<22x16xf32> to vector<16x16xf32>
    %441 = vector.broadcast %439 : f32 to vector<16x16xf32>
    %442 = arith.mulf %441, %440 : vector<16x16xf32>
    %443 = arith.addf %433, %442 : vector<16x16xf32>
    %c91 = arith.constant 91 : index
    %444 = memref.load %arg1[%c91] : memref<99xf32, #tpu.memory_space<smem>>
    %445 = vector.extract_strided_slice %413 {offsets = [6, 0], sizes = [16, 16], strides = [1, 1]} : vector<22x16xf32> to vector<16x16xf32>
    %446 = vector.broadcast %444 : f32 to vector<16x16xf32>
    %447 = arith.mulf %446, %445 : vector<16x16xf32>
    %448 = arith.addf %438, %447 : vector<16x16xf32>
    %c1_192 = arith.constant 1 : index
    %c0_193 = arith.constant 0 : index
    %c1_194 = arith.constant 1 : index
    %449 = vector.load %arg4[%c1_192, %c0_193, %c1_194] : memref<2x22x22xf32, #tpu.memory_space<vmem>>, vector<1x22x16xf32>
    %450 = vector.shape_cast %449 : vector<1x22x16xf32> to vector<22x16xf32>
    %c50 = arith.constant 50 : index
    %451 = memref.load %arg1[%c50] : memref<99xf32, #tpu.memory_space<smem>>
    %452 = vector.extract_strided_slice %450 {offsets = [0, 0], sizes = [16, 16], strides = [1, 1]} : vector<22x16xf32> to vector<16x16xf32>
    %453 = vector.broadcast %451 : f32 to vector<16x16xf32>
    %454 = arith.mulf %453, %452 : vector<16x16xf32>
    %455 = arith.addf %448, %454 : vector<16x16xf32>
    %c57 = arith.constant 57 : index
    %456 = memref.load %arg1[%c57] : memref<99xf32, #tpu.memory_space<smem>>
    %457 = vector.extract_strided_slice %450 {offsets = [1, 0], sizes = [16, 16], strides = [1, 1]} : vector<22x16xf32> to vector<16x16xf32>
    %458 = vector.broadcast %456 : f32 to vector<16x16xf32>
    %459 = arith.mulf %458, %457 : vector<16x16xf32>
    %460 = arith.addf %443, %459 : vector<16x16xf32>
    %c64_195 = arith.constant 64 : index
    %461 = memref.load %arg1[%c64_195] : memref<99xf32, #tpu.memory_space<smem>>
    %462 = vector.extract_strided_slice %450 {offsets = [2, 0], sizes = [16, 16], strides = [1, 1]} : vector<22x16xf32> to vector<16x16xf32>
    %463 = vector.broadcast %461 : f32 to vector<16x16xf32>
    %464 = arith.mulf %463, %462 : vector<16x16xf32>
    %465 = arith.addf %455, %464 : vector<16x16xf32>
    %c71 = arith.constant 71 : index
    %466 = memref.load %arg1[%c71] : memref<99xf32, #tpu.memory_space<smem>>
    %467 = vector.extract_strided_slice %450 {offsets = [3, 0], sizes = [16, 16], strides = [1, 1]} : vector<22x16xf32> to vector<16x16xf32>
    %468 = vector.broadcast %466 : f32 to vector<16x16xf32>
    %469 = arith.mulf %468, %467 : vector<16x16xf32>
    %470 = arith.addf %460, %469 : vector<16x16xf32>
    %c78 = arith.constant 78 : index
    %471 = memref.load %arg1[%c78] : memref<99xf32, #tpu.memory_space<smem>>
    %472 = vector.extract_strided_slice %450 {offsets = [4, 0], sizes = [16, 16], strides = [1, 1]} : vector<22x16xf32> to vector<16x16xf32>
    %473 = vector.broadcast %471 : f32 to vector<16x16xf32>
    %474 = arith.mulf %473, %472 : vector<16x16xf32>
    %475 = arith.addf %465, %474 : vector<16x16xf32>
    %c85 = arith.constant 85 : index
    %476 = memref.load %arg1[%c85] : memref<99xf32, #tpu.memory_space<smem>>
    %477 = vector.extract_strided_slice %450 {offsets = [5, 0], sizes = [16, 16], strides = [1, 1]} : vector<22x16xf32> to vector<16x16xf32>
    %478 = vector.broadcast %476 : f32 to vector<16x16xf32>
    %479 = arith.mulf %478, %477 : vector<16x16xf32>
    %480 = arith.addf %470, %479 : vector<16x16xf32>
    %c92 = arith.constant 92 : index
    %481 = memref.load %arg1[%c92] : memref<99xf32, #tpu.memory_space<smem>>
    %482 = vector.extract_strided_slice %450 {offsets = [6, 0], sizes = [16, 16], strides = [1, 1]} : vector<22x16xf32> to vector<16x16xf32>
    %483 = vector.broadcast %481 : f32 to vector<16x16xf32>
    %484 = arith.mulf %483, %482 : vector<16x16xf32>
    %485 = arith.addf %475, %484 : vector<16x16xf32>
    %c1_196 = arith.constant 1 : index
    %c0_197 = arith.constant 0 : index
    %c2_198 = arith.constant 2 : index
    %486 = vector.load %arg4[%c1_196, %c0_197, %c2_198] : memref<2x22x22xf32, #tpu.memory_space<vmem>>, vector<1x22x16xf32>
    %487 = vector.shape_cast %486 : vector<1x22x16xf32> to vector<22x16xf32>
    %c51 = arith.constant 51 : index
    %488 = memref.load %arg1[%c51] : memref<99xf32, #tpu.memory_space<smem>>
    %489 = vector.extract_strided_slice %487 {offsets = [0, 0], sizes = [16, 16], strides = [1, 1]} : vector<22x16xf32> to vector<16x16xf32>
    %490 = vector.broadcast %488 : f32 to vector<16x16xf32>
    %491 = arith.mulf %490, %489 : vector<16x16xf32>
    %492 = arith.addf %485, %491 : vector<16x16xf32>
    %c58 = arith.constant 58 : index
    %493 = memref.load %arg1[%c58] : memref<99xf32, #tpu.memory_space<smem>>
    %494 = vector.extract_strided_slice %487 {offsets = [1, 0], sizes = [16, 16], strides = [1, 1]} : vector<22x16xf32> to vector<16x16xf32>
    %495 = vector.broadcast %493 : f32 to vector<16x16xf32>
    %496 = arith.mulf %495, %494 : vector<16x16xf32>
    %497 = arith.addf %480, %496 : vector<16x16xf32>
    %c65 = arith.constant 65 : index
    %498 = memref.load %arg1[%c65] : memref<99xf32, #tpu.memory_space<smem>>
    %499 = vector.extract_strided_slice %487 {offsets = [2, 0], sizes = [16, 16], strides = [1, 1]} : vector<22x16xf32> to vector<16x16xf32>
    %500 = vector.broadcast %498 : f32 to vector<16x16xf32>
    %501 = arith.mulf %500, %499 : vector<16x16xf32>
    %502 = arith.addf %492, %501 : vector<16x16xf32>
    %c72 = arith.constant 72 : index
    %503 = memref.load %arg1[%c72] : memref<99xf32, #tpu.memory_space<smem>>
    %504 = vector.extract_strided_slice %487 {offsets = [3, 0], sizes = [16, 16], strides = [1, 1]} : vector<22x16xf32> to vector<16x16xf32>
    %505 = vector.broadcast %503 : f32 to vector<16x16xf32>
    %506 = arith.mulf %505, %504 : vector<16x16xf32>
    %507 = arith.addf %497, %506 : vector<16x16xf32>
    %c79 = arith.constant 79 : index
    %508 = memref.load %arg1[%c79] : memref<99xf32, #tpu.memory_space<smem>>
    %509 = vector.extract_strided_slice %487 {offsets = [4, 0], sizes = [16, 16], strides = [1, 1]} : vector<22x16xf32> to vector<16x16xf32>
    %510 = vector.broadcast %508 : f32 to vector<16x16xf32>
    %511 = arith.mulf %510, %509 : vector<16x16xf32>
    %512 = arith.addf %502, %511 : vector<16x16xf32>
    %c86 = arith.constant 86 : index
    %513 = memref.load %arg1[%c86] : memref<99xf32, #tpu.memory_space<smem>>
    %514 = vector.extract_strided_slice %487 {offsets = [5, 0], sizes = [16, 16], strides = [1, 1]} : vector<22x16xf32> to vector<16x16xf32>
    %515 = vector.broadcast %513 : f32 to vector<16x16xf32>
    %516 = arith.mulf %515, %514 : vector<16x16xf32>
    %517 = arith.addf %507, %516 : vector<16x16xf32>
    %c93 = arith.constant 93 : index
    %518 = memref.load %arg1[%c93] : memref<99xf32, #tpu.memory_space<smem>>
    %519 = vector.extract_strided_slice %487 {offsets = [6, 0], sizes = [16, 16], strides = [1, 1]} : vector<22x16xf32> to vector<16x16xf32>
    %520 = vector.broadcast %518 : f32 to vector<16x16xf32>
    %521 = arith.mulf %520, %519 : vector<16x16xf32>
    %522 = arith.addf %512, %521 : vector<16x16xf32>
    %c1_199 = arith.constant 1 : index
    %c0_200 = arith.constant 0 : index
    %c3_201 = arith.constant 3 : index
    %523 = vector.load %arg4[%c1_199, %c0_200, %c3_201] : memref<2x22x22xf32, #tpu.memory_space<vmem>>, vector<1x22x16xf32>
    %524 = vector.shape_cast %523 : vector<1x22x16xf32> to vector<22x16xf32>
    %c52 = arith.constant 52 : index
    %525 = memref.load %arg1[%c52] : memref<99xf32, #tpu.memory_space<smem>>
    %526 = vector.extract_strided_slice %524 {offsets = [0, 0], sizes = [16, 16], strides = [1, 1]} : vector<22x16xf32> to vector<16x16xf32>
    %527 = vector.broadcast %525 : f32 to vector<16x16xf32>
    %528 = arith.mulf %527, %526 : vector<16x16xf32>
    %529 = arith.addf %522, %528 : vector<16x16xf32>
    %c59 = arith.constant 59 : index
    %530 = memref.load %arg1[%c59] : memref<99xf32, #tpu.memory_space<smem>>
    %531 = vector.extract_strided_slice %524 {offsets = [1, 0], sizes = [16, 16], strides = [1, 1]} : vector<22x16xf32> to vector<16x16xf32>
    %532 = vector.broadcast %530 : f32 to vector<16x16xf32>
    %533 = arith.mulf %532, %531 : vector<16x16xf32>
    %534 = arith.addf %517, %533 : vector<16x16xf32>
    %c66 = arith.constant 66 : index
    %535 = memref.load %arg1[%c66] : memref<99xf32, #tpu.memory_space<smem>>
    %536 = vector.extract_strided_slice %524 {offsets = [2, 0], sizes = [16, 16], strides = [1, 1]} : vector<22x16xf32> to vector<16x16xf32>
    %537 = vector.broadcast %535 : f32 to vector<16x16xf32>
    %538 = arith.mulf %537, %536 : vector<16x16xf32>
    %539 = arith.addf %529, %538 : vector<16x16xf32>
    %c73 = arith.constant 73 : index
    %540 = memref.load %arg1[%c73] : memref<99xf32, #tpu.memory_space<smem>>
    %541 = vector.extract_strided_slice %524 {offsets = [3, 0], sizes = [16, 16], strides = [1, 1]} : vector<22x16xf32> to vector<16x16xf32>
    %542 = vector.broadcast %540 : f32 to vector<16x16xf32>
    %543 = arith.mulf %542, %541 : vector<16x16xf32>
    %544 = arith.addf %534, %543 : vector<16x16xf32>
    %c80_202 = arith.constant 80 : index
    %545 = memref.load %arg1[%c80_202] : memref<99xf32, #tpu.memory_space<smem>>
    %546 = vector.extract_strided_slice %524 {offsets = [4, 0], sizes = [16, 16], strides = [1, 1]} : vector<22x16xf32> to vector<16x16xf32>
    %547 = vector.broadcast %545 : f32 to vector<16x16xf32>
    %548 = arith.mulf %547, %546 : vector<16x16xf32>
    %549 = arith.addf %539, %548 : vector<16x16xf32>
    %c87 = arith.constant 87 : index
    %550 = memref.load %arg1[%c87] : memref<99xf32, #tpu.memory_space<smem>>
    %551 = vector.extract_strided_slice %524 {offsets = [5, 0], sizes = [16, 16], strides = [1, 1]} : vector<22x16xf32> to vector<16x16xf32>
    %552 = vector.broadcast %550 : f32 to vector<16x16xf32>
    %553 = arith.mulf %552, %551 : vector<16x16xf32>
    %554 = arith.addf %544, %553 : vector<16x16xf32>
    %c94 = arith.constant 94 : index
    %555 = memref.load %arg1[%c94] : memref<99xf32, #tpu.memory_space<smem>>
    %556 = vector.extract_strided_slice %524 {offsets = [6, 0], sizes = [16, 16], strides = [1, 1]} : vector<22x16xf32> to vector<16x16xf32>
    %557 = vector.broadcast %555 : f32 to vector<16x16xf32>
    %558 = arith.mulf %557, %556 : vector<16x16xf32>
    %559 = arith.addf %549, %558 : vector<16x16xf32>
    %c1_203 = arith.constant 1 : index
    %c0_204 = arith.constant 0 : index
    %c4_205 = arith.constant 4 : index
    %560 = vector.load %arg4[%c1_203, %c0_204, %c4_205] : memref<2x22x22xf32, #tpu.memory_space<vmem>>, vector<1x22x16xf32>
    %561 = vector.shape_cast %560 : vector<1x22x16xf32> to vector<22x16xf32>
    %c53 = arith.constant 53 : index
    %562 = memref.load %arg1[%c53] : memref<99xf32, #tpu.memory_space<smem>>
    %563 = vector.extract_strided_slice %561 {offsets = [0, 0], sizes = [16, 16], strides = [1, 1]} : vector<22x16xf32> to vector<16x16xf32>
    %564 = vector.broadcast %562 : f32 to vector<16x16xf32>
    %565 = arith.mulf %564, %563 : vector<16x16xf32>
    %566 = arith.addf %559, %565 : vector<16x16xf32>
    %c60 = arith.constant 60 : index
    %567 = memref.load %arg1[%c60] : memref<99xf32, #tpu.memory_space<smem>>
    %568 = vector.extract_strided_slice %561 {offsets = [1, 0], sizes = [16, 16], strides = [1, 1]} : vector<22x16xf32> to vector<16x16xf32>
    %569 = vector.broadcast %567 : f32 to vector<16x16xf32>
    %570 = arith.mulf %569, %568 : vector<16x16xf32>
    %571 = arith.addf %554, %570 : vector<16x16xf32>
    %c67 = arith.constant 67 : index
    %572 = memref.load %arg1[%c67] : memref<99xf32, #tpu.memory_space<smem>>
    %573 = vector.extract_strided_slice %561 {offsets = [2, 0], sizes = [16, 16], strides = [1, 1]} : vector<22x16xf32> to vector<16x16xf32>
    %574 = vector.broadcast %572 : f32 to vector<16x16xf32>
    %575 = arith.mulf %574, %573 : vector<16x16xf32>
    %576 = arith.addf %566, %575 : vector<16x16xf32>
    %c74 = arith.constant 74 : index
    %577 = memref.load %arg1[%c74] : memref<99xf32, #tpu.memory_space<smem>>
    %578 = vector.extract_strided_slice %561 {offsets = [3, 0], sizes = [16, 16], strides = [1, 1]} : vector<22x16xf32> to vector<16x16xf32>
    %579 = vector.broadcast %577 : f32 to vector<16x16xf32>
    %580 = arith.mulf %579, %578 : vector<16x16xf32>
    %581 = arith.addf %571, %580 : vector<16x16xf32>
    %c81 = arith.constant 81 : index
    %582 = memref.load %arg1[%c81] : memref<99xf32, #tpu.memory_space<smem>>
    %583 = vector.extract_strided_slice %561 {offsets = [4, 0], sizes = [16, 16], strides = [1, 1]} : vector<22x16xf32> to vector<16x16xf32>
    %584 = vector.broadcast %582 : f32 to vector<16x16xf32>
    %585 = arith.mulf %584, %583 : vector<16x16xf32>
    %586 = arith.addf %576, %585 : vector<16x16xf32>
    %c88 = arith.constant 88 : index
    %587 = memref.load %arg1[%c88] : memref<99xf32, #tpu.memory_space<smem>>
    %588 = vector.extract_strided_slice %561 {offsets = [5, 0], sizes = [16, 16], strides = [1, 1]} : vector<22x16xf32> to vector<16x16xf32>
    %589 = vector.broadcast %587 : f32 to vector<16x16xf32>
    %590 = arith.mulf %589, %588 : vector<16x16xf32>
    %591 = arith.addf %581, %590 : vector<16x16xf32>
    %c95 = arith.constant 95 : index
    %592 = memref.load %arg1[%c95] : memref<99xf32, #tpu.memory_space<smem>>
    %593 = vector.extract_strided_slice %561 {offsets = [6, 0], sizes = [16, 16], strides = [1, 1]} : vector<22x16xf32> to vector<16x16xf32>
    %594 = vector.broadcast %592 : f32 to vector<16x16xf32>
    %595 = arith.mulf %594, %593 : vector<16x16xf32>
    %596 = arith.addf %586, %595 : vector<16x16xf32>
    %c1_206 = arith.constant 1 : index
    %c0_207 = arith.constant 0 : index
    %c5_208 = arith.constant 5 : index
    %597 = vector.load %arg4[%c1_206, %c0_207, %c5_208] : memref<2x22x22xf32, #tpu.memory_space<vmem>>, vector<1x22x16xf32>
    %598 = vector.shape_cast %597 : vector<1x22x16xf32> to vector<22x16xf32>
    %c54 = arith.constant 54 : index
    %599 = memref.load %arg1[%c54] : memref<99xf32, #tpu.memory_space<smem>>
    %600 = vector.extract_strided_slice %598 {offsets = [0, 0], sizes = [16, 16], strides = [1, 1]} : vector<22x16xf32> to vector<16x16xf32>
    %601 = vector.broadcast %599 : f32 to vector<16x16xf32>
    %602 = arith.mulf %601, %600 : vector<16x16xf32>
    %603 = arith.addf %596, %602 : vector<16x16xf32>
    %c61 = arith.constant 61 : index
    %604 = memref.load %arg1[%c61] : memref<99xf32, #tpu.memory_space<smem>>
    %605 = vector.extract_strided_slice %598 {offsets = [1, 0], sizes = [16, 16], strides = [1, 1]} : vector<22x16xf32> to vector<16x16xf32>
    %606 = vector.broadcast %604 : f32 to vector<16x16xf32>
    %607 = arith.mulf %606, %605 : vector<16x16xf32>
    %608 = arith.addf %591, %607 : vector<16x16xf32>
    %c68 = arith.constant 68 : index
    %609 = memref.load %arg1[%c68] : memref<99xf32, #tpu.memory_space<smem>>
    %610 = vector.extract_strided_slice %598 {offsets = [2, 0], sizes = [16, 16], strides = [1, 1]} : vector<22x16xf32> to vector<16x16xf32>
    %611 = vector.broadcast %609 : f32 to vector<16x16xf32>
    %612 = arith.mulf %611, %610 : vector<16x16xf32>
    %613 = arith.addf %603, %612 : vector<16x16xf32>
    %c75 = arith.constant 75 : index
    %614 = memref.load %arg1[%c75] : memref<99xf32, #tpu.memory_space<smem>>
    %615 = vector.extract_strided_slice %598 {offsets = [3, 0], sizes = [16, 16], strides = [1, 1]} : vector<22x16xf32> to vector<16x16xf32>
    %616 = vector.broadcast %614 : f32 to vector<16x16xf32>
    %617 = arith.mulf %616, %615 : vector<16x16xf32>
    %618 = arith.addf %608, %617 : vector<16x16xf32>
    %c82 = arith.constant 82 : index
    %619 = memref.load %arg1[%c82] : memref<99xf32, #tpu.memory_space<smem>>
    %620 = vector.extract_strided_slice %598 {offsets = [4, 0], sizes = [16, 16], strides = [1, 1]} : vector<22x16xf32> to vector<16x16xf32>
    %621 = vector.broadcast %619 : f32 to vector<16x16xf32>
    %622 = arith.mulf %621, %620 : vector<16x16xf32>
    %623 = arith.addf %613, %622 : vector<16x16xf32>
    %c89 = arith.constant 89 : index
    %624 = memref.load %arg1[%c89] : memref<99xf32, #tpu.memory_space<smem>>
    %625 = vector.extract_strided_slice %598 {offsets = [5, 0], sizes = [16, 16], strides = [1, 1]} : vector<22x16xf32> to vector<16x16xf32>
    %626 = vector.broadcast %624 : f32 to vector<16x16xf32>
    %627 = arith.mulf %626, %625 : vector<16x16xf32>
    %628 = arith.addf %618, %627 : vector<16x16xf32>
    %c96_209 = arith.constant 96 : index
    %629 = memref.load %arg1[%c96_209] : memref<99xf32, #tpu.memory_space<smem>>
    %630 = vector.extract_strided_slice %598 {offsets = [6, 0], sizes = [16, 16], strides = [1, 1]} : vector<22x16xf32> to vector<16x16xf32>
    %631 = vector.broadcast %629 : f32 to vector<16x16xf32>
    %632 = arith.mulf %631, %630 : vector<16x16xf32>
    %633 = arith.addf %623, %632 : vector<16x16xf32>
    %c1_210 = arith.constant 1 : index
    %c0_211 = arith.constant 0 : index
    %c6_212 = arith.constant 6 : index
    %634 = vector.load %arg4[%c1_210, %c0_211, %c6_212] : memref<2x22x22xf32, #tpu.memory_space<vmem>>, vector<1x22x16xf32>
    %635 = vector.shape_cast %634 : vector<1x22x16xf32> to vector<22x16xf32>
    %c55 = arith.constant 55 : index
    %636 = memref.load %arg1[%c55] : memref<99xf32, #tpu.memory_space<smem>>
    %637 = vector.extract_strided_slice %635 {offsets = [0, 0], sizes = [16, 16], strides = [1, 1]} : vector<22x16xf32> to vector<16x16xf32>
    %638 = vector.broadcast %636 : f32 to vector<16x16xf32>
    %639 = arith.mulf %638, %637 : vector<16x16xf32>
    %640 = arith.addf %633, %639 : vector<16x16xf32>
    %c62 = arith.constant 62 : index
    %641 = memref.load %arg1[%c62] : memref<99xf32, #tpu.memory_space<smem>>
    %642 = vector.extract_strided_slice %635 {offsets = [1, 0], sizes = [16, 16], strides = [1, 1]} : vector<22x16xf32> to vector<16x16xf32>
    %643 = vector.broadcast %641 : f32 to vector<16x16xf32>
    %644 = arith.mulf %643, %642 : vector<16x16xf32>
    %645 = arith.addf %628, %644 : vector<16x16xf32>
    %c69 = arith.constant 69 : index
    %646 = memref.load %arg1[%c69] : memref<99xf32, #tpu.memory_space<smem>>
    %647 = vector.extract_strided_slice %635 {offsets = [2, 0], sizes = [16, 16], strides = [1, 1]} : vector<22x16xf32> to vector<16x16xf32>
    %648 = vector.broadcast %646 : f32 to vector<16x16xf32>
    %649 = arith.mulf %648, %647 : vector<16x16xf32>
    %650 = arith.addf %640, %649 : vector<16x16xf32>
    %c76 = arith.constant 76 : index
    %651 = memref.load %arg1[%c76] : memref<99xf32, #tpu.memory_space<smem>>
    %652 = vector.extract_strided_slice %635 {offsets = [3, 0], sizes = [16, 16], strides = [1, 1]} : vector<22x16xf32> to vector<16x16xf32>
    %653 = vector.broadcast %651 : f32 to vector<16x16xf32>
    %654 = arith.mulf %653, %652 : vector<16x16xf32>
    %655 = arith.addf %645, %654 : vector<16x16xf32>
    %c83 = arith.constant 83 : index
    %656 = memref.load %arg1[%c83] : memref<99xf32, #tpu.memory_space<smem>>
    %657 = vector.extract_strided_slice %635 {offsets = [4, 0], sizes = [16, 16], strides = [1, 1]} : vector<22x16xf32> to vector<16x16xf32>
    %658 = vector.broadcast %656 : f32 to vector<16x16xf32>
    %659 = arith.mulf %658, %657 : vector<16x16xf32>
    %660 = arith.addf %650, %659 : vector<16x16xf32>
    %c90 = arith.constant 90 : index
    %661 = memref.load %arg1[%c90] : memref<99xf32, #tpu.memory_space<smem>>
    %662 = vector.extract_strided_slice %635 {offsets = [5, 0], sizes = [16, 16], strides = [1, 1]} : vector<22x16xf32> to vector<16x16xf32>
    %663 = vector.broadcast %661 : f32 to vector<16x16xf32>
    %664 = arith.mulf %663, %662 : vector<16x16xf32>
    %665 = arith.addf %655, %664 : vector<16x16xf32>
    %c97 = arith.constant 97 : index
    %666 = memref.load %arg1[%c97] : memref<99xf32, #tpu.memory_space<smem>>
    %667 = vector.extract_strided_slice %635 {offsets = [6, 0], sizes = [16, 16], strides = [1, 1]} : vector<22x16xf32> to vector<16x16xf32>
    %668 = vector.broadcast %666 : f32 to vector<16x16xf32>
    %669 = arith.mulf %668, %667 : vector<16x16xf32>
    %670 = arith.addf %660, %669 : vector<16x16xf32>
    %671 = arith.addf %411, %406 : vector<16x16xf32>
    %672 = arith.addf %670, %665 : vector<16x16xf32>
    %673 = arith.addf %671, %672 : vector<16x16xf32>
    %674 = vector.broadcast %0 : f32 to vector<16x16xf32>
    %675 = arith.addf %673, %674 : vector<16x16xf32>
    %676 = vector.extract_strided_slice %675 {offsets = [0, 0], sizes = [1, 16], strides = [1, 1]} : vector<16x16xf32> to vector<1x16xf32>
    %c0_213 = arith.constant 0 : index
    %c0_214 = arith.constant 0 : index
    %677 = vector.load %arg5[%c0_213, %c0_214] : memref<1x256xf32, #tpu.memory_space<vmem>>, vector<1x16xf32>
    tpu.vector_store %arg5[%c0_213, %c0_214], %676 {strides = array<i32>} : memref<1x256xf32, #tpu.memory_space<vmem>>, vector<1x16xf32>,
    %678 = vector.extract_strided_slice %675 {offsets = [1, 0], sizes = [1, 16], strides = [1, 1]} : vector<16x16xf32> to vector<1x16xf32>
    %c0_215 = arith.constant 0 : index
    %c16_216 = arith.constant 16 : index
    %679 = vector.load %arg5[%c0_215, %c16_216] : memref<1x256xf32, #tpu.memory_space<vmem>>, vector<1x16xf32>
    tpu.vector_store %arg5[%c0_215, %c16_216], %678 {strides = array<i32>} : memref<1x256xf32, #tpu.memory_space<vmem>>, vector<1x16xf32>,
    %680 = vector.extract_strided_slice %675 {offsets = [2, 0], sizes = [1, 16], strides = [1, 1]} : vector<16x16xf32> to vector<1x16xf32>
    %c0_217 = arith.constant 0 : index
    %c32_218 = arith.constant 32 : index
    %681 = vector.load %arg5[%c0_217, %c32_218] : memref<1x256xf32, #tpu.memory_space<vmem>>, vector<1x16xf32>
    tpu.vector_store %arg5[%c0_217, %c32_218], %680 {strides = array<i32>} : memref<1x256xf32, #tpu.memory_space<vmem>>, vector<1x16xf32>,
    %682 = vector.extract_strided_slice %675 {offsets = [3, 0], sizes = [1, 16], strides = [1, 1]} : vector<16x16xf32> to vector<1x16xf32>
    %c0_219 = arith.constant 0 : index
    %c48_220 = arith.constant 48 : index
    %683 = vector.load %arg5[%c0_219, %c48_220] : memref<1x256xf32, #tpu.memory_space<vmem>>, vector<1x16xf32>
    tpu.vector_store %arg5[%c0_219, %c48_220], %682 {strides = array<i32>} : memref<1x256xf32, #tpu.memory_space<vmem>>, vector<1x16xf32>,
    %684 = vector.extract_strided_slice %675 {offsets = [4, 0], sizes = [1, 16], strides = [1, 1]} : vector<16x16xf32> to vector<1x16xf32>
    %c0_221 = arith.constant 0 : index
    %c64_222 = arith.constant 64 : index
    %685 = vector.load %arg5[%c0_221, %c64_222] : memref<1x256xf32, #tpu.memory_space<vmem>>, vector<1x16xf32>
    tpu.vector_store %arg5[%c0_221, %c64_222], %684 {strides = array<i32>} : memref<1x256xf32, #tpu.memory_space<vmem>>, vector<1x16xf32>,
    %686 = vector.extract_strided_slice %675 {offsets = [5, 0], sizes = [1, 16], strides = [1, 1]} : vector<16x16xf32> to vector<1x16xf32>
    %c0_223 = arith.constant 0 : index
    %c80_224 = arith.constant 80 : index
    %687 = vector.load %arg5[%c0_223, %c80_224] : memref<1x256xf32, #tpu.memory_space<vmem>>, vector<1x16xf32>
    tpu.vector_store %arg5[%c0_223, %c80_224], %686 {strides = array<i32>} : memref<1x256xf32, #tpu.memory_space<vmem>>, vector<1x16xf32>,
    %688 = vector.extract_strided_slice %675 {offsets = [6, 0], sizes = [1, 16], strides = [1, 1]} : vector<16x16xf32> to vector<1x16xf32>
    %c0_225 = arith.constant 0 : index
    %c96_226 = arith.constant 96 : index
    %689 = vector.load %arg5[%c0_225, %c96_226] : memref<1x256xf32, #tpu.memory_space<vmem>>, vector<1x16xf32>
    tpu.vector_store %arg5[%c0_225, %c96_226], %688 {strides = array<i32>} : memref<1x256xf32, #tpu.memory_space<vmem>>, vector<1x16xf32>,
    %690 = vector.extract_strided_slice %675 {offsets = [7, 0], sizes = [1, 16], strides = [1, 1]} : vector<16x16xf32> to vector<1x16xf32>
    %c0_227 = arith.constant 0 : index
    %c112_228 = arith.constant 112 : index
    %691 = vector.load %arg5[%c0_227, %c112_228] : memref<1x256xf32, #tpu.memory_space<vmem>>, vector<1x16xf32>
    tpu.vector_store %arg5[%c0_227, %c112_228], %690 {strides = array<i32>} : memref<1x256xf32, #tpu.memory_space<vmem>>, vector<1x16xf32>,
    %692 = vector.extract_strided_slice %675 {offsets = [8, 0], sizes = [1, 16], strides = [1, 1]} : vector<16x16xf32> to vector<1x16xf32>
    %c0_229 = arith.constant 0 : index
    %c128_230 = arith.constant 128 : index
    %693 = vector.load %arg5[%c0_229, %c128_230] : memref<1x256xf32, #tpu.memory_space<vmem>>, vector<1x16xf32>
    tpu.vector_store %arg5[%c0_229, %c128_230], %692 {strides = array<i32>} : memref<1x256xf32, #tpu.memory_space<vmem>>, vector<1x16xf32>,
    %694 = vector.extract_strided_slice %675 {offsets = [9, 0], sizes = [1, 16], strides = [1, 1]} : vector<16x16xf32> to vector<1x16xf32>
    %c0_231 = arith.constant 0 : index
    %c144_232 = arith.constant 144 : index
    %695 = vector.load %arg5[%c0_231, %c144_232] : memref<1x256xf32, #tpu.memory_space<vmem>>, vector<1x16xf32>
    tpu.vector_store %arg5[%c0_231, %c144_232], %694 {strides = array<i32>} : memref<1x256xf32, #tpu.memory_space<vmem>>, vector<1x16xf32>,
    %696 = vector.extract_strided_slice %675 {offsets = [10, 0], sizes = [1, 16], strides = [1, 1]} : vector<16x16xf32> to vector<1x16xf32>
    %c0_233 = arith.constant 0 : index
    %c160_234 = arith.constant 160 : index
    %697 = vector.load %arg5[%c0_233, %c160_234] : memref<1x256xf32, #tpu.memory_space<vmem>>, vector<1x16xf32>
    tpu.vector_store %arg5[%c0_233, %c160_234], %696 {strides = array<i32>} : memref<1x256xf32, #tpu.memory_space<vmem>>, vector<1x16xf32>,
    %698 = vector.extract_strided_slice %675 {offsets = [11, 0], sizes = [1, 16], strides = [1, 1]} : vector<16x16xf32> to vector<1x16xf32>
    %c0_235 = arith.constant 0 : index
    %c176_236 = arith.constant 176 : index
    %699 = vector.load %arg5[%c0_235, %c176_236] : memref<1x256xf32, #tpu.memory_space<vmem>>, vector<1x16xf32>
    tpu.vector_store %arg5[%c0_235, %c176_236], %698 {strides = array<i32>} : memref<1x256xf32, #tpu.memory_space<vmem>>, vector<1x16xf32>,
    %700 = vector.extract_strided_slice %675 {offsets = [12, 0], sizes = [1, 16], strides = [1, 1]} : vector<16x16xf32> to vector<1x16xf32>
    %c0_237 = arith.constant 0 : index
    %c192_238 = arith.constant 192 : index
    %701 = vector.load %arg5[%c0_237, %c192_238] : memref<1x256xf32, #tpu.memory_space<vmem>>, vector<1x16xf32>
    tpu.vector_store %arg5[%c0_237, %c192_238], %700 {strides = array<i32>} : memref<1x256xf32, #tpu.memory_space<vmem>>, vector<1x16xf32>,
    %702 = vector.extract_strided_slice %675 {offsets = [13, 0], sizes = [1, 16], strides = [1, 1]} : vector<16x16xf32> to vector<1x16xf32>
    %c0_239 = arith.constant 0 : index
    %c208_240 = arith.constant 208 : index
    %703 = vector.load %arg5[%c0_239, %c208_240] : memref<1x256xf32, #tpu.memory_space<vmem>>, vector<1x16xf32>
    tpu.vector_store %arg5[%c0_239, %c208_240], %702 {strides = array<i32>} : memref<1x256xf32, #tpu.memory_space<vmem>>, vector<1x16xf32>,
    %704 = vector.extract_strided_slice %675 {offsets = [14, 0], sizes = [1, 16], strides = [1, 1]} : vector<16x16xf32> to vector<1x16xf32>
    %c0_241 = arith.constant 0 : index
    %c224_242 = arith.constant 224 : index
    %705 = vector.load %arg5[%c0_241, %c224_242] : memref<1x256xf32, #tpu.memory_space<vmem>>, vector<1x16xf32>
    tpu.vector_store %arg5[%c0_241, %c224_242], %704 {strides = array<i32>} : memref<1x256xf32, #tpu.memory_space<vmem>>, vector<1x16xf32>,
    %706 = vector.extract_strided_slice %675 {offsets = [15, 0], sizes = [1, 16], strides = [1, 1]} : vector<16x16xf32> to vector<1x16xf32>
    %c0_243 = arith.constant 0 : index
    %c240_244 = arith.constant 240 : index
    %707 = vector.load %arg5[%c0_243, %c240_244] : memref<1x256xf32, #tpu.memory_space<vmem>>, vector<1x16xf32>
    tpu.vector_store %arg5[%c0_243, %c240_244], %706 {strides = array<i32>} : memref<1x256xf32, #tpu.memory_space<vmem>>, vector<1x16xf32>,
    %c0_245 = arith.constant 0 : index
    %c0_246 = arith.constant 0 : index
    %708 = vector.load %arg5[%c0_245, %c0_246] : memref<1x256xf32, #tpu.memory_space<vmem>>, vector<1x256xf32>
    %709 = vector.shape_cast %708 : vector<1x256xf32> to vector<1x256xf32>
    %710 = vector.broadcast %709 : vector<1x256xf32> to vector<4x256xf32>
    %c0_i32_247 = arith.constant 0 : i32
    %c0_i32_248 = arith.constant 0 : i32
    %c0_i32_249 = arith.constant 0 : i32
    %c4_i32_250 = arith.constant 4 : i32
    %711 = arith.muli %c0_i32_249, %c4_i32_250 : i32
    %712 = tpu.assume_multiple %711, 4 : i32
    %c0_i32_251 = arith.constant 0 : i32
    %c0_i32_252 = arith.constant 0 : i32
    %713 = tpu.memref_slice %arg2[%c0_i32_247, %c0_i32_251, %c0_i32_252] : memref<1x4x256xf32, #tpu.memory_space<vmem>> -> memref<1x4x256xf32, #tpu.memory_space<vmem>>
    %714 = tpu.memref_squeeze %713 : memref<1x4x256xf32, #tpu.memory_space<vmem>> -> memref<4x256xf32, #tpu.memory_space<vmem>>
    %715 = arith.index_cast %712 : i32 to index
    %c0_253 = arith.constant 0 : index
    %716 = vector.load %714[%715, %c0_253] : memref<4x256xf32, #tpu.memory_space<vmem>>, vector<4x256xf32>
    %717 = arith.mulf %716, %710 : vector<4x256xf32>
    %c0_i32_254 = arith.constant 0 : i32
    %c0_i32_255 = arith.constant 0 : i32
    %718 = tpu.memref_slice %arg3[%c0_i32_248, %c0_i32_254, %c0_i32_255] : memref<1x4x256xf32, #tpu.memory_space<vmem>> -> memref<1x4x256xf32, #tpu.memory_space<vmem>>
    %719 = tpu.memref_squeeze %718 : memref<1x4x256xf32, #tpu.memory_space<vmem>> -> memref<4x256xf32, #tpu.memory_space<vmem>>
    %720 = arith.index_cast %712 : i32 to index
    %c0_256 = arith.constant 0 : index
    %721 = vector.load %719[%720, %c0_256] : memref<4x256xf32, #tpu.memory_space<vmem>>, vector<4x256xf32>
    tpu.vector_store %719[%720, %c0_256], %717 {strides = array<i32>} : memref<4x256xf32, #tpu.memory_space<vmem>>, vector<4x256xf32>,
    %c1_i32_257 = arith.constant 1 : i32
    return
  }
  func.func @transform_0(%arg0: i32) -> i32 {
    %c0_i32 = arith.constant 0 : i32
    %c0_i32_0 = arith.constant 0 : i32
    return %c0_i32 : i32
  }
  func.func @transform_1(%arg0: i32) -> (i32, i32, i32) {
    %c0_i32 = arith.constant 0 : i32
    %c0_i32_0 = arith.constant 0 : i32
    %c0_i32_1 = arith.constant 0 : i32
    return %arg0, %c0_i32, %c0_i32_0 : i32, i32, i32
  }
  func.func @transform_2(%arg0: i32) -> (i32, i32, i32) {
    %c0_i32 = arith.constant 0 : i32
    %c0_i32_0 = arith.constant 0 : i32
    %c0_i32_1 = arith.constant 0 : i32
    return %arg0, %c0_i32, %c0_i32_0 : i32, i32, i32
  }
}

</mosaic_0001>

<bundles_post_ra>
// kernel: tpu_custom_call.1
= control target key start
LH: loop header
LB: loop body
LE: loop exit
PB: predicated region body
PF: predicated region fallthrough
CT: control target
= control target key end

     0   :  { %s5813_s0 = inlined_call_operand.hbm [shape: f32[99], index: 0, kind: input, shape index: {}]   ;;  %s5814_s1 = inlined_call_operand.hbm [shape: f32[2,4,256], index: 1, kind: input, shape index: {}]   ;;  %s5815_s2 = inlined_call_operand.hbm [shape: f32[2,4,256], index: 2, kind: output, shape index: {}]  }
   0x1   :  { %5975 = sst [smem:[#allocation151_spill]] %s5813_s0 }
   0x2   :  { %5976 = sst [smem:[#allocation152_spill]] %s5814_s1 }
   0x3   :  { %5977 = sst [smem:[#allocation153_spill]] %s5815_s2 }
   0x4   :  { %7 = vsyncpa [#allocation8], 0 }
   0x5   :  { %8 = vsyncpa [#allocation6], 0 }
   0x6   :  { %10 = vsyncpa [#allocation6 + $0x1], 0 }
   0x7   :  { %11 = vsyncpa [#allocation7], 0 }
   0x8   :  { %13 = vsyncpa [#allocation7 + $0x1], 0  ;;  %s3276_s9 = smov 0   ;;  %s3278_s10 = smov 0  }
   0x9   :  { %s3280_s11 = smov 0   ;;  %s3282_s12 = smov 0  }
   0xa LB: > { %5978 = sst [smem:[#allocation14_spill]] %s3221_s9  ;;  %s3297_s13 = sadd.s32 4294967295, %s3233_s12   ;;  %s3233_s12 = sphi %s3282_s12, %s6482_s12   ;;  %s3229_s11 = sphi %s3280_s11, %s6485_s11   ;;  %s3225_s10 = sphi %s3278_s10, %s6484_s10   ;;  %s3221_s9 = sphi %s3276_s9, %s6483_s9  }
   0xb   : > { %5979 = sst [smem:[#allocation15_spill]] %s3225_s10  ;;  %s2891_s14 = sadd.s32 4294967294, %s3233_s12  }
   0xc   : > { %5980 = sst [smem:[#allocation16_spill]] %s3229_s11  ;;  %p60_p0 = scmp.ne.s32.totalorder %s3225_s10, %s3221_s9 }
   0xd   : > { %5981 = sst [smem:[#allocation17_spill]] %s3233_s12  ;;  %p5816_p1 = scmp.eq.s32.totalorder %s3297_s13, 0 }
   0xe   : > { %5982 = sst [smem:[#allocation18_spill]] %s3297_s13  ;;  %p84_p2 = scmp.eq.s32.totalorder %s3297_s13, 1 }
   0xf   : > { %p90_p3 = scmp.eq.s32.totalorder %s2891_s14, 1  ;;  %p3306_p4 = por %p5816_p1, %p60_p0 }
  0x10   : > { %p2892_p5 = scmp.ge.s32.totalorder %s3233_s12, 1  ;;  %p97_p7 = scmp.lt.s32.totalorder %s3233_s12, 3 }
  0x11   : > { %s5983_s15 = scalar_select %p3306_p4, 1, 0 }
  0x12   : > { %p3311_p6 = por %p90_p3, %p60_p0  ;;  %p3316_p8 = pnand %p2892_p5, %p97_p7 }
  0x13   : > { %s3322_s18 = sadd.s32 1, %s3233_s12   ;;  %s47_s20 = sadd.s32 1, %s3229_s11 }
  0x14   : > { %s5984_s16 = scalar_select %p3311_p6, 1, 0 }
  0x15   : > { %s5986_s17 = scalar_select %p3316_p8, 1, 0 }
  0x16   : > { %5985 = sst [smem:[#allocation19_spill]] %s5984_s16  ;;  %p3047_p10 = pneg %p3316_p8 }
  0x17   : > { %5987 = sst [smem:[#allocation20_spill]] %s3322_s18  ;;  %s44_s19 = ssub.s32 %s3233_s12, %s3322_s18 }
  0x18   : > { %p3048_p11 = pnand %p3047_p10, %p5816_p1  ;;  %p45_p12 = scmp.eq.s32.totalorder %s44_s19, 0 }
  0x19   : > { %p54_p13 = scmp.ne.s32.totalorder %s3229_s11, %s3225_s10  ;;  %p55_p0 = scmp.eq.s32.totalorder %s3233_s12, 0 }
  0x1a   : > { %p3060_p3 = scmp.lt.s32.totalorder %s3233_s12, 2  ;;  %s3235_s21 = smov [#allocation5]  }
  0x1b   : > { %s5988_s0 = sld [smem:[#allocation151_spill]]  ;;  %p56_p5 = por %p55_p0, %p54_p13 }
  0x1c   : > { %s3339_s24 = scalar_select %p45_p12, %s3229_s11, %s47_s20  }
  0x1d   : > { %p3343_p7 = por %p84_p2, %p54_p13  ;;  %s119_s26 = sand.u32 1, %s3229_s11  }
  0x1e   : > { %5989 = sst [smem:[#allocation21_spill]] %s3339_s24  ;;  %s3037_s27 = sshll.u32 %s3233_s12, 7 }
  0x1f   : > { %s5990_s25 = scalar_select %p3343_p7, 1, 0 }
  0x20   : > { %s2895_s28 = sshll.u32 %s119_s26, 3  ;;  %s5992_s1 = sld [smem:[#allocation152_spill]] }
  0x21   : > { %3050 = dma.hbm_to_smem (!%p3048_p11), %s5988_s0, 16, %s3235_s21, [#allocation8]  }
  0x22   : > { %5991 = sst [smem:[#allocation22_spill]] %s5990_s25  ;;  %s123_s4 = scalar_lea.vmem [#allocation9], %s2895_s28 }
  0x23   : > { %s131_s5 = sshll.u32 %s123_s4, 4  ;;  %p3354_p10 = pnand %p3060_p3, %p56_p5  ;;  %s132_s5 = int_to_ptr.vmem [resolvable:$true] %s131_s5 }
  0x24   : > { %s120_s7 = scalar_lea.sflag [#allocation6], %s119_s26 }
  0x25   : > { %p3139_p11 = pneg %p3354_p10 }
  0x26   : > { %s3352_s3 = scalar_lea.hbm %s5992_s1, %s3037_s27  ;;  %s3142_s20 = scalar_lea.hbm %s5992_s1, 256 }
  0x27   : > { %s3137_s8 = scalar_lea.hbm %s3352_s3, 128  ;;  %p3143_p0 = scmp.lt.s32.totalorder %s3352_s3, %s5992_s1 }
  0x28   : > { %p3138_p2 = scmp.ne.s32.totalorder %s3352_s3, %s3137_s8  ;;  %p3144_p3 = scmp.lt.s32.totalorder %s3142_s20, %s3137_s8 }
  0x2a   : > { %p3140_p12 = pnand %p3139_p11, %p3138_p2  ;;  %p3145_p5 = por %p3144_p3, %p3143_p0 }
  0x2c   : > { %p3141_p13 = pneg %p3140_p12 }
  0x2e   : > { %p3146_p9 = pnand %p3145_p5, %p3141_p13 }
  0x30   : > { %3149 = shalt.err (!%p3146_p9)
}
  0x31   : > { %s3150_s23 = scalar_lea.vmem %s132_s5, 128  ;;  %s3236_s26 = smov [#allocation9]  }
  0x32   : > { %p3151_p1 = scmp.ne.s32.totalorder %s132_s5, %s3150_s23  ;;  %s3155_s27 = sshll.u32 %s3236_s26, 4  ;;  %s3156_s27 = int_to_ptr.vmem [resolvable:$false] %s3155_s27 }
  0x33   : > { %s3157_s28 = scalar_lea.vmem %s3156_s27, 256  ;;  %p3158_p2 = scmp.lt.s32.totalorder %s132_s5, %s3156_s27 }
  0x34   : > { %p3153_p6 = pnand %p3151_p1, %p3139_p11  ;;  %p3159_p12 = scmp.lt.s32.totalorder %s3157_s28, %s3150_s23 }
  0x36   : > { %p3154_p7 = pneg %p3153_p6  ;;  %p3160_p4 = por %p3159_p12, %p3158_p2 }
  0x38   : > { %p3161_p8 = pnand %p3160_p4, %p3154_p7 }
  0x3a   : > { %3164 = shalt.err (!%p3161_p8)
}
  0x3b   : > { %3054 = dma.hbm_to_vmem [thread:$0]  (!%p3354_p10), %s3352_s3, 128, %s132_s5, %s120_s7  }
  0x3c   : > { %p5994_p13 = scmp.ne.s32.totalorder %s5986_s17, 0 }
  0x3e   : > { %140 = sbr.rel (%p5994_p13) target bundleno = 984 (0x3d8), region = 28 }
  0x43   : > { %p5995_p9 = scmp.eq.s32.totalorder %s3297_s13, 0 }
  0x45   : > { %3208 = dma.done.wait (%p5995_p9), [#allocation8], 16   ;;  %p5996_p1 = pmov %p5995_p9 }
  0x46   : > { %s3379_s29 = sand.u32 1, %s3225_s10   ;;  %p5999_p4 = scmp.ne.s32.totalorder %s5983_s15, 0 }
  0x47   : > { %3210 = vsyncadd (%p5996_p1), [#allocation8], 4294967280  ;;  %5997 = sst [smem:[#allocation23_spill]] %s3379_s29  ;;  %s5820_s30 = sshll.u32 %s3379_s29, 3 }
  0x48   : > { %s147_s4 = scalar_lea.sflag [#allocation6], %s3379_s29  ;;  %s3385_s3 = scalar_lea.vmem [#allocation9], %s5820_s30 }
  0x49   : > { %5998 = sst [smem:[#allocation24_spill]] %s3385_s3 }
  0x4a   : > { %3212 = dma.done.wait (%p5999_p4), %s147_s4, 128  }
  0x4b   : > { %3214 = vsyncadd (%p5999_p4), %s147_s4, 4294967168 }
  0x4c   : > { %155 = sfence }
  0x4d   : > { %v176_v0 = vld [vmem:[%s3385_s3] sm:$0xff]  ;;  %vm181_vm0 = vcmask 1043456   ;;  %vm258_vm1 = vcmask 179200   ;;  %v3237_v12 = vmov 1966171168   ;;  %v5837_v14 = vlaneseq  ;;  %s3239_s15 = smov 115  }
  0x4e   : > { %v179_v1 = vcombine.high %v176_v0, %v176_v0  ;;  %v199_v2 = vsel %vm181_vm0, %v176_v0, -inf  ;;  %v182_v3 = vsel %vm181_vm0, %v176_v0, 0.0  ;;  %v219_v13 = vunpack.c.l.s4 %v3237_v12  ;;  %s3240_s17 = smov 3   ;;  %s3241_s5 = smov 99  }
  0x4f   : > { %v200_v4 = vrot.slane %v199_v2, 4  ;;  %v183_v5 = vrot.slane %v182_v3, 4  ;;  %v3238_v19 = vmov 0.0   ;;  %v3405_v25 = vshrl.u32 %v5837_v14, 7  ;;  %s3242_s6 = smov 83   ;;  %s3243_s7 = smov 67  }
  0x50   : > { %v206_v6 = vsel %vm181_vm0, %v179_v1, -inf  ;;  %v189_v7 = vsel %vm181_vm0, %v179_v1, 0.0  ;;  %263 = vst.msk [vmem:[#allocation2 + $0x18] sm:$0xff] %vm258_vm1, %v3238_v19  ;;  %259 = vst.msk [vmem:[#allocation2] sm:$0xff] %vm258_vm1, %v3238_v19  ;;  %v220_v24 = vunpack.c.0.s8 %v219_v13  ;;  %vm235_vm2 = vcmp.lt.s32.totalorder %v5837_v14, 256  ;;  %s3244_s8 = smov 51  }
  0x51   : > { %v201_v8 = vmax.f32 %v199_v2, %v200_v4  ;;  %v207_v9 = vrot.slane %v206_v6, 4  ;;  %v184_v10 = vadd.f32 %v183_v5, %v182_v3  ;;  %v190_v11 = vrot.slane %v189_v7, 4  ;;  %260 = vst.msk [vmem:[#allocation2 + $0x8] sm:$0xff] %vm258_vm1, %v3238_v19  ;;  %264 = vst.msk [vmem:[#allocation2 + $0x20] sm:$0xff] %vm258_vm1, %v3238_v19  ;;  %s3245_s14 = smov 35   ;;  %s3246_s19 = smov 19  }
  0x52   : > { %6000 = vst [vmem:[#allocation25_spill] sm:$0xff] %v3405_v25  ;;  %v3408_v35 = vsub.s32 %v220_v24, %v3405_v25  ;;  %vm261_vm3 = vcmask 177152   ;;  %vm275_vm4 = vcmask 147480   ;;  %s3433_s20 = sld [smem:[#allocation5 + $0x1]]  ;;  %s6003_s25 = smov 127   ;;  %vm613_vm5 = vcmask 1045504  }
  0x53   : > { %v202_v15 = vrot.slane %v201_v8, 2  ;;  %v208_v16 = vmax.f32 %v206_v6, %v207_v9  ;;  %v185_v17 = vrot.slane %v184_v10, 2  ;;  %v191_v18 = vadd.f32 %v190_v11, %v189_v7  ;;  %265 = vst.msk [vmem:[#allocation2 + $0x28] sm:$0x3f] %vm261_vm3, %v3238_v19  ;;  %262 = vst.msk [vmem:[#allocation2 + $0x10] sm:$0x3f] %vm261_vm3, %v3238_v19 }
  0x54   : > { %6001 = vst [vmem:[#allocation26_spill] sm:$0xff] %v3408_v35  ;;  %s2942_s21 = sld [smem:[#allocation5 + $0x8]]  ;;  %vm686_vm6 = vcmask 1041408   ;;  %vm2569_vm7 = vcmask 1046528  }
  0x55   : > { %v203_v20 = vmax.f32 %v201_v8, %v202_v15  ;;  %v209_v21 = vrot.slane %v208_v16, 2  ;;  %v186_v22 = vadd.f32 %v185_v17, %v184_v10  ;;  %v192_v23 = vrot.slane %v191_v18, 2  ;;  %s3435_s22 = sld [smem:[#allocation5 + $0x2]] }
  0x56   : > { %s3439_s23 = sld [smem:[#allocation5 + $0x9]] }
  0x57   : > { %v204_v26 = vrot.slane %v203_v20, 1  ;;  %v210_v27 = vmax.f32 %v208_v16, %v209_v21  ;;  %v187_v28 = vrot.slane %v186_v22, 1  ;;  %v193_v29 = vadd.f32 %v192_v23, %v191_v18  ;;  %s3441_s26 = sld [smem:[#allocation5 + $0x3]] }
  0x58   : > { %s3443_s27 = sld [smem:[#allocation5 + $0xa]]  ;;  %v697_v5 = vstv %s3433_s20 }
  0x59   : > { %v205_v30 = vmax.f32 %v203_v20, %v204_v26  ;;  %v211_v31 = vrot.slane %v210_v27, 1  ;;  %v188_v32 = vadd.f32 %v187_v28, %v186_v22  ;;  %v194_v33 = vrot.slane %v193_v29, 1  ;;  %s3445_s28 = sld [smem:[#allocation5 + $0x16]] }
  0x5a   : > { %s3449_s4 = sld [smem:[#allocation5 + $0x25]]  ;;  %v3465_v10 = vstv %s2942_s21 }
  0x5b   : > { %v212_v34 = vmax.f32 %v210_v27, %v211_v31  ;;  %v195_v36 = vadd.f32 %v194_v33, %v193_v29  ;;  %v213_v37 = vmul.f32 0.25, %v188_v32  ;;  %s3478_s20 = sld [smem:[#allocation5 + $0x10]]  ;;  %v844_v27 = vstv %s3435_s22 }
  0x5c   : > { %s3480_s21 = sld [smem:[#allocation5 + $0x1e]]  ;;  %v858_v28 = vstv %s3439_s23 }
  0x5d   : > { %v240_v38 = vcombine.low %v205_v30, %v212_v34  ;;  %v214_v39 = vmul.f32 0.25, %v195_v36  ;;  %s3483_s30 = sld [smem:[#allocation5 + $0x11]]  ;;  %v991_v29 = vstv %s3441_s26  ;;  %s3248_s26 = smov 126  }
  0x5e   : > { %s3485_s0 = sld [smem:[#allocation5 + $0x1f]]  ;;  %v3536_v30 = vstv %s3443_s27 }
  0x5f   : > { %v247_v40 = vrot.slane %v240_v38, %v3408_v35  ;;  %v217_v41 = vcombine.low %v213_v37, %v214_v39  ;;  %s3489_s1 = sld [smem:[#allocation5 + $0x2d]]  ;;  %v3542_v32 = vstv %s3445_s28 }
  0x60   : > { %s3491_s24 = sld [smem:[#allocation5]]  ;;  %v3545_v33 = vstv %s3449_s4 }
  0x61   : > { %v254_v42 = vrot.slane %v247_v40, %v3408_v35  ;;  %v224_v43 = vrot.slane %v217_v41, %v3408_v35  ;;  %s3493_s11 = sld [smem:[#allocation5 + $0xe]] }
  0x62   : > { %s3495_s10 = sld [smem:[#allocation5 + $0x1c]] }
  0x63   : > { %257 = vst.msk [vmem:[#allocation4 + $0x1] ss:$2 sm:$0x3] %vm235_vm2, %v254_v42  ;;  %v231_v44 = vrot.slane %v224_v43, %v3408_v35  ;;  %s3501_s18 = sld [smem:[#allocation5 + $0x7]]  ;;  %v3574_v42 = vstv %s3478_s20 }
  0x64   : > { %s3503_s12 = sld [smem:[#allocation5 + $0x15]] }
  0x65   : > { %237 = vst.msk [vmem:[#allocation4] ss:$2 sm:$0x3] %vm235_vm2, %v231_v44  ;;  %s3507_s16 = sld [smem:[#allocation5 + $0x23]]  ;;  %v3581_v44 = vstv %s3480_s21 }
  0x66   : > { %s3512_s9 = sld [smem:[#allocation5 + $0x12]] }
  0x67   : > { %s3514_s2 = sld [smem:[#allocation5 + $0x19]] }
  0x68   : > { %s3517_s29 = sld [smem:[#allocation5 + $0x20]] }
  0x69   : > { %s3519_s13 = sld [smem:[#allocation5 + $0x27]] }
  0x6a   : > { %v2906_v45 = vld [vmem:[#allocation4 + $0x1] ss:$0 sm:$0xff]  ;;  %v2920_v47 = vld [vmem:[#allocation4 + $0x3] ss:$0 sm:$0xff]  ;;  %s3525_s3 = sld [smem:[#allocation5 + $0x2e]] }
  0x6b   : > { %304 = vrot.lane.b32.xlu1 %v2906_v45, %s3239_s15  ;;  %283 = vrot.lane.b32.xlu0 %v2906_v45, %s3240_s17  ;;  %s3550_s22 = sld [smem:[#allocation5 + $0x28]] }
  0x6c   : > { %v2903_v46 = vld [vmem:[#allocation4] ss:$0 sm:$0xff]  ;;  %v2919_v48 = vld [vmem:[#allocation4 + $0x2] ss:$0 sm:$0xff]  ;;  %s3564_s23 = sld [smem:[#allocation5 + $0x2f]] }
  0x6d   : > { %6002 = sst [smem:[#allocation27_spill]] %s3514_s2 }
  0x6e   : > { %6004 = sst [smem:[#allocation28_spill]] %s3517_s29 }
  0x6f   : > { %324 = vrot.lane.b32.xlu1 %v2906_v45, %s3241_s5  ;;  %272 = vrot.lane.b32.xlu0 %v2903_v46, %s3240_s17  ;;  %6005 = sst [smem:[#allocation29_spill]] %s3519_s13 }
  0x70   : > { %s3528_s29 = sld [smem:[#allocation5 + $0x13]] }
  0x71   : > { %s3531_s13 = sld [smem:[#allocation5 + $0x1a]] }
  0x72   : > { %s3538_s2 = sld [smem:[#allocation5 + $0x21]] }
  0x73   : > { %344 = vrot.lane.b32.xlu1 %v2906_v45, %s3242_s6  ;;  %314 = vrot.lane.b32.xlu0 %v2903_v46, %s3241_s5  ;;  %s3576_s27 = sld [smem:[#allocation5 + $0x14]] }
  0x74   : > { %s6007_s28 = sld [smem:[#allocation27_spill]] }
  0x75   : > { %s6008_s4 = sld [smem:[#allocation28_spill]] }
  0x76   : > { %s4380_s20 = sld [smem:[#allocation5 + $0x4a]] }
  0x77   : > { %364 = vrot.lane.b32.xlu1 %v2906_v45, %s3243_s7  ;;  %334 = vrot.lane.b32.xlu0 %v2903_v46, %s3242_s6  ;;  %s4416_s21 = sld [smem:[#allocation5 + $0x5f]] }
  0x7b   : > { %384 = vrot.lane.b32.xlu1 %v2906_v45, %s3244_s8  ;;  %354 = vrot.lane.b32.xlu0 %v2903_v46, %s3243_s7 }
  0x7f   : > { %404 = vrot.lane.b32.xlu1 %v2906_v45, %s3245_s14  ;;  %374 = vrot.lane.b32.xlu0 %v2903_v46, %s3244_s8 }
  0x83   : > { %424 = vrot.lane.b32.xlu1 %v2906_v45, %s3246_s19  ;;  %394 = vrot.lane.b32.xlu0 %v2903_v46, %s3245_s14  ;;  %v3584_v45 = vstv %s3483_s30  ;;  %s4200_s30 = sld [smem:[#allocation5 + $0x43]] }
  0x87   : > { %444 = vrot.lane.b32.xlu1 %v2920_v47, %s3240_s17  ;;  %414 = vrot.lane.b32.xlu0 %v2903_v46, %s3246_s19 }
  0x8b   : > { %294 = vrot.lane.b32.xlu1 %v2903_v46, %s3239_s15  ;;  %434 = vrot.lane.b32.xlu0 %v2919_v48, %s3240_s17  ;;  %s3454_s17 = sld [smem:[#allocation5 + $0x24]]  ;;  %v3587_v46 = vstv %s3485_s0  ;;  %s3249_s0 = smov 125  }
  0x8f   : > { %464 = vrot.lane.b32.xlu1 %v2920_v47, %s3239_s15  ;;  %454 = vrot.lane.b32.xlu0 %v2919_v48, %s3239_s15  ;;  %s3452_s15 = sld [smem:[#allocation5 + $0x18]] }
  0x91   : > { %v3553_v36 = vstv %s3454_s17  ;;  %s4208_s17 = sld [smem:[#allocation5 + $0x3f]] }
  0x93   : > { %484 = vrot.lane.b32.xlu1 %v2920_v47, %s3241_s5  ;;  %474 = vrot.lane.b32.xlu0 %v2919_v48, %s3241_s5  ;;  %s3458_s5 = sld [smem:[#allocation5 + $0xf]] }
  0x95   : > { %v3548_v34 = vstv %s3452_s15  ;;  %s6009_s15 = sld [smem:[#allocation29_spill]] }
  0x97   : > { %504 = vrot.lane.b32.xlu1 %v2920_v47, %s3242_s6  ;;  %494 = vrot.lane.b32.xlu0 %v2919_v48, %s3242_s6  ;;  %s3463_s6 = sld [smem:[#allocation5 + $0x17]] }
  0x99   : > { %v3556_v37 = vstv %s3458_s5  ;;  %s4212_s5 = sld [smem:[#allocation5 + $0x4d]] }
  0x9b   : > { %524 = vrot.lane.b32.xlu1 %v2920_v47, %s3243_s7  ;;  %514 = vrot.lane.b32.xlu0 %v2919_v48, %s3243_s7  ;;  %s3467_s7 = sld [smem:[#allocation5 + $0x26]] }
  0x9d   : > { %v3559_v38 = vstv %s3463_s6  ;;  %s4214_s6 = sld [smem:[#allocation5 + $0x5b]] }
  0x9f   : > { %544 = vrot.lane.b32.xlu1 %v2920_v47, %s3244_s8  ;;  %534 = vrot.lane.b32.xlu0 %v2919_v48, %s3244_s8  ;;  %s5823_s8 = smov 127  }
  0xa1   : > { %v3562_v39 = vstv %s3467_s7  ;;  %s4220_s7 = sld [smem:[#allocation5 + $0x51]] }
  0xa2   : > { %6006 = vst [vmem:[#allocation30_spill] sm:$0xff] %v3562_v39 }
  0xa3   : > { %564 = vrot.lane.b32.xlu1 %v2920_v47, %s3245_s14  ;;  %554 = vrot.lane.b32.xlu0 %v2919_v48, %s3245_s14  ;;  %s3470_s14 = sld [smem:[#allocation5 + $0x1d]] }
  0xa7   : > { %584 = vrot.lane.b32.xlu1 %v2920_v47, %s3246_s19  ;;  %574 = vrot.lane.b32.xlu0 %v2919_v48, %s3246_s19  ;;  %s3472_s19 = sld [smem:[#allocation5 + $0x2b]]  ;;  %v3590_v47 = vstv %s3489_s1 }
  0xa8   : > { %s3878_s1 = sld [smem:[#allocation5 + $0x1b]] }
  0xa9   : > { %v3568_v40 = vstv %s3470_s14  ;;  %s4229_s14 = sld [smem:[#allocation5 + $0x54]] }
  0xad   : > { %v3571_v41 = vstv %s3472_s19  ;;  %s4369_s19 = sld [smem:[#allocation5 + $0x38]] }
  0xdd   : > { %v305_v49 = vpop.permute.xlu1 %304  ;;  %v284_v50 = vpop.permute.xlu0 %283 }
  0xde   : > { %307 = vst.msk [vmem:[#allocation2 + $0x1c] sm:$0x1] %vm275_vm4, %v305_v49  ;;  %287 = vst.msk [vmem:[#allocation2 + $0x1b] sm:$0x1] %vm275_vm4, %v284_v50 }
  0xe1   : > { %v325_v51 = vpop.permute.xlu1 %324  ;;  %v273_v52 = vpop.permute.xlu0 %272 }
  0xe2   : > { %327 = vst.msk [vmem:[#allocation2 + $0x1d] sm:$0x1] %vm275_vm4, %v325_v51  ;;  %276 = vst.msk [vmem:[#allocation2 + $0x3] sm:$0x1] %vm275_vm4, %v273_v52  ;;  %v3597_v51 = vstv %s3493_s11  ;;  %v3600_v52 = vstv %s3495_s10  ;;  %s4012_s10 = sld [smem:[#allocation5 + $0x30]] }
  0xe3   : > { %6010 = vst [vmem:[#allocation31_spill] sm:$0xff] %v3597_v51  ;;  %6011 = vst [vmem:[#allocation32_spill] sm:$0xff] %v3600_v52  ;;  %s4109_s11 = sld [smem:[#allocation5 + $0x2c]] }
  0xe5   : > { %v345_v53 = vpop.permute.xlu1 %344  ;;  %v315_v54 = vpop.permute.xlu0 %314 }
  0xe6   : > { %347 = vst.msk [vmem:[#allocation2 + $0x1e] sm:$0x1] %vm275_vm4, %v345_v53  ;;  %317 = vst.msk [vmem:[#allocation2 + $0x5] sm:$0x1] %vm275_vm4, %v315_v54  ;;  %v3606_v54 = vstv %s3501_s18  ;;  %s4195_s18 = sld [smem:[#allocation5 + $0x49]] }
  0xe7   : > { %6013 = vst [vmem:[#allocation34_spill] sm:$0xff] %v3606_v54 }
  0xe9   : > { %v365_v55 = vpop.permute.xlu1 %364  ;;  %v335_v56 = vpop.permute.xlu0 %334 }
  0xea   : > { %367 = vst.msk [vmem:[#allocation2 + $0x1f] sm:$0x1] %vm275_vm4, %v365_v55  ;;  %337 = vst.msk [vmem:[#allocation2 + $0x6] sm:$0x1] %vm275_vm4, %v335_v56  ;;  %v3609_v55 = vstv %s3503_s12  ;;  %v3614_v56 = vstv %s3507_s16  ;;  %s4176_s12 = sld [smem:[#allocation5 + $0x4]] }
  0xeb   : > { %6014 = vst [vmem:[#allocation35_spill] sm:$0xff] %v3609_v55  ;;  %6015 = vst [vmem:[#allocation36_spill] sm:$0xff] %v3614_v56  ;;  %s4191_s16 = sld [smem:[#allocation5 + $0x5e]] }
  0xed   : > { %v385_v57 = vpop.permute.xlu1 %384  ;;  %v355_v58 = vpop.permute.xlu0 %354 }
  0xee   : > { %387 = vst.msk [vmem:[#allocation2 + $0x20] sm:$0x1] %vm275_vm4, %v385_v57  ;;  %357 = vst.msk [vmem:[#allocation2 + $0x7] sm:$0x1] %vm275_vm4, %v355_v58  ;;  %v3617_v57 = vstv %s3512_s9  ;;  %v3620_v58 = vstv %s6007_s28  ;;  %s3946_s9 = sld [smem:[#allocation5 + $0x29]] }
  0xef   : > { %6016 = vst [vmem:[#allocation37_spill] sm:$0xff] %v3617_v57  ;;  %6017 = vst [vmem:[#allocation38_spill] sm:$0xff] %v3620_v58  ;;  %s4467_s28 = sld [smem:[#allocation5 + $0x52]] }
  0xf1   : > { %v405_v59 = vpop.permute.xlu1 %404  ;;  %v375_v60 = vpop.permute.xlu0 %374 }
  0xf2   : > { %407 = vst.msk [vmem:[#allocation2 + $0x21] sm:$0x1] %vm275_vm4, %v405_v59  ;;  %377 = vst.msk [vmem:[#allocation2 + $0x8] sm:$0x1] %vm275_vm4, %v375_v60  ;;  %v3623_v59 = vstv %s6008_s4  ;;  %v3626_v60 = vstv %s6009_s15  ;;  %s3250_s4 = smov 124   ;;  %s4477_s15 = sld [smem:[#allocation5 + $0x59]] }
  0xf5   : > { %v425_v61 = vpop.permute.xlu1 %424  ;;  %v395_v62 = vpop.permute.xlu0 %394 }
  0xf6   : > { %427 = vst.msk [vmem:[#allocation2 + $0x22] sm:$0x1] %vm275_vm4, %v425_v61  ;;  %397 = vst.msk [vmem:[#allocation2 + $0x9] sm:$0x1] %vm275_vm4, %v395_v62  ;;  %v3629_v61 = vstv %s3525_s3  ;;  %s4204_s3 = sld [smem:[#allocation5 + $0x31]] }
  0xf9   : > { %v445_v63 = vpop.permute.xlu1 %444  ;;  %v415_v0 = vpop.permute.xlu0 %414 }
  0xfa   : > { %447 = vst.msk [vmem:[#allocation2 + $0x23] sm:$0x1] %vm275_vm4, %v445_v63  ;;  %417 = vst.msk [vmem:[#allocation2 + $0xa] sm:$0x1] %vm275_vm4, %v415_v0  ;;  %v3634_v0 = vstv %s3528_s29  ;;  %s4198_s29 = sld [smem:[#allocation5 + $0x57]] }
  0xfd   : > { %v295_v1 = vpop.permute.xlu1 %294  ;;  %v435_v2 = vpop.permute.xlu0 %434 }
  0xfe   : > { %297 = vst.msk [vmem:[#allocation2 + $0x4] sm:$0x1] %vm275_vm4, %v295_v1  ;;  %437 = vst.msk [vmem:[#allocation2 + $0xb] sm:$0x1] %vm275_vm4, %v435_v2  ;;  %v3637_v1 = vstv %s3531_s13  ;;  %s4185_s13 = sld [smem:[#allocation5 + $0xb]] }
 0x101   : > { %v465_v3 = vpop.permute.xlu1 %464  ;;  %v455_v4 = vpop.permute.xlu0 %454 }
 0x102   : > { %467 = vst.msk [vmem:[#allocation2 + $0x24] sm:$0x1] %vm275_vm4, %v465_v3  ;;  %457 = vst.msk [vmem:[#allocation2 + $0xc] sm:$0x1] %vm275_vm4, %v455_v4  ;;  %v3646_v4 = vstv %s3538_s2  ;;  %s3930_s2 = sld [smem:[#allocation5 + $0x22]] }
 0x103   : > { %6018 = vst [vmem:[#allocation39_spill] sm:$0xff] %v3646_v4 }
 0x105   : > { %v3456_v6 = vld [vmem:[#allocation2] sm:$0xff]  ;;  %v485_v7 = vpop.permute.xlu1 %484  ;;  %v475_v8 = vpop.permute.xlu0 %474 }
 0x106   : > { %487 = vst.msk [vmem:[#allocation2 + $0x25] sm:$0x1] %vm275_vm4, %v485_v7  ;;  %477 = vst.msk [vmem:[#allocation2 + $0xd] sm:$0x1] %vm275_vm4, %v475_v8  ;;  %v698_v9 = vmul.f32 %v697_v5, %v3456_v6  ;;  %v712_v13 = vmul.f32 %v3465_v10, %v3456_v6  ;;  %v845_v31 = vmul.f32 %v844_v27, %v3456_v6  ;;  %v3658_v8 = vstv %s3564_s23  ;;  %s4444_s23 = sld [smem:[#allocation5 + $0x44]] }
 0x107   : > { %v859_v48 = vmul.f32 %v858_v28, %v3456_v6  ;;  %v732_v2 = vmul.f32 %v3556_v37, %v3456_v6  ;;  %v3655_v7 = vmul.f32 %v3542_v32, %v3456_v6 }
 0x108   : > { %702 = vrot.lane.b32.xlu0 %v698_v9, %s5823_s8  ;;  %v3661_v9 = vstv %s3576_s27  ;;  %s4457_s27 = sld [smem:[#allocation5 + $0x4b]] }
 0x109   : > { %v505_v11 = vpop.permute.xlu1 %504  ;;  %v495_v12 = vpop.permute.xlu0 %494  ;;  %6019 = vst [vmem:[#allocation40_spill] sm:$0xff] %v3661_v9 }
 0x10a   : > { %507 = vst.msk [vmem:[#allocation2 + $0x26] sm:$0x1] %vm275_vm4, %v505_v11  ;;  %497 = vst.msk [vmem:[#allocation2 + $0xe] sm:$0x1] %vm275_vm4, %v495_v12  ;;  %v1006_v11 = vmul.f32 %v3536_v30, %v3456_v6 }
 0x10c   : > { %718 = vrot.lane.b32.xlu0 %v712_v13, %s5823_s8  ;;  %s3499_s8 = sld [smem:[#allocation5 + $0x2a]] }
 0x10d   : > { %v525_v15 = vpop.permute.xlu1 %524  ;;  %v515_v16 = vpop.permute.xlu0 %514 }
 0x10e   : > { %527 = vst.msk [vmem:[#allocation2 + $0x27] sm:$0x1] %vm275_vm4, %v525_v15  ;;  %517 = vst.msk [vmem:[#allocation2 + $0xf] sm:$0x1] %vm275_vm4, %v515_v16 }
 0x111   : > { %v545_v17 = vpop.permute.xlu1 %544  ;;  %v535_v18 = vpop.permute.xlu0 %534 }
 0x112   : > { %547 = vst.msk [vmem:[#allocation2 + $0x28] sm:$0x1] %vm275_vm4, %v545_v17  ;;  %537 = vst.msk [vmem:[#allocation2 + $0x10] sm:$0x1] %vm275_vm4, %v535_v18  ;;  %v3603_v53 = vstv %s3499_s8  ;;  %v3678_v17 = vmul.f32 %v3571_v41, %v3456_v6  ;;  %v3682_v18 = vmul.f32 %v3568_v40, %v3456_v6  ;;  %s4224_s8 = sld [smem:[#allocation5 + $0x46]] }
 0x113   : > { %6012 = vst [vmem:[#allocation33_spill] sm:$0xff] %v3603_v53 }
 0x115   : > { %v3505_v19 = vld [vmem:[#allocation2 + $0x8] sm:$0xff]  ;;  %v565_v20 = vpop.permute.xlu1 %564  ;;  %v555_v21 = vpop.permute.xlu0 %554 }
 0x116   : > { %567 = vst.msk [vmem:[#allocation2 + $0x29] sm:$0x1] %vm275_vm4, %v565_v20  ;;  %557 = vst.msk [vmem:[#allocation2 + $0x11] sm:$0x1] %vm275_vm4, %v555_v21  ;;  %v699_v22 = vmul.f32 %v697_v5, %v3505_v19  ;;  %v713_v26 = vmul.f32 %v3465_v10, %v3505_v19  ;;  %v846_v63 = vmul.f32 %v844_v27, %v3505_v19  ;;  %v3649_v5 = vstv %s3550_s22  ;;  %s4426_s22 = sld [smem:[#allocation5 + $0x58]] }
 0x117   : > { %v3643_v3 = vmul.f32 %v3556_v37, %v3505_v19  ;;  %v3668_v12 = vmul.f32 %v3584_v45, %v3505_v19  ;;  %v3672_v13 = vmul.f32 %v3587_v46, %v3505_v19  ;;  %v993_v15 = vmul.f32 %v991_v29, %v3505_v19 }
 0x118   : > { %704 = vrot.lane.b32.xlu1 %v699_v22, %s6003_s25  ;;  %v860_v16 = vmul.f32 %v858_v28, %v3505_v19  ;;  %v738_v20 = vrot.slane %v732_v2, 2  ;;  %v3696_v27 = vmul.f32 %v3590_v47, %v3505_v19  ;;  %v3714_v2 = vmul.f32 %v3568_v40, %v3505_v19 }
 0x119   : > { %v585_v23 = vpop.permute.xlu1 %584  ;;  %v575_v24 = vpop.permute.xlu0 %574  ;;  %6020 = vst [vmem:[#allocation41_spill] sm:$0xff] %v3672_v13  ;;  %v5841_v21 = vrot.slane %v3643_v3, 2  ;;  %v3779_v35 = vmul.f32 %v3609_v55, %v3505_v19 }
 0x11a   : > { %587 = vst.msk [vmem:[#allocation2 + $0x2a] sm:$0x1] %vm275_vm4, %v585_v23  ;;  %577 = vst.msk [vmem:[#allocation2 + $0x12] sm:$0x1] %vm275_vm4, %v575_v24  ;;  %v1007_v24 = vmul.f32 %v3536_v30, %v3505_v19 }
 0x11b   : > { %6021 = vst [vmem:[#allocation42_spill] sm:$0xff] %v3696_v27  ;;  %6028 = vst [vmem:[#allocation49_spill] sm:$0xff] %v3779_v35 }
 0x11c   : > { %720 = vrot.lane.b32.xlu1 %v713_v26, %s6003_s25 }
 0x120   : > { %849 = vrot.lane.b32.xlu1 %v845_v31, %s3248_s26  ;;  %v5839_v31 = vrot.slane %v3672_v13, 4 }
 0x121   : > { %v3578_v43 = vld [vmem:[#allocation2 + $0x10] sm:$0x3f] }
 0x122   : > { %v714_v49 = vmul.f32 %v3465_v10, %v3578_v43  ;;  %v861_v62 = vmul.f32 %v858_v28, %v3578_v43  ;;  %v992_v10 = vmul.f32 %v991_v29, %v3456_v6  ;;  %v1074_v22 = vmul.f32 %v3587_v46, %v3578_v43 }
 0x123   : > { %v1028_v23 = vmul.f32 %v3584_v45, %v3578_v43  ;;  %v3700_v28 = vmul.f32 %v3597_v51, %v3505_v19  ;;  %v5840_v29 = vrot.slane %v3668_v12, 2  ;;  %v3743_v14 = vmul.f32 %v3548_v34, %v3578_v43 }
 0x124   : > { %865 = vrot.lane.b32.xlu1 %v859_v48, %s3248_s26  ;;  %722 = vrot.lane.b32.xlu0 %v714_v49, %s6003_s25  ;;  %v1081_v48 = vrot.slane %v1074_v22, 4  ;;  %v3727_v22 = vsel %vm613_vm5, %v738_v20, %v5841_v21  ;;  %v3747_v20 = vmul.f32 %v3553_v36, %v3578_v43  ;;  %v1008_v26 = vmul.f32 %v3536_v30, %v3578_v43 }
 0x125   : > { %6022 = vst [vmem:[#allocation43_spill] sm:$0xff] %v3700_v28  ;;  %v1035_v49 = vrot.slane %v1028_v23, 2  ;;  %v3775_v25 = vmul.f32 %v3562_v39, %v3578_v43  ;;  %v1175_v21 = vmul.f32 %v3617_v57, %v3578_v43  ;;  %v3791_v13 = vmul.f32 %v3568_v40, %v3578_v43 }
 0x126   : > { %v609_v40 = vmul.f32 %v3597_v51, %v3578_v43 }
 0x127   : > { %v3737_v23 = vsel %vm613_vm5, %v5840_v29, %v1035_v49  ;;  %v3763_v29 = vmul.f32 %v3617_v57, %v3505_v19  ;;  %v3770_v49 = vmul.f32 %v3559_v38, %v3578_v43  ;;  %v1182_v39 = vrot.slane %v1175_v21, 2 }
 0x128   : > { %869 = vrot.lane.b32.xlu1 %v861_v62, %s3248_s26  ;;  %851 = vrot.lane.b32.xlu0 %v846_v63, %s3248_s26  ;;  %v3706_v62 = vmul.f32 %v3542_v32, %v3578_v43  ;;  %v3710_v63 = vmul.f32 %v3542_v32, %v3505_v19  ;;  %v3732_v32 = vsel %vm181_vm0, %v5839_v31, %v1081_v48  ;;  %v617_v51 = vrot.slane %v609_v40, 2 }
 0x129   : > { %6023 = vst [vmem:[#allocation44_spill] sm:$0xff] %v3732_v32  ;;  %6024 = vst [vmem:[#allocation45_spill] sm:$0xff] %v3737_v23  ;;  %v1120_v31 = vmul.f32 %v3590_v47, %v3578_v43  ;;  %v6030_v23 = vrot.slane %v3696_v27, 6  ;;  %v3803_v48 = vmul.f32 %v3614_v56, %v3505_v19  ;;  %v3819_v21 = vmul.f32 %v3620_v58, %v3505_v19 }
 0x12a   : > { %6027 = vst [vmem:[#allocation48_spill] sm:$0xff] %v3763_v29  ;;  %v6029_v30 = vrot.slane %v3706_v62, 2  ;;  %v3823_v57 = vmul.f32 %v3620_v58, %v3578_v43  ;;  %v3836_v58 = vmul.f32 %v3609_v55, %v3578_v43 }
 0x12b   : > { %v1127_v50 = vrot.slane %v1120_v31, 6  ;;  %6032 = vst [vmem:[#allocation51_spill] sm:$0xff] %v3803_v48  ;;  %v646_v31 = vmul.f32 %v3600_v52, %v3578_v43 }
 0x12c   : > { %998 = vrot.lane.b32.xlu1 %v993_v15, %s3249_s0  ;;  %867 = vrot.lane.b32.xlu0 %v860_v16, %s3248_s26  ;;  %v3718_v15 = vmul.f32 %v3553_v36, %v3505_v19  ;;  %v3722_v16 = vmul.f32 %v3545_v33, %v3578_v43  ;;  %6036 = vst [vmem:[#allocation53_spill] sm:$0xff] %v3836_v58  ;;  %v6041_v55 = vrot.slane %v3823_v57, 2 }
 0x12d   : > { %v3796_v32 = vsel %vm686_vm6, %v6030_v23, %v1127_v50  ;;  %v682_v50 = vmul.f32 %v3603_v53, %v3578_v43  ;;  %v6035_v23 = vstv %s3491_s24 }
 0x12e   : > { %6031 = vst [vmem:[#allocation50_spill] sm:$0xff] %v3796_v32  ;;  %v3840_v32 = vmul.f32 %v3614_v56, %v3578_v43  ;;  %v6042_v56 = vrot.slane %v3819_v21, 2 }
 0x130   : > { %1014 = vrot.lane.b32.xlu1 %v1007_v24, %s3249_s0  ;;  %996 = vrot.lane.b32.xlu0 %v992_v10, %s3249_s0  ;;  %v3755_v24 = vmul.f32 %v3600_v52, %v3505_v19  ;;  %v3759_v10 = vmul.f32 %v3603_v53, %v3505_v19  ;;  %v6034_v52 = vrot.slane %v3722_v16, 4  ;;  %v594_v53 = vmul.f32 %v6035_v23, %v3505_v19 }
 0x131   : > { %6037 = vst [vmem:[#allocation54_spill] sm:$0xff] %v3840_v32  ;;  %v3857_v27 = vsel %vm613_vm5, %v6042_v56, %v6041_v55  ;;  %v3872_v55 = vmul.f32 %v3623_v59, %v3505_v19  ;;  %v3876_v56 = vmul.f32 %v3626_v60, %v3505_v19 }
 0x132   : > { %6025 = vst [vmem:[#allocation46_spill] sm:$0xff] %v3755_v24  ;;  %6026 = vst [vmem:[#allocation47_spill] sm:$0xff] %v3759_v10  ;;  %v6040_v23 = vrot.slane %v3759_v10, 6 }
 0x134   : > { %768 = vrot.lane.b32.xlu1 %v6029_v30, %s6003_s25  ;;  %1012 = vrot.lane.b32.xlu0 %v1006_v11, %s3249_s0  ;;  %v5853_v11 = vrot.slane %v3763_v29, 2 }
 0x136   : > { %v3815_v30 = vsel %vm613_vm5, %v5853_v11, %v1182_v39  ;;  %v653_v39 = vrot.slane %v646_v31, 4  ;;  %v690_v11 = vrot.slane %v682_v50, 6  ;;  %v6039_v31 = vrot.slane %v3755_v24, 4 }
 0x137   : > { %6033 = vst [vmem:[#allocation52_spill] sm:$0xff] %v3815_v30 }
 0x138   : > { %961 = vrot.lane.b32.xlu1 %v6034_v52, %s3248_s26  ;;  %1016 = vrot.lane.b32.xlu0 %v1008_v26, %s3249_s0  ;;  %v6038_v26 = vrot.slane %v3700_v28, 2  ;;  %v654_v50 = vsel %vm181_vm0, %v6039_v31, %v653_v39  ;;  %v691_v29 = vsel %vm686_vm6, %v6040_v23, %v690_v11  ;;  %v5863_v52 = vrot.slane %v3836_v58, 2 }
 0x139   : > { %v6044_v39 = vrot.slane %v3747_v20, 4  ;;  %v600_v11 = vmul.f32 %v3606_v54, %v3505_v19  ;;  %v6045_v31 = vrot.slane %v3779_v35, 2  ;;  %v5865_v54 = vrot.slane %v3770_v49, 2 }
 0x13a   : > { %v618_v40 = vsel %vm613_vm5, %v6038_v26, %v617_v51  ;;  %v5864_v51 = vrot.slane %v3840_v32, 4  ;;  %v6043_v26 = vrot.slane %v3743_v14, 2  ;;  %v5867_v35 = vrot.slane %v3876_v56, 4 }
 0x13b   : > { %v622_v30 = vadd.f32 %v618_v40, %v594_v53  ;;  %v635_v23 = vsel %vm613_vm5, %v6045_v31, %v5863_v52  ;;  %v3892_v53 = vmul.f32 %v3626_v60, %v3578_v43  ;;  %v1221_v52 = vmul.f32 %v3623_v59, %v3578_v43 }
 0x13c   : > { %1062 = vrot.lane.b32.xlu1 %v6043_v26, %s3249_s0  ;;  %814 = vrot.lane.b32.xlu0 %v6044_v39, %s6003_s25  ;;  %v6046_v26 = vrot.slane %v3803_v48, 4  ;;  %v806_v48 = vrot.slane %v3718_v15, 4 }
 0x13d   : > { %v658_v40 = vadd.f32 %v654_v50, %v622_v30  ;;  %v734_v30 = vmul.f32 %v3556_v37, %v3578_v43  ;;  %v640_v50 = vadd.f32 %v635_v23, %v600_v11  ;;  %v5866_v31 = vrot.slane %v3892_v53, 4 }
 0x13e   : > { %v671_v39 = vsel %vm181_vm0, %v6046_v26, %v5864_v51  ;;  %v3905_v26 = vmul.f32 %v3629_v61, %v3505_v19  ;;  %v3916_v11 = vmul.f32 %v3571_v41, %v3505_v19  ;;  %v1228_v51 = vrot.slane %v1221_v52, 4 }
 0x13f   : > { %v3898_v58 = vadd.f32 %v691_v29, %v658_v40  ;;  %v787_v29 = vrot.slane %v3791_v13, 4  ;;  %v3918_v40 = vadd.f32 %v671_v39, %v640_v50  ;;  %v6049_v13 = vrot.slane %v3710_v63, 2 }
 0x140   : > { %743 = vrot.lane.b32.xlu1 %v3727_v22, %s6003_s25  ;;  %915 = vrot.lane.b32.xlu0 %v5865_v54, %s3248_s26  ;;  %v1267_v22 = vmul.f32 %v3629_v61, %v3578_v43  ;;  %v3928_v54 = vsel %vm181_vm0, %v5867_v35, %v5866_v31  ;;  %v6050_v39 = vrot.slane %v3655_v7, 2  ;;  %v5868_v52 = vrot.slane %v3775_v25, 4 }
 0x141   : > { %6047 = vst [vmem:[#allocation55_spill] sm:$0xff] %v3898_v58  ;;  %6048 = vst [vmem:[#allocation56_spill] sm:$0xff] %v3918_v40  ;;  %v3940_v37 = vmul.f32 %v3634_v0, %v3505_v19  ;;  %v3944_v23 = vmul.f32 %v3637_v1, %v3505_v19  ;;  %v741_v31 = vrot.slane %v734_v30, 2  ;;  %v6051_v35 = vrot.slane %v3872_v55, 4 }
 0x142   : > { %v761_v50 = vsel %vm613_vm5, %v6050_v39, %v6049_v13  ;;  %v5872_v7 = vrot.slane %v3905_v26, 6  ;;  %v1274_v13 = vrot.slane %v1267_v22, 6  ;;  %v6052_v39 = vrot.slane %v3714_v2, 4 }
 0x143   : > { %v3951_v58 = vsel %vm181_vm0, %v6051_v35, %v1228_v51  ;;  %v3963_v30 = vmul.f32 %v3637_v1, %v3578_v43  ;;  %v1322_v35 = vmul.f32 %v3634_v0, %v3578_v43  ;;  %v3968_v51 = vstv %s3878_s1  ;;  %s4492_s1 = sld [smem:[#allocation5 + $0x60]] }
 0x144   : > { %764 = vrot.lane.b32.xlu1 %v761_v50, %s6003_s25  ;;  %1108 = vrot.lane.b32.xlu0 %v5868_v52, %s3249_s0  ;;  %v788_v40 = vsel %vm181_vm0, %v6052_v39, %v787_v29  ;;  %6053 = vst [vmem:[#allocation57_spill] sm:$0xff] %v3968_v51  ;;  %v3973_v22 = vsel %vm686_vm6, %v5872_v7, %v1274_v13  ;;  %v5877_v52 = vrot.slane %v3940_v37, 2  ;;  %v6056_v13 = vrot.slane %v3643_v3, 2 }
 0x145   : > { %v3977_v50 = vmul.f32 %v3646_v4, %v3505_v19  ;;  %v1368_v29 = vmul.f32 %v3646_v4, %v3578_v43  ;;  %v3983_v39 = vmul.f32 %v3649_v5, %v3505_v19  ;;  %v5876_v32 = vrot.slane %v3963_v30, 2 }
 0x146   : > { %v1329_v10 = vrot.slane %v1322_v35, 2  ;;  %v742_v7 = vsel %vm613_vm5, %v6056_v13, %v741_v31  ;;  %v3994_v4 = vmul.f32 %v3649_v5, %v3578_v43  ;;  %v6058_v31 = vrot.slane %v3944_v23, 2 }
 0x147   : > { %6054 = vst [vmem:[#allocation58_spill] sm:$0xff] %v3977_v50  ;;  %6055 = vst [vmem:[#allocation59_spill] sm:$0xff] %v3983_v39  ;;  %v5878_v24 = vrot.slane %v3977_v50, 4  ;;  %v1375_v28 = vrot.slane %v1368_v29, 4  ;;  %v6060_v13 = vrot.slane %v3706_v62, 2  ;;  %v4032_v35 = vstv %s3930_s2  ;;  %s4559_s2 = sld [smem:[#allocation5 + $0x4c]] }
 0x148   : > { %6057 = vst [vmem:[#allocation60_spill] sm:$0xff] %v3994_v4  ;;  %791 = vrot.lane.b32.xlu1 %v788_v40, %s6003_s25  ;;  %745 = vrot.lane.b32.xlu0 %v742_v7, %s6003_s25  ;;  %v4003_v3 = vsel %vm613_vm5, %v5877_v52, %v1329_v10  ;;  %v4010_v29 = vsel %vm613_vm5, %v6058_v31, %v5876_v32  ;;  %v6061_v31 = vrot.slane %v3710_v63, 2  ;;  %v830_v52 = vrot.slane %v3678_v17, 6 }
 0x149   : > { %v4017_v15 = vsel %vm181_vm0, %v5878_v24, %v1375_v28  ;;  %v4023_v10 = vmul.f32 %v3658_v8, %v3505_v19  ;;  %6062 = vst [vmem:[#allocation62_spill] sm:$0xff] %v4032_v35  ;;  %v4035_v28 = vstv %s3946_s9  ;;  %v6064_v24 = vrot.slane %v3747_v20, 4  ;;  %s4598_s9 = sld [smem:[#allocation5 + $0x45]] }
 0x14a   : > { %v763_v32 = vsel %vm613_vm5, %v6061_v31, %v6060_v13  ;;  %6063 = vst [vmem:[#allocation63_spill] sm:$0xff] %v4035_v28  ;;  %v881_v7 = vmul.f32 %v3574_v42, %v3578_v43  ;;  %v6065_v50 = vrot.slane %v3994_v4, 4  ;;  %v6066_v62 = vrot.slane %v3983_v39, 4 }
 0x14b   : > { %6059 = vst [vmem:[#allocation61_spill] sm:$0xff] %v4023_v10  ;;  %v809_v40 = vsel %vm181_vm0, %v806_v48, %v6064_v24  ;;  %v1414_v17 = vmul.f32 %v3658_v8, %v3578_v43  ;;  %v6067_v20 = vrot.slane %v3916_v11, 6  ;;  %v784_v13 = vrot.slane %v3682_v18, 4 }
 0x14c   : > { %v4047_v63 = vsel %vm181_vm0, %v6066_v62, %v6065_v50  ;;  %812 = vrot.lane.b32.xlu1 %v809_v40, %s6003_s25  ;;  %766 = vrot.lane.b32.xlu0 %v763_v32, %s6003_s25  ;;  %v880_v31 = vmul.f32 %v3574_v42, %v3505_v19  ;;  %v799_v50 = vmul.f32 %v3553_v36, %v3456_v6  ;;  %v888_v62 = vrot.slane %v881_v7, 2 }
 0x14d   : > { %v832_v24 = vsel %vm686_vm6, %v830_v52, %v6067_v20  ;;  %v1421_v4 = vrot.slane %v1414_v17, 6  ;;  %v4064_v40 = vmul.f32 %v3661_v9, %v3505_v19  ;;  %v1469_v32 = vmul.f32 %v3661_v9, %v3578_v43 }
 0x14e   : > { %v6069_v52 = vrot.slane %v3714_v2, 4  ;;  %v826_v20 = vmul.f32 %v3571_v41, %v3578_v43  ;;  %v4075_v36 = vmul.f32 %v3968_v51, %v3505_v19  ;;  %v4079_v17 = vmul.f32 %v3968_v51, %v3578_v43 }
 0x14f   : > { %6068 = vst [vmem:[#allocation64_spill] sm:$0xff] %v4064_v40  ;;  %v6072_v39 = vrot.slane %v4023_v10, 6  ;;  %v5885_v2 = vrot.slane %v4064_v40, 2  ;;  %v4091_v41 = vmul.f32 %v3559_v38, %v3505_v19  ;;  %v4096_v51 = vstv %s4012_s10  ;;  %s4614_s10 = sld [smem:[#allocation5 + $0x5a]] }
 0x150   : > { %v786_v18 = vsel %vm181_vm0, %v784_v13, %v6069_v52  ;;  %6070 = vst [vmem:[#allocation65_spill] sm:$0xff] %v4075_v36  ;;  %6071 = vst [vmem:[#allocation66_spill] sm:$0xff] %v4079_v17  ;;  %v1476_v13 = vrot.slane %v1469_v32, 2  ;;  %835 = vrot.lane.b32.xlu1 %v832_v24, %s6003_s25  ;;  %v5889_v52 = vrot.slane %v4075_v36, 2  ;;  %v5888_v7 = vrot.slane %v4079_v17, 2 }
 0x151   : > { %v4084_v9 = vsel %vm686_vm6, %v6072_v39, %v1421_v4  ;;  %789 = vrot.lane.b32.xlu0 %v786_v18, %s6003_s25  ;;  %6073 = vst [vmem:[#allocation67_spill] sm:$0xff] %v4096_v51  ;;  %v886_v10 = vrot.slane %v880_v31, 2  ;;  %v805_v4 = vrot.slane %v799_v50, 4  ;;  %v4100_v39 = vmul.f32 %v3581_v44, %v3505_v19 }
 0x152   : > { %v4105_v24 = vsel %vm613_vm5, %v5885_v2, %v1476_v13  ;;  %v925_v32 = vmul.f32 %v3581_v44, %v3456_v6  ;;  %v4116_v31 = vsel %vm613_vm5, %v5889_v52, %v5888_v7  ;;  %v4120_v50 = vmul.f32 %v4032_v35, %v3505_v19 }
 0x153   : > { %6074 = vst [vmem:[#allocation68_spill] sm:$0xff] %v4116_v31  ;;  %v4124_v18 = vmul.f32 %v4035_v28, %v3505_v19  ;;  %v889_v13 = vsel %vm613_vm5, %v886_v10, %v888_v62  ;;  %v807_v2 = vsel %vm181_vm0, %v805_v4, %v806_v48  ;;  %v833_v40 = vrot.slane %v826_v20, 6 }
 0x154   : > { %6075 = vst [vmem:[#allocation69_spill] sm:$0xff] %v4120_v50  ;;  %v4130_v17 = vmul.f32 %v4035_v28, %v3578_v43  ;;  %892 = vrot.lane.b32.xlu1 %v889_v13, %s3248_s26  ;;  %v907_v7 = vrot.slane %v4091_v41, 2  ;;  %v879_v52 = vmul.f32 %v3574_v42, %v3456_v6  ;;  %v1515_v36 = vmul.f32 %v4032_v35, %v3578_v43 }
 0x155   : > { %6076 = vst [vmem:[#allocation70_spill] sm:$0xff] %v4124_v18  ;;  %810 = vrot.lane.b32.xlu0 %v807_v2, %s6003_s25  ;;  %v4141_v48 = vmul.f32 %v4096_v51, %v3505_v19  ;;  %v932_v62 = vrot.slane %v4100_v39, 4  ;;  %v1561_v2 = vmul.f32 %v4096_v51, %v3578_v43  ;;  %v6079_v41 = vrot.slane %v3770_v49, 2 }
 0x156   : > { %6077 = vst [vmem:[#allocation71_spill] sm:$0xff] %v4130_v17  ;;  %v947_v13 = vmul.f32 %v3545_v33, %v3505_v19  ;;  %v1522_v31 = vrot.slane %v1515_v36, 4  ;;  %v6080_v39 = vrot.slane %v3916_v11, 6  ;;  %v6081_v51 = vrot.slane %v4130_v17, 4 }
 0x157   : > { %6078 = vst [vmem:[#allocation72_spill] sm:$0xff] %v4141_v48  ;;  %v910_v42 = vsel %vm613_vm5, %v907_v7, %v6079_v41  ;;  %v5894_v4 = vrot.slane %v4141_v48, 6  ;;  %v1568_v35 = vrot.slane %v1561_v2, 6  ;;  %v6082_v49 = vrot.slane %v4124_v18, 4 }
 0x158   : > { %v834_v20 = vsel %vm686_vm6, %v6080_v39, %v833_v40  ;;  %913 = vrot.lane.b32.xlu1 %v910_v42, %s3248_s26  ;;  %v885_v28 = vrot.slane %v879_v52, 2  ;;  %v6084_v36 = vrot.slane %v4120_v50, 4  ;;  %v931_v40 = vrot.slane %v925_v32, 4 }
 0x159   : > { %v4163_v41 = vsel %vm181_vm0, %v6082_v49, %v6081_v51  ;;  %837 = vrot.lane.b32.xlu0 %v834_v20, %s6003_s25  ;;  %v946_v2 = vmul.f32 %v3545_v33, %v3456_v6  ;;  %v900_v39 = vmul.f32 %v3559_v38, %v3456_v6  ;;  %v4181_v51 = vsel %vm686_vm6, %v5894_v4, %v1568_v35 }
 0x15a   : > { %6083 = vst [vmem:[#allocation73_spill] sm:$0xff] %v4163_v41  ;;  %v4170_v11 = vsel %vm181_vm0, %v6084_v36, %v1522_v31  ;;  %6086 = vst [vmem:[#allocation75_spill] sm:$0xff] %v4181_v51  ;;  %v887_v52 = vsel %vm613_vm5, %v885_v28, %v886_v10  ;;  %v970_v20 = vstv %s4109_s11  ;;  %v933_v32 = vsel %vm181_vm0, %v931_v40, %v932_v62  ;;  %v6105_v41 = vld [vmem:[#allocation45_spill] sm:$0xff]  ;;  %s4629_s11 = sld [smem:[#allocation5 + $0x53]] }
 0x15b   : > { %6085 = vst [vmem:[#allocation74_spill] sm:$0xff] %v4170_v11  ;;  %v953_v31 = vrot.slane %v947_v13, 4  ;;  %v973_v33 = vmul.f32 %v970_v20, %v3578_v43  ;;  %v927_v38 = vmul.f32 %v3581_v44, %v3578_v43  ;;  %v952_v35 = vrot.slane %v946_v2, 4 }
 0x15c   : > { %936 = vrot.lane.b32.xlu1 %v933_v32, %s3248_s26  ;;  %v906_v10 = vrot.slane %v900_v39, 2  ;;  %v972_v28 = vmul.f32 %v970_v20, %v3505_v19  ;;  %v1026_v40 = vmul.f32 %v3584_v45, %v3456_v6  ;;  %v1048_v39 = vmul.f32 %v3548_v34, %v3505_v19 }
 0x15d   : > { %890 = vrot.lane.b32.xlu0 %v887_v52, %s3248_s26  ;;  %v954_v42 = vsel %vm181_vm0, %v952_v35, %v953_v31  ;;  %v980_v13 = vrot.slane %v973_v33, 6  ;;  %v934_v49 = vrot.slane %v927_v38, 4  ;;  %v1047_v52 = vmul.f32 %v3548_v34, %v3456_v6 }
 0x15e   : > { %v908_v44 = vsel %vm613_vm5, %v906_v10, %v907_v7  ;;  %v978_v36 = vrot.slane %v972_v28, 6  ;;  %v1032_v45 = vrot.slane %v1026_v40, 2  ;;  %v4233_v33 = vstv %s4185_s13  ;;  %s4756_s13 = sld [smem:[#allocation5 + $0x5]] }
 0x15f   : > { %v935_v2 = vsel %vm181_vm0, %v932_v62, %v934_v49  ;;  %v971_v62 = vmul.f32 %v970_v20, %v3456_v6  ;;  %v4236_v38 = vstv %s4191_s16  ;;  %v4239_v35 = vstv %s4195_s18  ;;  %s2970_s16 = sld [smem:[#allocation5 + $0xc]]  ;;  %s3251_s18 = smov 123  }
 0x160   : > { %957 = vrot.lane.b32.xlu1 %v954_v42, %s3248_s26  ;;  %v981_v7 = vsel %vm686_vm6, %v978_v36, %v980_v13  ;;  %6087 = vst [vmem:[#allocation76_spill] sm:$0xff] %v4236_v38  ;;  %6088 = vst [vmem:[#allocation77_spill] sm:$0xff] %v4239_v35  ;;  %v6089_v10 = vrot.slane %v3668_v12, 2  ;;  %v6090_v42 = vrot.slane %v3722_v16, 4  ;;  %v1054_v20 = vrot.slane %v1048_v39, 2  ;;  %v4250_v13 = vld [vmem:[#allocation2 + $0x20] sm:$0xff] }
 0x161   : > { %911 = vrot.lane.b32.xlu0 %v908_v44, %s3248_s26  ;;  %v4248_v44 = vstv %s4198_s29  ;;  %v4255_v49 = vstv %s4200_s30  ;;  %v1053_v40 = vrot.slane %v1047_v52, 2  ;;  %v4260_v16 = vmul.f32 %v3590_v47, %v3456_v6  ;;  %v6093_v39 = vld [vmem:[#allocation30_spill] sm:$0xff]  ;;  %s4866_s29 = sld [smem:[#allocation5 + $0x6]] }
 0x162   : > { %v1034_v28 = vsel %vm613_vm5, %v1032_v45, %v6089_v10  ;;  %v956_v34 = vsel %vm181_vm0, %v953_v31, %v6090_v42  ;;  %6091 = vst [vmem:[#allocation78_spill] sm:$0xff] %v4248_v44  ;;  %6092 = vst [vmem:[#allocation79_spill] sm:$0xff] %v4255_v49  ;;  %v4264_v31 = vmul.f32 %v3587_v46, %v3456_v6  ;;  %v4273_v10 = vstv %s4208_s17  ;;  %s2977_s30 = sld [smem:[#allocation5 + $0xd]]  ;;  %s3252_s17 = smov 122  }
 0x163   : > { %v4270_v45 = vmul.f32 %v6093_v39, %v3456_v6  ;;  %6094 = vst [vmem:[#allocation30_spill] sm:$0xff] %v4273_v10  ;;  %v4276_v52 = vstv %s4212_s5  ;;  %v1055_v47 = vsel %vm613_vm5, %v1053_v40, %v1054_v20  ;;  %v4285_v46 = vmul.f32 %v6093_v39, %v3505_v19  ;;  %s2990_s5 = sld [smem:[#allocation5 + $0x32]] }
 0x164   : > { %984 = vrot.lane.b32.xlu1 %v981_v7, %s3248_s26  ;;  %v977_v7 = vrot.slane %v971_v62, 6  ;;  %6095 = vst [vmem:[#allocation80_spill] sm:$0xff] %v4276_v52  ;;  %v4279_v62 = vstv %s4214_s6  ;;  %v4289_v42 = vmul.f32 %v4239_v35, %v4250_v13  ;;  %v4298_v4 = vstv %s4220_s7  ;;  %s2992_s6 = sld [smem:[#allocation5 + $0x40]] }
 0x165   : > { %938 = vrot.lane.b32.xlu0 %v935_v2, %s3248_s26  ;;  %v4266_v2 = vld [vmem:[#allocation2 + $0x28] sm:$0x3f]  ;;  %6096 = vst [vmem:[#allocation81_spill] sm:$0xff] %v4279_v62  ;;  %6097 = vst [vmem:[#allocation82_spill] sm:$0xff] %v4298_v4  ;;  %v4301_v40 = vstv %s4224_s8  ;;  %v4310_v32 = vstv %s4229_s14  ;;  %v4317_v12 = vmul.f32 %v4248_v44, %v4250_v13  ;;  %v6106_v48 = vrot.slane %v3775_v25, 4  ;;  %s2991_s7 = sld [smem:[#allocation5 + $0x39]] }
 0x166   : > { %6098 = vst [vmem:[#allocation83_spill] sm:$0xff] %v4301_v40  ;;  %v4307_v39 = vmul.f32 %v4239_v35, %v4266_v2  ;;  %6100 = vst [vmem:[#allocation85_spill] sm:$0xff] %v4310_v32  ;;  %v6107_v17 = vrot.slane %v3743_v14, 2  ;;  %v6109_v50 = vrot.slane %v4289_v42, 2  ;;  %s2993_s8 = sld [smem:[#allocation5 + $0x47]] }
 0x167   : > { %6101 = vst [vmem:[#allocation86_spill] sm:$0xff] %v4317_v12  ;;  %s2994_s14 = sld [smem:[#allocation5 + $0x4e]] }
 0x168   : > { %1037 = vrot.lane.b32.xlu1 %v1034_v28, %s3249_s0  ;;  %v979_v28 = vsel %vm686_vm6, %v977_v7, %v978_v36  ;;  %v1124_v36 = vrot.slane %v4260_v16, 6  ;;  %v1078_v7 = vrot.slane %v4264_v31, 4  ;;  %6099 = vst [vmem:[#allocation84_spill] sm:$0xff] %v4307_v39  ;;  %v4321_v16 = vmul.f32 %v4248_v44, %v4266_v2 }
 0x169   : > { %959 = vrot.lane.b32.xlu0 %v956_v34, %s3248_s26  ;;  %v4295_v34 = vmul.f32 %v4236_v38, %v4250_v13  ;;  %v1100_v31 = vrot.slane %v4285_v46, 4  ;;  %v5904_v46 = vrot.slane %v4317_v12, 4  ;;  %v1057_v18 = vsel %vm613_vm5, %v1054_v20, %v6107_v17 }
 0x16a   : > { %6102 = vst [vmem:[#allocation87_spill] sm:$0xff] %v4321_v16  ;;  %v5903_v35 = vrot.slane %v4321_v16, 4  ;;  %v6114_v20 = vstv %s4204_s3 }
 0x16b   : > { %v5902_v44 = vrot.slane %v4295_v34, 6  ;;  %v1103_v11 = vsel %vm181_vm0, %v1100_v31, %v6106_v48 }
 0x16c   : > { %1058 = vrot.lane.b32.xlu1 %v1055_v47, %s3249_s0  ;;  %v4328_v47 = vmul.f32 %v4255_v49, %v4250_v13  ;;  %v4362_v14 = vsel %vm181_vm0, %v5904_v46, %v5903_v35  ;;  %v1671_v46 = vmul.f32 %v4279_v62, %v4266_v2  ;;  %v4401_v35 = vmul.f32 %v4298_v4, %v4250_v13 }
 0x16d   : > { %982 = vrot.lane.b32.xlu0 %v979_v28, %s3248_s26  ;;  %v2108_v28 = vmul.f32 %v4236_v38, %v4266_v2  ;;  %v6104_v38 = vld [vmem:[#allocation44_spill] sm:$0xff]  ;;  %6112 = vst [vmem:[#allocation89_spill] sm:$0xff] %v4362_v14  ;;  %v2209_v14 = vmul.f32 %v4298_v4, %v4266_v2 }
 0x16e   : > { %6103 = vst [vmem:[#allocation88_spill] sm:$0xff] %v4328_v47  ;;  %v5912_v17 = vrot.slane %v4328_v47, 2  ;;  %6118 = vst [vmem:[#allocation94_spill] sm:$0xff] %v4401_v35  ;;  %v1678_v12 = vrot.slane %v1671_v46, 6 }
 0x16f   : > { %v2115_v51 = vrot.slane %v2108_v28, 6  ;;  %v2163_v28 = vmul.f32 %v4255_v49, %v4266_v2  ;;  %v2216_v46 = vrot.slane %v2209_v14, 4 }
 0x170   : > { %1085 = vrot.lane.b32.xlu1 %v6104_v38, %s3249_s0  ;;  %v6108_v38 = vrot.slane %v4307_v39, 2 }
 0x171   : > { %1039 = vrot.lane.b32.xlu0 %v6105_v41, %s3249_s0  ;;  %v4355_v25 = vsel %vm686_vm6, %v5902_v44, %v2115_v51  ;;  %v2170_v48 = vrot.slane %v2163_v28, 2  ;;  %v1584_v51 = vmul.f32 %v6114_v20, %v4250_v13  ;;  %v4378_v44 = vmul.f32 %v4276_v52, %v4250_v13 }
 0x172   : > { %v4348_v41 = vsel %vm613_vm5, %v6109_v50, %v6108_v38  ;;  %6111 = vst [vmem:[#allocation45_spill] sm:$0xff] %v4355_v25  ;;  %v4367_v50 = vmul.f32 %v4273_v10, %v4250_v13  ;;  %v1599_v38 = vmul.f32 %v4273_v10, %v4266_v2  ;;  %v1635_v28 = vmul.f32 %v4276_v52, %v4266_v2 }
 0x173   : > { %6110 = vst [vmem:[#allocation44_spill] sm:$0xff] %v4348_v41  ;;  %6115 = vst [vmem:[#allocation91_spill] sm:$0xff] %v4378_v44  ;;  %v4389_v20 = vmul.f32 %v4279_v62, %v4250_v13  ;;  %v4396_v10 = vsel %vm613_vm5, %v5912_v17, %v2170_v48  ;;  %v6119_v62 = vld [vmem:[#allocation42_spill] sm:$0xff]  ;;  %v6121_v48 = vld [vmem:[#allocation41_spill] sm:$0xff] }
 0x174   : > { %6113 = vst [vmem:[#allocation90_spill] sm:$0xff] %v4367_v50  ;;  %1106 = vrot.lane.b32.xlu1 %v1103_v11, %s3249_s0  ;;  %6117 = vst [vmem:[#allocation93_spill] sm:$0xff] %v4396_v10  ;;  %v1606_v11 = vrot.slane %v1599_v38, 2  ;;  %v1642_v52 = vrot.slane %v1635_v28, 4  ;;  %v6120_v49 = vrot.slane %v6119_v62, 6  ;;  %v6122_v17 = vrot.slane %v6121_v48, 4 }
 0x175   : > { %1060 = vrot.lane.b32.xlu0 %v1057_v18, %s3249_s0  ;;  %6116 = vst [vmem:[#allocation92_spill] sm:$0xff] %v4389_v20  ;;  %v5913_v16 = vrot.slane %v4389_v20, 6  ;;  %v6123_v18 = vrot.slane %v4367_v50, 2  ;;  %v5917_v28 = vrot.slane %v4401_v35, 4  ;;  %v6132_v48 = vrot.slane %v4270_v45, 4  ;;  %v6231_v35 = vld [vmem:[#allocation65_spill] sm:$0xff] }
 0x176   : > { %v1126_v47 = vsel %vm686_vm6, %v1124_v36, %v6120_v49  ;;  %v1080_v38 = vsel %vm181_vm0, %v1078_v7, %v6122_v17  ;;  %v6124_v49 = vrot.slane %v4378_v44, 4  ;;  %v4430_v17 = vmul.f32 %v4301_v40, %v4250_v13 }
 0x177   : > { %v1607_v10 = vsel %vm613_vm5, %v6123_v18, %v1606_v11  ;;  %v1679_v7 = vsel %vm686_vm6, %v5913_v16, %v1678_v12  ;;  %v6129_v12 = vstv %s4176_s12  ;;  %v4452_v11 = vsel %vm181_vm0, %v5917_v28, %v2216_v46 }
 0x178   : > { %1129 = vrot.lane.b32.xlu1 %v1126_v47, %s3249_s0  ;;  %v1611_v62 = vadd.f32 %v1607_v10, %v1584_v51  ;;  %v1643_v36 = vsel %vm181_vm0, %v6124_v49, %v1642_v52  ;;  %6125 = vst [vmem:[#allocation42_spill] sm:$0xff] %v4430_v17  ;;  %v4434_v47 = vmul.f32 %v4301_v40, %v4266_v2  ;;  %6130 = vst [vmem:[#allocation97_spill] sm:$0xff] %v4452_v11 }
 0x179   : > { %1083 = vrot.lane.b32.xlu0 %v1080_v38, %s3249_s0  ;;  %v4438_v10 = vmul.f32 %v4310_v32, %v4250_v13  ;;  %v4442_v52 = vmul.f32 %v4310_v32, %v4266_v2  ;;  %v1139_v14 = vmul.f32 %v6129_v12, %v3456_v6  ;;  %v4455_v18 = vstv %s4369_s19  ;;  %s2995_s19 = sld [smem:[#allocation5 + $0x55]] }
 0x17a   : > { %6126 = vst [vmem:[#allocation41_spill] sm:$0xff] %v4434_v47  ;;  %v1647_v51 = vadd.f32 %v1643_v36, %v1611_v62  ;;  %6131 = vst [vmem:[#allocation98_spill] sm:$0xff] %v4455_v18  ;;  %v1101_v38 = vsel %vm181_vm0, %v6132_v48, %v1100_v31  ;;  %v5916_v49 = vrot.slane %v4430_v17, 2  ;;  %v5915_v16 = vrot.slane %v4434_v47, 2 }
 0x17b   : > { %6127 = vst [vmem:[#allocation95_spill] sm:$0xff] %v4438_v10  ;;  %6128 = vst [vmem:[#allocation96_spill] sm:$0xff] %v4442_v52  ;;  %v4465_v20 = vstv %s4380_s20  ;;  %v1590_v45 = vmul.f32 %v4455_v18, %v4250_v13  ;;  %v5919_v31 = vrot.slane %v4438_v10, 4  ;;  %v5918_v36 = vrot.slane %v4442_v52, 4  ;;  %s2996_s20 = sld [smem:[#allocation5 + $0x5c]] }
 0x17c   : > { %6133 = vst [vmem:[#allocation99_spill] sm:$0xff] %v4465_v20  ;;  %1143 = vrot.lane.b32.xlu1 %v1139_v14, %s3250_s4  ;;  %v4471_v62 = vadd.f32 %v1679_v7, %v1647_v51  ;;  %v1624_v46 = vsel %vm613_vm5, %v5916_v49, %v5915_v16  ;;  %v4486_v7 = vmul.f32 %v4465_v20, %v4250_v13  ;;  %v6137_v49 = vld [vmem:[#allocation50_spill] sm:$0xff]  ;;  %v4549_v52 = vstv %s4457_s27  ;;  %s3001_s27 = sld [smem:[#allocation5 + $0x4f]] }
 0x17d   : > { %1104 = vrot.lane.b32.xlu0 %v1101_v38, %s3249_s0  ;;  %v4490_v12 = vmul.f32 %v4465_v20, %v4266_v2  ;;  %v1153_v14 = vmul.f32 %v4233_v33, %v3456_v6  ;;  %v1629_v51 = vadd.f32 %v1624_v46, %v1590_v45  ;;  %v1660_v48 = vsel %vm181_vm0, %v5919_v31, %v5918_v36 }
 0x17e   : > { %6134 = vst [vmem:[#allocation100_spill] sm:$0xff] %v4471_v62  ;;  %6135 = vst [vmem:[#allocation101_spill] sm:$0xff] %v4486_v7  ;;  %v5921_v38 = vrot.slane %v4486_v7, 2  ;;  %v4509_v6 = vstv %s4416_s21  ;;  %v1155_v45 = vmul.f32 %v4233_v33, %v3578_v43  ;;  %v4525_v36 = vstv %s4426_s22  ;;  %v6159_v7 = vld [vmem:[#allocation38_spill] sm:$0xff]  ;;  %s5053_s21 = sld [smem:[#allocation5 + $0x33]] }
 0x17f   : > { %6136 = vst [vmem:[#allocation102_spill] sm:$0xff] %v4490_v12  ;;  %v5920_v16 = vrot.slane %v4490_v12, 2  ;;  %v4506_v28 = vadd.f32 %v1660_v48, %v1629_v51  ;;  %6139 = vst [vmem:[#allocation103_spill] sm:$0xff] %v4509_v6  ;;  %v4532_v48 = vmul.f32 %v4525_v36, %v4250_v13  ;;  %v4536_v43 = vmul.f32 %v4525_v36, %v4266_v2  ;;  %s2998_s22 = sld [smem:[#allocation5 + $0x3a]] }
 0x180   : > { %1159 = vrot.lane.b32.xlu1 %v1153_v14, %s3250_s4  ;;  %v4522_v14 = vmul.f32 %v4509_v6, %v4250_v13  ;;  %6142 = vst [vmem:[#allocation106_spill] sm:$0xff] %v4525_v36  ;;  %v2255_v31 = vmul.f32 %v4509_v6, %v4266_v2  ;;  %v4546_v62 = vstv %s4444_s23  ;;  %6148 = vst [vmem:[#allocation109_spill] sm:$0xff] %v4549_v52  ;;  %v1719_v20 = vstv %s2992_s6  ;;  %v6247_v6 = vld [vmem:[#allocation72_spill] sm:$0xff]  ;;  %s2999_s23 = sld [smem:[#allocation5 + $0x41]] }
 0x181   : > { %1131 = vrot.lane.b32.xlu0 %v6137_v49, %s3249_s0  ;;  %6138 = vst [vmem:[#allocation50_spill] sm:$0xff] %v4506_v28  ;;  %v4518_v46 = vsel %vm613_vm5, %v5921_v38, %v5920_v16  ;;  %v6143_v49 = vstv %s4176_s12  ;;  %6144 = vst [vmem:[#allocation107_spill] sm:$0xff] %v4532_v48  ;;  %v4540_v16 = vld [vmem:[#allocation2] sm:$0xff]  ;;  %v4557_v50 = vmul.f32 %v4546_v62, %v4250_v13  ;;  %v6156_v32 = vrot.slane %v4536_v43, 4  ;;  %s4648_s12 = sld [smem:[#allocation5 + $0x61]] }
 0x182   : > { %6140 = vst [vmem:[#allocation104_spill] sm:$0xff] %v4518_v46  ;;  %6141 = vst [vmem:[#allocation105_spill] sm:$0xff] %v4522_v14  ;;  %v1140_v51 = vmul.f32 %v6143_v49, %v3505_v19  ;;  %v6146_v38 = vld [vmem:[#allocation37_spill] sm:$0xff]  ;;  %v2262_v10 = vrot.slane %v2255_v31, 6  ;;  %v4566_v49 = vstv %s4467_s28  ;;  %v1154_v44 = vmul.f32 %v4233_v33, %v3505_v19  ;;  %v6161_v33 = vld [vmem:[#allocation52_spill] sm:$0xff]  ;;  %s3003_s28 = sld [smem:[#allocation5 + $0x5d]] }
 0x183   : > { %6145 = vst [vmem:[#allocation108_spill] sm:$0xff] %v4536_v43  ;;  %v1173_v28 = vmul.f32 %v4540_v16, %v6146_v38  ;;  %6147 = vst [vmem:[#allocation37_spill] sm:$0xff] %v4546_v62  ;;  %v4563_v38 = vmul.f32 %v4549_v52, %v4250_v13  ;;  %v1219_v31 = vmul.f32 %v4540_v16, %v3623_v59  ;;  %v6154_v47 = vrot.slane %v4522_v14, 6  ;;  %v6229_v14 = vld [vmem:[#allocation69_spill] sm:$0xff]  ;;  %s6469_s6 = sld [smem:[#allocation24_spill]] }
 0x184   : > { %1163 = vrot.lane.b32.xlu1 %v1155_v45, %s3250_s4  ;;  %6149 = vst [vmem:[#allocation110_spill] sm:$0xff] %v4557_v50  ;;  %6151 = vst [vmem:[#allocation112_spill] sm:$0xff] %v4566_v49  ;;  %v4569_v45 = vstv %s4477_s15  ;;  %v6157_v17 = vrot.slane %v4532_v48, 4  ;;  %v1194_v36 = vmul.f32 %v4540_v16, %v6159_v7  ;;  %v4594_v19 = vmul.f32 %v4549_v52, %v4266_v2  ;;  %v6166_v52 = vld [vmem:[#allocation48_spill] sm:$0xff]  ;;  %s5124_s15 = sld [smem:[#allocation5 + $0x34]] }
 0x185   : > { %1145 = vrot.lane.b32.xlu0 %v1140_v51, %s3250_s4  ;;  %6150 = vst [vmem:[#allocation111_spill] sm:$0xff] %v4563_v38  ;;  %6152 = vst [vmem:[#allocation113_spill] sm:$0xff] %v4569_v45  ;;  %v4572_v51 = vstv %s4492_s1  ;;  %v4581_v18 = vsel %vm686_vm6, %v6154_v47, %v2262_v10  ;;  %v1179_v12 = vrot.slane %v1173_v28, 2  ;;  %v2310_v59 = vmul.f32 %v4546_v62, %v4266_v2  ;;  %s5129_s1 = sld [smem:[#allocation5 + $0x42]] }
 0x186   : > { %6153 = vst [vmem:[#allocation114_spill] sm:$0xff] %v4572_v51  ;;  %6155 = vst [vmem:[#allocation115_spill] sm:$0xff] %v4581_v18  ;;  %v4588_v40 = vsel %vm181_vm0, %v6157_v17, %v6156_v32  ;;  %v4606_v28 = vmul.f32 %v4566_v49, %v4250_v13  ;;  %v2356_v17 = vmul.f32 %v4566_v49, %v4266_v2  ;;  %v5940_v7 = vrot.slane %v4594_v19, 2 }
 0x187   : > { %6158 = vst [vmem:[#allocation116_spill] sm:$0xff] %v4588_v40  ;;  %6160 = vst [vmem:[#allocation38_spill] sm:$0xff] %v4594_v19  ;;  %v4612_v47 = vmul.f32 %v4569_v45, %v4250_v13  ;;  %v6167_v62 = vrot.slane %v6166_v52, 2  ;;  %v1200_v43 = vrot.slane %v1194_v36, 2  ;;  %v6179_v36 = vrot.slane %v3872_v55, 4 }
 0x188   : > { %1186 = vrot.lane.b32.xlu1 %v6161_v33, %s3250_s4  ;;  %6162 = vst [vmem:[#allocation52_spill] sm:$0xff] %v4606_v28  ;;  %v4620_v33 = vmul.f32 %v4569_v45, %v4266_v2  ;;  %v5942_v40 = vrot.slane %v4606_v28, 4  ;;  %v2363_v18 = vrot.slane %v2356_v17, 4  ;;  %v6170_v45 = vrot.slane %v4563_v38, 2  ;;  %v4650_v17 = vpop.permute.xlu0 %702  ;;  %v6225_v38 = vld [vmem:[#allocation64_spill] sm:$0xff] }
 0x189   : > { %1161 = vrot.lane.b32.xlu0 %v1154_v44, %s3250_s4  ;;  %6163 = vst [vmem:[#allocation117_spill] sm:$0xff] %v4612_v47  ;;  %v2317_v44 = vrot.slane %v2310_v59, 2  ;;  %v1181_v49 = vsel %vm613_vm5, %v1179_v12, %v6167_v62  ;;  %v6168_v59 = vrot.slane %v4557_v50, 2  ;;  %v4646_v12 = vmul.f32 %v4572_v51, %v4250_v13 }
 0x18a   : > { %6164 = vst [vmem:[#allocation118_spill] sm:$0xff] %v4620_v33  ;;  %v4622_v32 = vpop.permute.xlu1 %704  ;;  %v4641_v52 = vsel %vm613_vm5, %v6170_v45, %v5940_v7  ;;  %v5943_v62 = vrot.slane %v4620_v33, 4  ;;  %v4660_v45 = vsel %vm181_vm0, %v5942_v40, %v2363_v18  ;;  %v1225_v7 = vrot.slane %v1219_v31, 4 }
 0x18b   : > { %6165 = vst [vmem:[#allocation119_spill] sm:$0xff] %v4622_v32  ;;  %v4634_v10 = vsel %vm613_vm5, %v6168_v59, %v2317_v44  ;;  %6171 = vst [vmem:[#allocation120_spill] sm:$0xff] %v4641_v52  ;;  %v1240_v44 = vmul.f32 %v4540_v16, %v3626_v60  ;;  %v4663_v59 = vstv %s4559_s2  ;;  %v2402_v60 = vmul.f32 %v4572_v51, %v4266_v2  ;;  %s5191_s2 = sld [smem:[#allocation5 + $0x50]] }
 0x18c   : > { %6169 = vst [vmem:[#allocation48_spill] sm:$0xff] %v4634_v10  ;;  %6172 = vst [vmem:[#allocation121_spill] sm:$0xff] %v4646_v12  ;;  %1207 = vrot.lane.b32.xlu1 %v3857_v27, %s3250_s4  ;;  %v6175_v27 = vrot.slane %v4612_v47, 4  ;;  %v4678_v18 = vmul.f32 %v4663_v59, %v4250_v13  ;;  %v4682_v31 = vmul.f32 %v4663_v59, %v4266_v2  ;;  %v5947_v33 = vrot.slane %v4646_v12, 6  ;;  %v6224_v10 = vld [vmem:[#allocation57_spill] sm:$0xff] }
 0x18d   : > { %1184 = vrot.lane.b32.xlu0 %v1181_v49, %s3250_s4  ;;  %6173 = vst [vmem:[#allocation122_spill] sm:$0xff] %v4660_v45  ;;  %6174 = vst [vmem:[#allocation123_spill] sm:$0xff] %v4663_v59  ;;  %v1227_v40 = vsel %vm181_vm0, %v1225_v7, %v6179_v36  ;;  %v2409_v47 = vrot.slane %v2402_v60, 6  ;;  %v4696_v55 = vstv %s4598_s9  ;;  %v4699_v7 = vstv %s4614_s10  ;;  %v4714_v60 = vpop.permute.xlu0 %718  ;;  %s3005_s9 = sld [smem:[#allocation5 + $0x3b]] }
 0x18e   : > { %v4670_v49 = vsel %vm181_vm0, %v6175_v27, %v5943_v62  ;;  %v4674_v28 = vpop.permute.xlu1 %720  ;;  %6177 = vst [vmem:[#allocation125_spill] sm:$0xff] %v4678_v18  ;;  %6178 = vst [vmem:[#allocation126_spill] sm:$0xff] %v4682_v31  ;;  %v6180_v27 = vrot.slane %v3819_v21, 2  ;;  %v5951_v59 = vrot.slane %v4682_v31, 2  ;;  %v1246_v21 = vrot.slane %v1240_v44, 4  ;;  %s5348_s10 = sld [smem:[#allocation5 + $0x3c]] }
 0x18f   : > { %6176 = vst [vmem:[#allocation124_spill] sm:$0xff] %v4670_v49  ;;  %v5952_v49 = vrot.slane %v4678_v18, 2  ;;  %6181 = vst [vmem:[#allocation127_spill] sm:$0xff] %v4696_v55  ;;  %v2457_v12 = vmul.f32 %v4696_v55, %v4266_v2  ;;  %v4742_v18 = vstv %s4648_s12  ;;  %v6226_v50 = vrot.slane %v6225_v38, 2  ;;  %s2902_s12 = sld [smem:[#allocation5 + $0x62]] }
 0x190   : > { %v1202_v62 = vsel %vm613_vm5, %v1200_v43, %v6180_v27  ;;  %1230 = vrot.lane.b32.xlu1 %v1227_v40, %s3250_s4  ;;  %6182 = vst [vmem:[#allocation128_spill] sm:$0xff] %v4699_v7  ;;  %v4704_v43 = vsel %vm686_vm6, %v5947_v33, %v2409_v47  ;;  %v4708_v40 = vmul.f32 %v4696_v55, %v4250_v13  ;;  %v4730_v27 = vstv %s4629_s11  ;;  %s3019_s11 = sld [smem:[#allocation5 + $0x3d]] }
 0x191   : > { %1205 = vrot.lane.b32.xlu0 %v1202_v62, %s3250_s4  ;;  %6183 = vst [vmem:[#allocation129_spill] sm:$0xff] %v4704_v43  ;;  %v4712_v62 = vmul.f32 %v4699_v7, %v4250_v13  ;;  %v4723_v44 = vsel %vm613_vm5, %v5952_v49, %v5951_v59  ;;  %v4727_v47 = vmul.f32 %v4699_v7, %v4266_v2  ;;  %6188 = vst [vmem:[#allocation134_spill] sm:$0xff] %v4730_v27 }
 0x192   : > { %6184 = vst [vmem:[#allocation130_spill] sm:$0xff] %v4708_v40  ;;  %v4716_v36 = vpop.permute.xlu1 %849  ;;  %6186 = vst [vmem:[#allocation132_spill] sm:$0xff] %v4723_v44  ;;  %v6189_v33 = vrot.slane %v3876_v56, 4  ;;  %v4739_v31 = vmul.f32 %v4730_v27, %v4250_v13  ;;  %v6192_v59 = vrot.slane %v3823_v57, 2  ;;  %v5959_v7 = vrot.slane %v4708_v40, 2 }
 0x193   : > { %6185 = vst [vmem:[#allocation131_spill] sm:$0xff] %v4712_v62  ;;  %6187 = vst [vmem:[#allocation133_spill] sm:$0xff] %v4727_v47  ;;  %v2549_v57 = vmul.f32 %v4742_v18, %v4266_v2  ;;  %v6194_v44 = vrot.slane %v4727_v47, 4  ;;  %v6195_v55 = vrot.slane %v4712_v62, 4  ;;  %v6198_v56 = vrot.slane %v3892_v53, 4  ;;  %v6216_v62 = vld [vmem:[#allocation59_spill] sm:$0xff] }
 0x194   : > { %v1248_v43 = vsel %vm181_vm0, %v1246_v21, %v6189_v33  ;;  %6190 = vst [vmem:[#allocation135_spill] sm:$0xff] %v4739_v31  ;;  %6191 = vst [vmem:[#allocation136_spill] sm:$0xff] %v4742_v18  ;;  %v2503_v33 = vmul.f32 %v4730_v27, %v4266_v2  ;;  %v4754_v21 = vmul.f32 %v4742_v18, %v4250_v13  ;;  %v6230_v46 = vrot.slane %v6229_v14, 4 }
 0x195   : > { %1251 = vrot.lane.b32.xlu1 %v1248_v43, %s3250_s4  ;;  %1209 = vrot.lane.b32.xlu0 %v6192_v59, %s3250_s4  ;;  %v2464_v43 = vrot.slane %v2457_v12, 2  ;;  %v4771_v51 = vsel %vm181_vm0, %v6195_v55, %v6194_v44  ;;  %v2556_v52 = vrot.slane %v2549_v57, 6  ;;  %v1265_v44 = vmul.f32 %v4540_v16, %v3629_v61 }
 0x196   : > { %6193 = vst [vmem:[#allocation137_spill] sm:$0xff] %v4754_v21  ;;  %v4761_v59 = vpop.permute.xlu1 %865  ;;  %v4763_v49 = vpop.permute.xlu0 %722  ;;  %v2510_v27 = vrot.slane %v2503_v33, 4  ;;  %6196 = vst [vmem:[#allocation138_spill] sm:$0xff] %v4771_v51  ;;  %v5958_v18 = vrot.slane %v4754_v21, 6  ;;  %v6199_v33 = vrot.slane %v4739_v31, 4  ;;  %v6248_v11 = vrot.slane %v6247_v6, 6 }
 0x197   : > { %v4776_v12 = vsel %vm613_vm5, %v5959_v7, %v2464_v43  ;;  %v1740_v6 = vstv %s2993_s8  ;;  %s6471_s8 = sld [smem:[#allocation23_spill]] }
 0x198   : > { %6197 = vst [vmem:[#allocation139_spill] sm:$0xff] %v4776_v12  ;;  %v4787_v55 = vsel %vm181_vm0, %v6199_v33, %v2510_v27  ;;  %v4794_v43 = vsel %vm686_vm6, %v5958_v18, %v2556_v52  ;;  %v1271_v27 = vrot.slane %v1265_v44, 6  ;;  %v4809_v33 = vld [vmem:[#allocation2 + $0x8] sm:$0xff]  ;;  %v6204_v18 = vrot.slane %v3905_v26, 6 }
 0x199   : > { %1255 = vrot.lane.b32.xlu1 %v6198_v56, %s3250_s4  ;;  %1232 = vrot.lane.b32.xlu0 %v3951_v58, %s3250_s4  ;;  %6200 = vst [vmem:[#allocation140_spill] sm:$0xff] %v4787_v55  ;;  %6201 = vst [vmem:[#allocation141_spill] sm:$0xff] %v4794_v43  ;;  %v1285_v58 = vstv %s4756_s13  ;;  %v6206_v55 = vrot.slane %v3944_v23, 2  ;;  %s3253_s13 = smov 16  }
 0x19a   : > { %v4796_v57 = vpop.permute.xlu1 %869  ;;  %v4798_v53 = vpop.permute.xlu0 %851  ;;  %v1287_v52 = vmul.f32 %v4809_v33, %v1285_v58  ;;  %v1273_v7 = vsel %vm686_vm6, %v1271_v27, %v6204_v18  ;;  %v1286_v31 = vmul.f32 %v4540_v16, %v1285_v58  ;;  %v1341_v18 = vmul.f32 %v4540_v16, %v3637_v1  ;;  %v4843_v1 = vld [vmem:[#allocation2 + $0x10] sm:$0x3f] }
 0x19b   : > { %6202 = vst [vmem:[#allocation142_spill] sm:$0xff] %v4798_v53 }
 0x19d   : > { %1278 = vrot.lane.b32.xlu1 %v3973_v22, %s3250_s4  ;;  %1253 = vrot.lane.b32.xlu0 %v3928_v54, %s3250_s4  ;;  %v1299_v54 = vstv %s2970_s16  ;;  %v1320_v22 = vmul.f32 %v4540_v16, %v3634_v0  ;;  %s3254_s16 = smov 32  }
 0x19e   : > { %v4805_v56 = vpop.permute.xlu1 %998  ;;  %v4807_v61 = vpop.permute.xlu0 %867  ;;  %v1301_v43 = vmul.f32 %v4809_v33, %v1299_v54  ;;  %v1300_v0 = vmul.f32 %v4540_v16, %v1299_v54 }
 0x19f   : > { %6203 = vst [vmem:[#allocation143_spill] sm:$0xff] %v4805_v56  ;;  %v1326_v26 = vrot.slane %v1320_v22, 2  ;;  %v1302_v22 = vmul.f32 %v4843_v1, %v1299_v54  ;;  %v6208_v54 = vld [vmem:[#allocation39_spill] sm:$0xff] }
 0x1a0   : > { %v1366_v23 = vmul.f32 %v4540_v16, %v6208_v54 }
 0x1a1   : > { %1292 = vrot.lane.b32.xlu1 %v1287_v52, %s3251_s18  ;;  %1276 = vrot.lane.b32.xlu0 %v1273_v7, %s3250_s4  ;;  %v6205_v52 = vrot.slane %v3940_v37, 2 }
 0x1a2   : > { %v4819_v44 = vpop.permute.xlu1 %1014  ;;  %v4821_v21 = vpop.permute.xlu0 %996 }
 0x1a3   : > { %v1328_v51 = vsel %vm613_vm5, %v1326_v26, %v6205_v52  ;;  %v6207_v26 = vrot.slane %v3963_v30, 2  ;;  %v1372_v30 = vrot.slane %v1366_v23, 4 }
 0x1a5   : > { %1308 = vrot.lane.b32.xlu1 %v1301_v43, %s3251_s18  ;;  %1290 = vrot.lane.b32.xlu0 %v1286_v31, %s3251_s18  ;;  %v1347_v43 = vrot.slane %v1341_v18, 2 }
 0x1a6   : > { %v4829_v7 = vpop.permute.xlu1 %768  ;;  %v4831_v27 = vpop.permute.xlu0 %1012 }
 0x1a7   : > { %v1349_v12 = vsel %vm613_vm5, %v1347_v43, %v6206_v55  ;;  %v6210_v43 = vld [vmem:[#allocation58_spill] sm:$0xff] }
 0x1a9   : > { %1331 = vrot.lane.b32.xlu1 %v1328_v51, %s3251_s18  ;;  %1306 = vrot.lane.b32.xlu0 %v1300_v0, %s3251_s18 }
 0x1aa   : > { %v4839_v31 = vpop.permute.xlu1 %961  ;;  %v4841_v58 = vpop.permute.xlu0 %1016 }
 0x1ad   : > { %1352 = vrot.lane.b32.xlu1 %v1349_v12, %s3251_s18  ;;  %1310 = vrot.lane.b32.xlu0 %v1302_v22, %s3251_s18  ;;  %v1387_v12 = vmul.f32 %v4540_v16, %v3649_v5  ;;  %v6211_v22 = vrot.slane %v6210_v43, 4  ;;  %v6214_v5 = vld [vmem:[#allocation61_spill] sm:$0xff]  ;;  %v6217_v43 = vrot.slane %v6216_v62, 4 }
 0x1ae   : > { %v4851_v37 = vpop.permute.xlu1 %1062  ;;  %v4853_v51 = vpop.permute.xlu0 %814  ;;  %v6215_v23 = vrot.slane %v6214_v5, 6 }
 0x1b1   : > { %1356 = vrot.lane.b32.xlu1 %v6207_v26, %s3251_s18  ;;  %1333 = vrot.lane.b32.xlu0 %v4003_v3, %s3251_s18  ;;  %v1412_v3 = vmul.f32 %v4540_v16, %v3658_v8  ;;  %v1374_v26 = vsel %vm181_vm0, %v1372_v30, %v6211_v22  ;;  %v1432_v22 = vstv %s4866_s29  ;;  %s3256_s29 = smov 64  }
 0x1b2   : > { %v4862_v18 = vpop.permute.xlu1 %743  ;;  %v4864_v55 = vpop.permute.xlu0 %915 }
 0x1b5   : > { %1379 = vrot.lane.b32.xlu1 %v4017_v15, %s3251_s18  ;;  %1354 = vrot.lane.b32.xlu0 %v4010_v29, %s3251_s18  ;;  %v1418_v29 = vrot.slane %v1412_v3, 6  ;;  %v1393_v15 = vrot.slane %v1387_v12, 4  ;;  %v1433_v12 = vmul.f32 %v4540_v16, %v1432_v22 }
 0x1b6   : > { %v4876_v0 = vpop.permute.xlu1 %764  ;;  %v4878_v52 = vpop.permute.xlu0 %1108 }
 0x1b7   : > { %6209 = vst [vmem:[#allocation39_spill] sm:$0xff] %v4878_v52  ;;  %v1420_v47 = vsel %vm686_vm6, %v1418_v29, %v6215_v23  ;;  %v1395_v30 = vsel %vm181_vm0, %v1393_v15, %v6217_v43  ;;  %v6218_v29 = vld [vmem:[#allocation60_spill] sm:$0xff] }
 0x1b8   : > { %v6219_v62 = vrot.slane %v6218_v29, 4  ;;  %v6221_v29 = vld [vmem:[#allocation40_spill] sm:$0xff] }
 0x1b9   : > { %1400 = vrot.lane.b32.xlu1 %v4047_v63, %s3251_s18  ;;  %1377 = vrot.lane.b32.xlu0 %v1374_v26, %s3251_s18  ;;  %v1446_v26 = vstv %s2977_s30  ;;  %s3257_s30 = smov 80  }
 0x1ba   : > { %v4886_v8 = vpop.permute.xlu1 %791  ;;  %v4888_v54 = vpop.permute.xlu0 %745 }
 0x1bb   : > { %6212 = vst [vmem:[#allocation58_spill] sm:$0xff] %v4886_v8  ;;  %6213 = vst [vmem:[#allocation144_spill] sm:$0xff] %v4888_v54  ;;  %v1743_v54 = vmul.f32 %v1740_v6, %v4266_v2 }
 0x1bd   : > { %1423 = vrot.lane.b32.xlu1 %v1420_v47, %s3251_s18  ;;  %1398 = vrot.lane.b32.xlu0 %v1395_v30, %s3251_s18  ;;  %v1447_v47 = vmul.f32 %v4540_v16, %v1446_v26  ;;  %v1449_v30 = vmul.f32 %v4843_v1, %v1446_v26 }
 0x1be   : > { %v4899_v63 = vpop.permute.xlu1 %812  ;;  %v4901_v3 = vpop.permute.xlu0 %766 }
 0x1c1   : > { %1437 = vrot.lane.b32.xlu1 %v1433_v12, %s3252_s17  ;;  %1402 = vrot.lane.b32.xlu0 %v6219_v62, %s3251_s18  ;;  %v1434_v12 = vmul.f32 %v4809_v33, %v1432_v22  ;;  %v1467_v62 = vmul.f32 %v4540_v16, %v6221_v29  ;;  %v6223_v22 = vld [vmem:[#allocation62_spill] sm:$0xff] }
 0x1c2   : > { %v4908_v15 = vpop.permute.xlu1 %835 }
 0x1c3   : > { %v4910_v5 = vpop.permute.xlu0 %789  ;;  %v1473_v45 = vrot.slane %v1467_v62, 2 }
 0x1c5   : > { %1453 = vrot.lane.b32.xlu1 %v1447_v47, %s3252_s17  ;;  %1425 = vrot.lane.b32.xlu0 %v4084_v9, %s3251_s18  ;;  %v1448_v9 = vmul.f32 %v4809_v33, %v1446_v26  ;;  %v1475_v33 = vsel %vm613_vm5, %v1473_v45, %v6226_v50  ;;  %v6227_v26 = vld [vmem:[#allocation68_spill] sm:$0xff]  ;;  %v6232_v50 = vrot.slane %v6231_v35, 2 }
 0x1c6   : > { %v4916_v23 = vpop.permute.xlu1 %892 }
 0x1c7   : > { %6220 = vst [vmem:[#allocation61_spill] sm:$0xff] %v4916_v23  ;;  %v4918_v43 = vpop.permute.xlu0 %810 }
 0x1c9   : > { %1457 = vrot.lane.b32.xlu1 %v1449_v30, %s3252_s17  ;;  %1439 = vrot.lane.b32.xlu0 %v1434_v12, %s3252_s17  ;;  %v1513_v30 = vmul.f32 %v4540_v16, %v6223_v22  ;;  %v1488_v12 = vmul.f32 %v4540_v16, %v6224_v10 }
 0x1ca   : > { %v4926_v40 = vpop.permute.xlu1 %913 }
 0x1cb   : > { %v4928_v47 = vpop.permute.xlu0 %837  ;;  %v1494_v62 = vrot.slane %v1488_v12, 2 }
 0x1cc   : > { %6222 = vst [vmem:[#allocation59_spill] sm:$0xff] %v4928_v47 }
 0x1cd   : > { %1480 = vrot.lane.b32.xlu1 %v4105_v24, %s3252_s17  ;;  %1455 = vrot.lane.b32.xlu0 %v1448_v9, %s3252_s17  ;;  %v1519_v24 = vrot.slane %v1513_v30, 4  ;;  %v6228_v9 = vld [vmem:[#allocation63_spill] sm:$0xff]  ;;  %v1496_v45 = vsel %vm613_vm5, %v1494_v62, %v6232_v50 }
 0x1ce   : > { %v4938_v19 = vpop.permute.xlu1 %936  ;;  %v1534_v22 = vmul.f32 %v4540_v16, %v6228_v9  ;;  %v6239_v62 = vld [vmem:[#allocation71_spill] sm:$0xff] }
 0x1cf   : > { %v4940_v29 = vpop.permute.xlu0 %890  ;;  %v1521_v38 = vsel %vm181_vm0, %v1519_v24, %v6230_v46  ;;  %v6237_v46 = vld [vmem:[#allocation66_spill] sm:$0xff]  ;;  %v6242_v50 = vld [vmem:[#allocation67_spill] sm:$0xff] }
 0x1d0   : > { %v1540_v30 = vrot.slane %v1534_v22, 4  ;;  %v6238_v35 = vrot.slane %v6237_v46, 2  ;;  %v6240_v22 = vrot.slane %v6239_v62, 4  ;;  %v1685_v46 = vstv %s2990_s5  ;;  %v4992_v62 = vld [vmem:[#allocation2 + $0x18] sm:$0xff]  ;;  %s3259_s5 = smov 112  }
 0x1d1   : > { %1501 = vrot.lane.b32.xlu1 %v6227_v26, %s3252_s17  ;;  %1478 = vrot.lane.b32.xlu0 %v1475_v33, %s3252_s17  ;;  %v6235_v26 = vld [vmem:[#allocation70_spill] sm:$0xff] }
 0x1d2   : > { %v4950_v48 = vpop.permute.xlu1 %957  ;;  %v6236_v9 = vrot.slane %v6235_v26, 4  ;;  %v6243_v26 = vld [vmem:[#allocation75_spill] sm:$0xff] }
 0x1d3   : > { %v4952_v10 = vpop.permute.xlu0 %911 }
 0x1d4   : > { %v1542_v56 = vsel %vm181_vm0, %v1540_v30, %v6236_v9  ;;  %v6244_v9 = vld [vmem:[#allocation73_spill] sm:$0xff] }
 0x1d5   : > { %1524 = vrot.lane.b32.xlu1 %v1521_v38, %s3252_s17  ;;  %1499 = vrot.lane.b32.xlu0 %v1496_v45, %s3252_s17  ;;  %v6241_v38 = vld [vmem:[#allocation74_spill] sm:$0xff] }
 0x1d6   : > { %v4962_v12 = vpop.permute.xlu1 %984 }
 0x1d7   : > { %6233 = vst [vmem:[#allocation60_spill] sm:$0xff] %v4962_v12  ;;  %v4964_v33 = vpop.permute.xlu0 %938 }
 0x1d8   : > { %6234 = vst [vmem:[#allocation40_spill] sm:$0xff] %v4964_v33  ;;  %v1686_v33 = vmul.f32 %v1685_v46, %v4992_v62 }
 0x1d9   : > { %1545 = vrot.lane.b32.xlu1 %v1542_v56, %s3252_s17  ;;  %1503 = vrot.lane.b32.xlu0 %v6238_v35, %s3252_s17  ;;  %v1559_v56 = vmul.f32 %v4540_v16, %v6242_v50  ;;  %v1687_v50 = vmul.f32 %v1685_v46, %v4250_v13 }
 0x1da   : > { %v4973_v14 = vpop.permute.xlu1 %1037 }
 0x1db   : > { %v4975_v24 = vpop.permute.xlu0 %959  ;;  %v1565_v35 = vrot.slane %v1559_v56, 6  ;;  %v1699_v56 = vstv %s2991_s7  ;;  %s6470_s7 = sld [smem:[#allocation18_spill]] }
 0x1dc   : > { %v1700_v47 = vmul.f32 %v1699_v56, %v4992_v62  ;;  %v1702_v41 = vmul.f32 %v1699_v56, %v4266_v2 }
 0x1dd   : > { %1549 = vrot.lane.b32.xlu1 %v6240_v22, %s3252_s17  ;;  %1526 = vrot.lane.b32.xlu0 %v6241_v38, %s3252_s17  ;;  %v1567_v12 = vsel %vm686_vm6, %v1565_v35, %v6248_v11  ;;  %v1742_v35 = vmul.f32 %v1740_v6, %v4250_v13 }
 0x1de   : > { %v4984_v45 = vpop.permute.xlu1 %1058 }
 0x1df   : > { %v4986_v30 = vpop.permute.xlu0 %982  ;;  %v1748_v8 = vrot.slane %v1742_v35, 2 }
 0x1e1   : > { %1572 = vrot.lane.b32.xlu1 %v6243_v26, %s3252_s17  ;;  %1547 = vrot.lane.b32.xlu0 %v6244_v9, %s3252_s17  ;;  %v1721_v26 = vmul.f32 %v1719_v20, %v4250_v13  ;;  %v1720_v9 = vmul.f32 %v1719_v20, %v4992_v62 }
 0x1e2   : > { %v4994_v22 = vpop.permute.xlu1 %1085 }
 0x1e3   : > { %6245 = vst [vmem:[#allocation62_spill] sm:$0xff] %v4994_v22  ;;  %v4996_v38 = vpop.permute.xlu0 %1039  ;;  %v1727_v11 = vrot.slane %v1721_v26, 2  ;;  %v1722_v26 = vmul.f32 %v1719_v20, %v4266_v2 }
 0x1e4   : > { %6246 = vst [vmem:[#allocation57_spill] sm:$0xff] %v4996_v38  ;;  %v1701_v38 = vmul.f32 %v1699_v56, %v4250_v13  ;;  %v1750_v56 = vrot.slane %v1743_v54, 2  ;;  %v1811_v54 = vstv %s2996_s20  ;;  %s6474_s20 = sshll.u32 %s6471_s8, 3 }
 0x1e5   : > { %1692 = vrot.lane.b32.xlu1 %v1687_v50, %s6003_s25  ;;  %1570 = vrot.lane.b32.xlu0 %v1567_v12, %s3252_s17  ;;  %v1726_v12 = vrot.slane %v1720_v9, 2  ;;  %v1741_v50 = vmul.f32 %v1740_v6, %v4992_v62  ;;  %v1729_v35 = vrot.slane %v1722_v26, 2 }
 0x1e6   : > { %v5006_v4 = vpop.permute.xlu1 %1106 }
 0x1e7   : > { %6249 = vst [vmem:[#allocation64_spill] sm:$0xff] %v5006_v4  ;;  %v5008_v22 = vpop.permute.xlu0 %1060  ;;  %v1728_v46 = vsel %vm613_vm5, %v1726_v12, %v1727_v11  ;;  %v1765_v4 = vstv %s2994_s14  ;;  %v1730_v6 = vsel %vm613_vm5, %v1727_v11, %v1729_v35  ;;  %v1751_v11 = vsel %vm613_vm5, %v1748_v8, %v1750_v56  ;;  %s6473_s14 = sld [smem:[#allocation22_spill]] }
 0x1e8   : > { %6250 = vst [vmem:[#allocation68_spill] sm:$0xff] %v5008_v22  ;;  %v1768_v20 = vmul.f32 %v1765_v4, %v4266_v2  ;;  %v6277_v22 = vld [vmem:[#allocation46_spill] sm:$0xff] }
 0x1e9   : > { %1708 = vrot.lane.b32.xlu1 %v1701_v38, %s6003_s25  ;;  %1690 = vrot.lane.b32.xlu0 %v1686_v33, %s6003_s25  ;;  %v1747_v33 = vrot.slane %v1741_v50, 2 }
 0x1ea   : > { %v5016_v23 = vpop.permute.xlu1 %1129  ;;  %v1775_v25 = vrot.slane %v1768_v20, 4  ;;  %v1813_v20 = vmul.f32 %v1811_v54, %v4250_v13 }
 0x1eb   : > { %6251 = vst [vmem:[#allocation63_spill] sm:$0xff] %v5016_v23  ;;  %v5018_v53 = vpop.permute.xlu0 %1083  ;;  %v1749_v12 = vsel %vm613_vm5, %v1747_v33, %v1748_v8 }
 0x1ed   : > { %1731 = vrot.lane.b32.xlu1 %v1728_v46, %s6003_s25  ;;  %1706 = vrot.lane.b32.xlu0 %v1700_v47, %s6003_s25  ;;  %v1767_v47 = vmul.f32 %v1765_v4, %v4250_v13  ;;  %p6476_p8 = scmp.ne.s32.totalorder %s6473_s14, 0 }
 0x1ee   : > { %v5025_v38 = vpop.permute.xlu1 %1143 }
 0x1ef   : > { %6252 = vst [vmem:[#allocation69_spill] sm:$0xff] %v5025_v38  ;;  %v5027_v9 = vpop.permute.xlu0 %1104  ;;  %v1786_v38 = vstv %s2995_s19  ;;  %v1773_v26 = vrot.slane %v1767_v47, 4  ;;  %s3038_s19 = sshll.u32 %s6470_s7, 7 }
 0x1f0   : > { %6253 = vst [vmem:[#allocation65_spill] sm:$0xff] %v5027_v9  ;;  %v1789_v33 = vmul.f32 %v1786_v38, %v4266_v2 }
 0x1f1   : > { %1752 = vrot.lane.b32.xlu1 %v1749_v12, %s6003_s25  ;;  %1710 = vrot.lane.b32.xlu0 %v1702_v41, %s6003_s25  ;;  %v1788_v41 = vmul.f32 %v1786_v38, %v4250_v13  ;;  %v1766_v12 = vmul.f32 %v1765_v4, %v4992_v62 }
 0x1f2   : > { %v5036_v50 = vpop.permute.xlu1 %1159  ;;  %v1796_v35 = vrot.slane %v1789_v33, 4  ;;  %v1819_v33 = vrot.slane %v1813_v20, 6 }
 0x1f3   : > { %6254 = vst [vmem:[#allocation70_spill] sm:$0xff] %v5036_v50  ;;  %v5038_v46 = vpop.permute.xlu0 %1131  ;;  %v1794_v47 = vrot.slane %v1788_v41, 4  ;;  %v1772_v4 = vrot.slane %v1766_v12, 4 }
 0x1f4   : > { %6255 = vst [vmem:[#allocation66_spill] sm:$0xff] %v5038_v46  ;;  %v1776_v46 = vsel %vm181_vm0, %v1773_v26, %v1775_v25 }
 0x1f5   : > { %1756 = vrot.lane.b32.xlu1 %v1750_v56, %s6003_s25  ;;  %1733 = vrot.lane.b32.xlu0 %v1730_v6, %s6003_s25  ;;  %v1812_v6 = vmul.f32 %v1811_v54, %v4992_v62  ;;  %v1797_v8 = vsel %vm181_vm0, %v1794_v47, %v1796_v35  ;;  %v1774_v56 = vsel %vm181_vm0, %v1772_v4, %v1773_v26 }
 0x1f6   : > { %v5046_v39 = vpop.permute.xlu1 %1163  ;;  %v1814_v26 = vmul.f32 %v1811_v54, %v4266_v2 }
 0x1f7   : > { %6256 = vst [vmem:[#allocation71_spill] sm:$0xff] %v5046_v39  ;;  %v5048_v50 = vpop.permute.xlu0 %1145 }
 0x1f8   : > { %6257 = vst [vmem:[#allocation74_spill] sm:$0xff] %v5048_v50  ;;  %v1787_v50 = vmul.f32 %v1786_v38, %v4992_v62 }
 0x1f9   : > { %1779 = vrot.lane.b32.xlu1 %v1776_v46, %s6003_s25  ;;  %1754 = vrot.lane.b32.xlu0 %v1751_v11, %s6003_s25  ;;  %v1818_v46 = vrot.slane %v1812_v6, 6  ;;  %v1846_v6 = vstv %s2998_s22 }
 0x1fa   : > { %v5059_v39 = vpop.permute.xlu1 %1186  ;;  %v1793_v41 = vrot.slane %v1787_v50, 4 }
 0x1fb   : > { %6258 = vst [vmem:[#allocation67_spill] sm:$0xff] %v5059_v39  ;;  %v5061_v25 = vpop.permute.xlu0 %1161  ;;  %v1820_v11 = vsel %vm686_vm6, %v1818_v46, %v1819_v33 }
 0x1fc   : > { %6259 = vst [vmem:[#allocation75_spill] sm:$0xff] %v5061_v25  ;;  %v1795_v39 = vsel %vm181_vm0, %v1793_v41, %v1794_v47  ;;  %v1832_v25 = vstv %s5053_s21  ;;  %s171_s21 = scalar_lea.vmem [#allocation10], %s6474_s20 }
 0x1fd   : > { %1800 = vrot.lane.b32.xlu1 %v1797_v8, %s6003_s25  ;;  %1777 = vrot.lane.b32.xlu0 %v1774_v56, %s6003_s25  ;;  %v1833_v50 = vmul.f32 %v1832_v25, %v4992_v62  ;;  %v1821_v8 = vrot.slane %v1814_v26, 6  ;;  %v1847_v56 = vmul.f32 %v1846_v6, %v4992_v62  ;;  %s2809_s22 = sshll.u32 %s171_s21, 4  ;;  %s2810_s22 = int_to_ptr.vmem [resolvable:$true] %s2809_s22 }
 0x1fe   : > { %v5067_v12 = vpop.permute.xlu1 %1207 }
 0x1ff   : > { %6260 = vst [vmem:[#allocation73_spill] sm:$0xff] %v5067_v12  ;;  %v5069_v38 = vpop.permute.xlu0 %1184  ;;  %v1822_v46 = vsel %vm686_vm6, %v1819_v33, %v1821_v8  ;;  %v1834_v12 = vmul.f32 %v1832_v25, %v4250_v13  ;;  %v1912_v33 = vstv %s3001_s27  ;;  %v6271_v25 = vld [vmem:[#allocation32_spill] sm:$0xff] }
 0x200   : > { %6261 = vst [vmem:[#allocation72_spill] sm:$0xff] %v5069_v38  ;;  %v644_v32 = vmul.f32 %v4540_v16, %v6271_v25 }
 0x201   : > { %1823 = vrot.lane.b32.xlu1 %v1820_v11, %s6003_s25  ;;  %1798 = vrot.lane.b32.xlu0 %v1795_v39, %s6003_s25  ;;  %v1866_v39 = vstv %s2999_s23  ;;  %v6266_v11 = vld [vmem:[#allocation31_spill] sm:$0xff] }
 0x202   : > { %v5077_v20 = vpop.permute.xlu1 %1230  ;;  %v1869_v41 = vmul.f32 %v1866_v39, %v4266_v2 }
 0x203   : > { %6262 = vst [vmem:[#allocation145_spill] sm:$0xff] %v5077_v20  ;;  %v5079_v4 = vpop.permute.xlu0 %1205  ;;  %v607_v20 = vmul.f32 %v4540_v16, %v6266_v11 }
 0x204   : > { %6263 = vst [vmem:[#allocation146_spill] sm:$0xff] %v5079_v4  ;;  %v1876_v8 = vrot.slane %v1869_v41, 2 }
 0x205   : > { %1837 = vrot.lane.b32.xlu1 %v1833_v50, %s3248_s26  ;;  %1802 = vrot.lane.b32.xlu0 %v1796_v35, %s6003_s25  ;;  %v1868_v35 = vmul.f32 %v1866_v39, %v4250_v13  ;;  %v614_v11 = vrot.slane %v607_v20, 2  ;;  %v1848_v20 = vmul.f32 %v1846_v6, %v4250_v13 }
 0x207   : > { %v5084_v47 = vpop.permute.xlu1 %1251  ;;  %v5086_v54 = vpop.permute.xlu0 %1209 }
 0x208   : > { %6264 = vst [vmem:[#allocation147_spill] sm:$0xff] %v5084_v47  ;;  %6265 = vst [vmem:[#allocation148_spill] sm:$0xff] %v5086_v54  ;;  %v1849_v47 = vmul.f32 %v1846_v6, %v4266_v2  ;;  %v1915_v54 = vmul.f32 %v1912_v33, %v4266_v2 }
 0x209   : > { %1853 = vrot.lane.b32.xlu1 %v1847_v56, %s3248_s26  ;;  %1825 = vrot.lane.b32.xlu0 %v1822_v46, %s6003_s25  ;;  %v1874_v56 = vrot.slane %v1868_v35, 2  ;;  %v1914_v46 = vmul.f32 %v1912_v33, %v4250_v13  ;;  %s5117_s25 = sld [smem:[#allocation5 + $0x48]] }
 0x20b   : > { %v5096_v26 = vpop.permute.xlu1 %1255  ;;  %v5098_v50 = vpop.permute.xlu0 %1232  ;;  %v1920_v25 = vrot.slane %v1914_v46, 4 }
 0x20c   : > { %6267 = vst [vmem:[#allocation31_spill] sm:$0xff] %v5096_v26  ;;  %6268 = vst [vmem:[#allocation149_spill] sm:$0xff] %v5098_v50  ;;  %v1867_v26 = vmul.f32 %v1866_v39, %v4992_v62  ;;  %v6269_v50 = vld [vmem:[#allocation43_spill] sm:$0xff]  ;;  %v1877_v39 = vsel %vm613_vm5, %v1874_v56, %v1876_v8  ;;  %v6275_v8 = vld [vmem:[#allocation33_spill] sm:$0xff] }
 0x20d   : > { %1857 = vrot.lane.b32.xlu1 %v1849_v47, %s3248_s26  ;;  %1839 = vrot.lane.b32.xlu0 %v1834_v12, %s3248_s26  ;;  %v6270_v4 = vrot.slane %v6269_v50, 2  ;;  %v1958_v47 = vstv %s3003_s28  ;;  %v6274_v12 = vstv %s3491_s24  ;;  %v1922_v50 = vrot.slane %v1915_v54, 4  ;;  %s5145_s24 = sld [smem:[#allocation5 + $0x56]] }
 0x20e   : > { %v593_v35 = vmul.f32 %v4540_v16, %v6274_v12  ;;  %v1960_v12 = vmul.f32 %v1958_v47, %v4250_v13  ;;  %v680_v54 = vmul.f32 %v4540_v16, %v6275_v8  ;;  %s6475_s28 = sld [smem:[#allocation153_spill]] }
 0x20f   : > { %v616_v38 = vsel %vm613_vm5, %v614_v11, %v6270_v4  ;;  %v5112_v41 = vpop.permute.xlu1 %1278  ;;  %v5114_v9 = vpop.permute.xlu0 %1253  ;;  %v1961_v4 = vmul.f32 %v1958_v47, %v4266_v2  ;;  %v1913_v11 = vmul.f32 %v1912_v33, %v4992_v62 }
 0x210   : > { %6272 = vst [vmem:[#allocation43_spill] sm:$0xff] %v5112_v41  ;;  %6273 = vst [vmem:[#allocation32_spill] sm:$0xff] %v5114_v9  ;;  %v621_v6 = vadd.f32 %v616_v38, %v593_v35  ;;  %v1873_v41 = vrot.slane %v1867_v26, 2  ;;  %v650_v9 = vrot.slane %v644_v32, 4  ;;  %v6278_v38 = vrot.slane %v6277_v22, 4 }
 0x211   : > { %1880 = vrot.lane.b32.xlu1 %v1877_v39, %s3248_s26  ;;  %1855 = vrot.lane.b32.xlu0 %v1848_v20, %s3248_s26  ;;  %v1923_v20 = vsel %vm181_vm0, %v1920_v25, %v1922_v50  ;;  %v1968_v39 = vrot.slane %v1961_v4, 6  ;;  %v1966_v32 = vrot.slane %v1960_v12, 6  ;;  %v1919_v46 = vrot.slane %v1913_v11, 4 }
 0x212   : > { %v1875_v33 = vsel %vm613_vm5, %v1873_v41, %v1874_v56  ;;  %v652_v26 = vsel %vm181_vm0, %v650_v9, %v6278_v38  ;;  %v1959_v35 = vmul.f32 %v1958_v47, %v4992_v62  ;;  %v687_v50 = vrot.slane %v680_v54, 6  ;;  %v6283_v54 = vld [vmem:[#allocation35_spill] sm:$0xff] }
 0x213   : > { %v5134_v52 = vpop.permute.xlu1 %1292  ;;  %v5136_v23 = vpop.permute.xlu0 %1276  ;;  %v657_v13 = vadd.f32 %v652_v26, %v621_v6  ;;  %v1887_v22 = vstv %s5117_s25  ;;  %v1969_v9 = vsel %vm686_vm6, %v1966_v32, %v1968_v39  ;;  %v1921_v4 = vsel %vm181_vm0, %v1919_v46, %v1920_v25  ;;  %v5167_v25 = vld [vmem:[#allocation2 + $0x20] sm:$0xff] }
 0x214   : > { %6276 = vst [vmem:[#allocation33_spill] sm:$0xff] %v5134_v52  ;;  %v5156_v8 = vmul.f32 %v1887_v22, %v4266_v2  ;;  %v1979_v47 = vstv %s5124_s15  ;;  %v2013_v11 = vstv %s5129_s1  ;;  %v625_v38 = vmul.f32 %v4540_v16, %v6283_v54  ;;  %v6284_v26 = vld [vmem:[#allocation34_spill] sm:$0xff]  ;;  %s2807_s25 = scalar_lea.hbm %s6475_s28, %s3038_s19  ;;  %s2795_s15 = scalar_lea.sflag [#allocation7], %s6471_s8 }
 0x215   : > { %1926 = vrot.lane.b32.xlu1 %v1923_v20, %s3248_s26  ;;  %1878 = vrot.lane.b32.xlu0 %v1875_v33, %s3248_s26  ;;  %v6281_v20 = vld [vmem:[#allocation47_spill] sm:$0xff]  ;;  %v1965_v39 = vrot.slane %v1959_v35, 6  ;;  %v1889_v2 = vmul.f32 %v5167_v25, %v1887_v22  ;;  %v601_v46 = vmul.f32 %v4843_v1, %v6284_v26  ;;  %v5181_v35 = vmul.f32 %v5167_v25, %v2013_v11  ;;  %s3165_s1 = scalar_lea.vmem %s2810_s22, 128 }
 0x216   : > { %v6282_v33 = vrot.slane %v6281_v20, 6  ;;  %v2014_v1 = vmul.f32 %v2013_v11, %v4992_v62  ;;  %v1933_v54 = vstv %s5145_s24  ;;  %v631_v52 = vrot.slane %v625_v38, 2  ;;  %v6291_v38 = vld [vmem:[#allocation49_spill] sm:$0xff]  ;;  %p3166_p6 = scmp.ne.s32.totalorder %s2810_s22, %s3165_s1  ;;  %s3260_s24 = smov [#allocation10]  }
 0x217   : > { %v5148_v56 = vpop.permute.xlu1 %1308  ;;  %v5150_v41 = vpop.permute.xlu0 %1290  ;;  %v1967_v20 = vsel %vm686_vm6, %v1965_v39, %v1966_v32 }
 0x218   : > { %6279 = vst [vmem:[#allocation46_spill] sm:$0xff] %v5148_v56  ;;  %6280 = vst [vmem:[#allocation150_spill] sm:$0xff] %v5150_v41  ;;  %v689_v6 = vsel %vm686_vm6, %v687_v50, %v6282_v33  ;;  %v1897_v33 = vrot.slane %v5156_v8, 2  ;;  %v6288_v8 = vld [vmem:[#allocation36_spill] sm:$0xff]  ;;  %v1980_v56 = vmul.f32 %v1979_v47, %v4992_v62  ;;  %p3167_p7 = pnand %p3166_p6, %p6476_p8 }
 0x219   : > { %1972 = vrot.lane.b32.xlu1 %v1969_v9, %s3248_s26  ;;  %1924 = vrot.lane.b32.xlu0 %v1921_v4, %s3248_s26  ;;  %v694_v12 = vadd.f32 %v689_v6, %v657_v13  ;;  %v1981_v4 = vmul.f32 %v5167_v25, %v1979_v47  ;;  %v1888_v6 = vmul.f32 %v1887_v22, %v4992_v62 }
 0x21a   : > { %v661_v39 = vmul.f32 %v4540_v16, %v6288_v8  ;;  %v5201_v22 = vmul.f32 %v5167_v25, %v1933_v54  ;;  %v6293_v8 = vld [vmem:[#allocation54_spill] sm:$0xff]  ;;  %p3168_p10 = pneg %p3167_p7 }
 0x21b   : > { %v5172_v50 = vpop.permute.xlu1 %1331  ;;  %v5174_v9 = vpop.permute.xlu0 %1306  ;;  %v708_v13 = vadd.f32 %v4650_v17, %v694_v12  ;;  %v1895_v12 = vrot.slane %v1889_v2, 2  ;;  %v1894_v47 = vrot.slane %v1888_v6, 2 }
 0x21c   : > { %6285 = vst [vmem:[#allocation47_spill] sm:$0xff] %v5172_v50  ;;  %v6286_v50 = vld [vmem:[#allocation53_spill] sm:$0xff] }
 0x21d   : > { %1986 = vrot.lane.b32.xlu1 %v1981_v4, %s3249_s0  ;;  %1970 = vrot.lane.b32.xlu0 %v1967_v20, %s3248_s26  ;;  %v6287_v41 = vrot.slane %v6286_v50, 2  ;;  %v749_v32 = vadd.f32 %v4862_v18, %v708_v13  ;;  %v6292_v50 = vrot.slane %v6291_v38, 2  ;;  %v1898_v2 = vsel %vm613_vm5, %v1895_v12, %v1897_v33 }
 0x21e   : > { %v599_v13 = vmul.f32 %v4540_v16, %v6284_v26  ;;  %v2020_v38 = vrot.slane %v2014_v1, 2  ;;  %v1896_v16 = vsel %vm613_vm5, %v1894_v47, %v1895_v12  ;;  %v1941_v26 = vrot.slane %v5201_v22, 4  ;;  %v5225_v1 = vld [vmem:[#allocation2 + $0x28] sm:$0x3f] }
 0x21f   : > { %v641_v17 = vadd.f32 %v6287_v41, %v601_v46  ;;  %v5195_v4 = vpop.permute.xlu1 %1352  ;;  %v5197_v20 = vpop.permute.xlu0 %1310  ;;  %v633_v41 = vsel %vm613_vm5, %v631_v52, %v6292_v50  ;;  %v795_v18 = vadd.f32 %v4910_v5, %v749_v32  ;;  %v2021_v46 = vrot.slane %v5181_v35, 2 }
 0x220   : > { %6289 = vst [vmem:[#allocation35_spill] sm:$0xff] %v5195_v4  ;;  %6290 = vst [vmem:[#allocation34_spill] sm:$0xff] %v5197_v20  ;;  %v6294_v4 = vrot.slane %v6293_v8, 4  ;;  %v1934_v52 = vmul.f32 %v1933_v54, %v4992_v62  ;;  %v639_v50 = vadd.f32 %v633_v41, %v599_v13  ;;  %v667_v5 = vrot.slane %v661_v39, 4  ;;  %v6295_v39 = vld [vmem:[#allocation51_spill] sm:$0xff] }
 0x221   : > { %1901 = vrot.lane.b32.xlu1 %v1898_v2, %s3248_s26  ;;  %1984 = vrot.lane.b32.xlu0 %v1980_v56, %s3249_s0  ;;  %v841_v6 = vadd.f32 %v4908_v15, %v795_v18  ;;  %v6296_v41 = vrot.slane %v6295_v39, 4  ;;  %v1936_v13 = vmul.f32 %v5225_v1, %v1933_v54 }
 0x222   : > { %v677_v20 = vadd.f32 %v6294_v4, %v641_v17  ;;  %v2022_v17 = vsel %vm613_vm5, %v2020_v38, %v2021_v46  ;;  %v2016_v4 = vmul.f32 %v5225_v1, %v2013_v11  ;;  %v1940_v2 = vrot.slane %v1934_v52, 4  ;;  %v6297_v52 = vld [vmem:[#allocation56_spill] sm:$0xff] }
 0x223   : > { %v5216_v32 = vpop.permute.xlu1 %1356  ;;  %v5218_v35 = vpop.permute.xlu0 %1333  ;;  %v669_v12 = vsel %vm181_vm0, %v667_v5, %v6296_v41  ;;  %v855_v8 = vadd.f32 %v4716_v36, %v841_v6 }
 0x224   : > { %v729_v56 = vadd.f32 %v4763_v49, %v677_v20  ;;  %v2059_v49 = vstv %s5191_s2  ;;  %v675_v20 = vadd.f32 %v669_v12, %v639_v50  ;;  %v1942_v38 = vsel %vm181_vm0, %v1940_v2, %v1941_v26  ;;  %s3169_s2 = sshll.u32 %s3260_s24, 4  ;;  %s3170_s2 = int_to_ptr.vmem [resolvable:$false] %s3169_s2 }
 0x225   : > { %2025 = vrot.lane.b32.xlu1 %v2022_v17, %s3249_s0  ;;  %1899 = vrot.lane.b32.xlu0 %v1896_v16, %s3248_s26  ;;  %v2062_v11 = vmul.f32 %v5225_v1, %v2059_v49  ;;  %v2023_v5 = vrot.slane %v2016_v4, 2  ;;  %v728_v50 = vadd.f32 %v4674_v28, %v6297_v52  ;;  %v896_v54 = vadd.f32 %v4940_v29, %v855_v8  ;;  %p3172_p11 = scmp.lt.s32.totalorder %s2810_s22, %s3170_s2 }
 0x226   : > { %v775_v22 = vadd.f32 %v4829_v7, %v729_v56  ;;  %v727_v7 = vadd.f32 %v4714_v60, %v675_v20  ;;  %v2061_v16 = vmul.f32 %v5167_v25, %v2059_v49  ;;  %v1943_v56 = vrot.slane %v1936_v13, 4 }
 0x227   : > { %v5235_v15 = vpop.permute.xlu1 %1379  ;;  %v5237_v18 = vpop.permute.xlu0 %1354  ;;  %v2069_v6 = vrot.slane %v2062_v11, 4  ;;  %v774_v60 = vadd.f32 %v4901_v3, %v728_v50  ;;  %v2024_v4 = vsel %vm613_vm5, %v2021_v46, %v2023_v5  ;;  %v2060_v28 = vmul.f32 %v2059_v49, %v4992_v62 }
 0x228   : > { %v821_v47 = vadd.f32 %v4853_v51, %v775_v22  ;;  %v942_v39 = vadd.f32 %v4938_v19, %v896_v54  ;;  %v2067_v41 = vrot.slane %v2061_v16, 4  ;;  %v1993_v13 = vstv %s3005_s9  ;;  %s3171_s9 = scalar_lea.vmem %s3170_s2, 256 }
 0x229   : > { %1945 = vrot.lane.b32.xlu1 %v1942_v38, %s3248_s26  ;;  %1903 = vrot.lane.b32.xlu0 %v1897_v33, %s3248_s26  ;;  %v773_v33 = vadd.f32 %v4876_v0, %v727_v7  ;;  %v1944_v0 = vsel %vm181_vm0, %v1941_v26, %v1943_v56  ;;  %v820_v46 = vadd.f32 %v4899_v63, %v774_v60  ;;  %v2066_v19 = vrot.slane %v2060_v28, 4  ;;  %v6299_v7 = vld [vmem:[#allocation77_spill] sm:$0xff]  ;;  %v6302_v28 = vld [vmem:[#allocation68_spill] sm:$0xff]  ;;  %p3173_p0 = scmp.lt.s32.totalorder %s3171_s9, %s3165_s1 }
 0x22a   : > { %v876_v17 = vadd.f32 %v4796_v57, %v821_v47  ;;  %v988_v22 = vadd.f32 %v4986_v30, %v942_v39  ;;  %v2070_v2 = vsel %vm181_vm0, %v2067_v41, %v2069_v6  ;;  %v1995_v63 = vmul.f32 %v5167_v25, %v1993_v13  ;;  %v6303_v39 = vld [vmem:[#allocation63_spill] sm:$0xff] }
 0x22b   : > { %v5251_v51 = vpop.permute.xlu1 %1400  ;;  %v5253_v36 = vpop.permute.xlu0 %1377  ;;  %v819_v29 = vadd.f32 %v4918_v43, %v773_v33  ;;  %v6298_v43 = vld [vmem:[#allocation76_spill] sm:$0xff]  ;;  %v2068_v30 = vsel %vm181_vm0, %v2066_v19, %v2067_v41  ;;  %v875_v47 = vadd.f32 %v4807_v61, %v820_v46  ;;  %v2035_v52 = vmul.f32 %v6299_v7, %v4992_v62  ;;  %v6306_v46 = vld [vmem:[#allocation55_spill] sm:$0xff]  ;;  %p3174_p3 = por %p3173_p0, %p3172_p11 }
 0x22c   : > { %v922_v3 = vadd.f32 %v4864_v55, %v876_v17  ;;  %v2106_v49 = vmul.f32 %v6298_v43, %v4992_v62  ;;  %v1002_v38 = vadd.f32 %v4821_v21, %v988_v22  ;;  %v6300_v61 = vrot.slane %v4295_v34, 6  ;;  %v6307_v22 = vld [vmem:[#allocation119_spill] sm:$0xff]  ;;  %v6308_v19 = vld [vmem:[#allocation84_spill] sm:$0xff] }
 0x22d   : > { %1949 = vrot.lane.b32.xlu1 %v1943_v56, %s3248_s26  ;;  %2027 = vrot.lane.b32.xlu0 %v2024_v4, %s3249_s0  ;;  %v874_v20 = vadd.f32 %v4761_v59, %v819_v29  ;;  %v921_v5 = vadd.f32 %v4926_v40, %v875_v47  ;;  %v1994_v21 = vmul.f32 %v1993_v13, %v4992_v62  ;;  %v2041_v6 = vrot.slane %v2035_v52, 2  ;;  %p3175_p5 = pnand %p3174_p3, %p3168_p10 }
 0x22e   : > { %v968_v11 = vadd.f32 %v4839_v31, %v922_v3  ;;  %v2112_v59 = vrot.slane %v2106_v49, 6  ;;  %v1043_v40 = vadd.f32 %v4973_v14, %v1002_v38  ;;  %v6301_v60 = vrot.slane %v4289_v42, 2  ;;  %v6305_v3 = vld [vmem:[#allocation65_spill] sm:$0xff] }
 0x22f   : > { %v5264_v12 = vpop.permute.xlu1 %1423  ;;  %v5266_v57 = vpop.permute.xlu0 %1398  ;;  %v920_v8 = vadd.f32 %v4952_v10, %v874_v20  ;;  %v967_v56 = vadd.f32 %v4975_v24, %v921_v5  ;;  %v6309_v43 = vrot.slane %v6308_v19, 2  ;;  %v6311_v20 = vld [vmem:[#allocation69_spill] sm:$0xff]  ;;  %v6328_v19 = vld [vmem:[#allocation32_spill] sm:$0xff] }
 0x230   : > { %v2114_v31 = vsel %vm686_vm6, %v2112_v59, %v6300_v61  ;;  %v1023_v10 = vadd.f32 %v4841_v58, %v968_v11  ;;  %v1089_v34 = vadd.f32 %v5018_v53, %v1043_v40  ;;  %v1996_v58 = vmul.f32 %v5225_v1, %v1993_v13  ;;  %v6313_v11 = vld [vmem:[#allocation71_spill] sm:$0xff]  ;;  %v6315_v59 = vld [vmem:[#allocation144_spill] sm:$0xff] }
 0x231   : > { %2073 = vrot.lane.b32.xlu1 %v2070_v2, %s3249_s0  ;;  %1947 = vrot.lane.b32.xlu0 %v1944_v0, %s3248_s26  ;;  %v966_v16 = vadd.f32 %v4950_v48, %v920_v8  ;;  %s5307_s26 = sld [smem:[#allocation5 + $0x35]]  ;;  %v1022_v24 = vadd.f32 %v4819_v44, %v967_v56  ;;  %v2043_v4 = vsel %vm613_vm5, %v2041_v6, %v6301_v60  ;;  %v6314_v8 = vld [vmem:[#allocation64_spill] sm:$0xff]  ;;  %v6318_v56 = vld [vmem:[#allocation146_spill] sm:$0xff] }
 0x232   : > { %v1069_v48 = vadd.f32 %v4851_v37, %v1023_v10  ;;  %v1135_v41 = vadd.f32 %v6303_v39, %v1089_v34  ;;  %v709_v2 = vadd.f32 %v6307_v22, %v6306_v46  ;;  %v6317_v10 = vld [vmem:[#allocation72_spill] sm:$0xff]  ;;  %v6325_v39 = vld [vmem:[#allocation147_spill] sm:$0xff] }
 0x233   : > { %v5278_v26 = vpop.permute.xlu1 %1437  ;;  %v5280_v55 = vpop.permute.xlu0 %1402  ;;  %v1021_v14 = vadd.f32 %v4831_v27, %v966_v16  ;;  %v1068_v29 = vadd.f32 %v6302_v28, %v1022_v24  ;;  %v6304_v27 = vld [vmem:[#allocation39_spill] sm:$0xff]  ;;  %v6319_v34 = vld [vmem:[#allocation148_spill] sm:$0xff]  ;;  %v6322_v24 = vld [vmem:[#allocation78_spill] sm:$0xff] }
 0x234   : > { %v1115_v44 = vadd.f32 %v6304_v27, %v1069_v48  ;;  %v1149_v13 = vadd.f32 %v6311_v20, %v1135_v41  ;;  %v750_v5 = vadd.f32 %v6315_v59, %v709_v2  ;;  %v6321_v48 = vld [vmem:[#allocation79_spill] sm:$0xff]  ;;  %v2081_v60 = vmul.f32 %v6322_v24, %v4992_v62  ;;  %v6324_v28 = vld [vmem:[#allocation145_spill] sm:$0xff]  ;;  %v6332_v59 = vld [vmem:[#allocation46_spill] sm:$0xff] }
 0x235   : > { %2002 = vrot.lane.b32.xlu1 %v1995_v63, %s3249_s0  ;;  %2071 = vrot.lane.b32.xlu0 %v2068_v30, %s3249_s0  ;;  %v1067_v53 = vadd.f32 %v4984_v45, %v1021_v14  ;;  %v6310_v45 = vld [vmem:[#allocation45_spill] sm:$0xff]  ;;  %v6312_v63 = vld [vmem:[#allocation70_spill] sm:$0xff]  ;;  %v1114_v38 = vadd.f32 %v6314_v8, %v1068_v29  ;;  %v2161_v14 = vmul.f32 %v6321_v48, %v4992_v62  ;;  %v6326_v27 = vld [vmem:[#allocation31_spill] sm:$0xff]  ;;  %v2140_v48 = vstv %s5348_s10 }
 0x236   : > { %v1170_v47 = vadd.f32 %v6313_v11, %v1115_v44  ;;  %v1190_v16 = vadd.f32 %v6317_v10, %v1149_v13  ;;  %v6329_v13 = vld [vmem:[#allocation34_spill] sm:$0xff] }
 0x237   : > { %v5293_v50 = vpop.permute.xlu1 %1453  ;;  %v5295_v54 = vpop.permute.xlu0 %1425  ;;  %v1113_v42 = vadd.f32 %v6305_v3, %v1067_v53  ;;  %v2126_v49 = vstv %s5307_s26  ;;  %v6327_v3 = vld [vmem:[#allocation58_spill] sm:$0xff]  ;;  %v2167_v8 = vrot.slane %v2161_v14, 2  ;;  %v6339_v14 = vld [vmem:[#allocation47_spill] sm:$0xff] }
 0x238   : > { %v2128_v61 = vmul.f32 %v5167_v25, %v2126_v49  ;;  %v1216_v6 = vadd.f32 %v6319_v34, %v1170_v47  ;;  %v1236_v29 = vadd.f32 %v6324_v28, %v1190_v16  ;;  %v2127_v2 = vmul.f32 %v2126_v49, %v4992_v62  ;;  %v6331_v47 = vld [vmem:[#allocation89_spill] sm:$0xff]  ;;  %v6335_v16 = vld [vmem:[#allocation88_spill] sm:$0xff]  ;;  %v6337_v34 = vld [vmem:[#allocation86_spill] sm:$0xff] }
 0x239   : > { %2117 = vrot.lane.b32.xlu1 %v2114_v31, %s3249_s0  ;;  %2000 = vrot.lane.b32.xlu0 %v1994_v21, %s3249_s0  ;;  %v1168_v30 = vadd.f32 %v6312_v63, %v1113_v42  ;;  %v6316_v31 = vld [vmem:[#allocation75_spill] sm:$0xff]  ;;  %v796_v42 = vadd.f32 %v6327_v3, %v750_v5  ;;  %v6333_v5 = vld [vmem:[#allocation150_spill] sm:$0xff] }
 0x23a   : > { %v1169_v21 = vadd.f32 %v6316_v31, %v1114_v38  ;;  %v1262_v44 = vadd.f32 %v6326_v27, %v1216_v6  ;;  %v2087_v38 = vrot.slane %v2081_v60, 4  ;;  %v6334_v31 = vld [vmem:[#allocation35_spill] sm:$0xff]  ;;  %v6338_v6 = vrot.slane %v6337_v34, 4 }
 0x23b   : > { %v5310_v17 = vpop.permute.xlu1 %1457  ;;  %v5312_v33 = vpop.permute.xlu0 %1439  ;;  %v1214_v40 = vadd.f32 %v6318_v56, %v1168_v30  ;;  %v6330_v30 = vld [vmem:[#allocation59_spill] sm:$0xff]  ;;  %v6336_v56 = vrot.slane %v6335_v16, 2  ;;  %v6348_v16 = vld [vmem:[#allocation97_spill] sm:$0xff] }
 0x23c   : > { %v1317_v63 = vadd.f32 %v6329_v13, %v1262_v44  ;;  %v842_v11 = vadd.f32 %v6330_v30, %v796_v42 }
 0x23d   : > { %2046 = vrot.lane.b32.xlu1 %v2043_v4, %s3249_s0  ;;  %2004 = vrot.lane.b32.xlu0 %v1996_v58, %s3249_s0  ;;  %v6320_v58 = vld [vmem:[#allocation44_spill] sm:$0xff]  ;;  %v6323_v4 = vld [vmem:[#allocation73_spill] sm:$0xff]  ;;  %v1260_v41 = vadd.f32 %v6325_v39, %v1214_v40  ;;  %v2169_v40 = vsel %vm613_vm5, %v2167_v8, %v6336_v56 }
 0x23e   : > { %v1215_v53 = vadd.f32 %v6323_v4, %v1169_v21  ;;  %v1363_v21 = vadd.f32 %v5216_v32, %v1317_v63  ;;  %v6340_v32 = vld [vmem:[#allocation142_spill] sm:$0xff] }
 0x23f   : > { %v5326_v37 = vpop.permute.xlu1 %1480  ;;  %v5328_v0 = vpop.permute.xlu0 %1455  ;;  %v1315_v20 = vadd.f32 %v5174_v9, %v1260_v41  ;;  %v856_v28 = vadd.f32 %v6340_v32, %v842_v11 }
 0x241   : > { %2050 = vrot.lane.b32.xlu1 %v6309_v43, %s3249_s0  ;;  %2119 = vrot.lane.b32.xlu0 %v6310_v45, %s3249_s0  ;;  %v1261_v43 = vadd.f32 %v6328_v19, %v1215_v53  ;;  %v1282_v45 = vadd.f32 %v5136_v23, %v1236_v29  ;;  %v1361_v23 = vadd.f32 %v6334_v31, %v1315_v20  ;;  %v6341_v19 = vld [vmem:[#allocation61_spill] sm:$0xff] }
 0x242   : > { %v1409_v53 = vadd.f32 %v5280_v55, %v1363_v21  ;;  %v2142_v31 = vmul.f32 %v5167_v25, %v2140_v48 }
 0x243   : > { %v1502_v7 = vpop.permute.xlu1 %1501  ;;  %v5345_v52 = vpop.permute.xlu0 %1478  ;;  %v1316_v49 = vadd.f32 %v6332_v59, %v1261_v43  ;;  %v1407_v4 = vadd.f32 %v5266_v57, %v1361_v23  ;;  %v2141_v57 = vmul.f32 %v2140_v48, %v4992_v62  ;;  %v897_v43 = vadd.f32 %v6341_v19, %v856_v28  ;;  %v6354_v28 = vld [vmem:[#allocation104_spill] sm:$0xff] }
 0x244   : > { %v1464_v27 = vadd.f32 %v5310_v17, %v1409_v53 }
 0x245   : > { %2133 = vrot.lane.b32.xlu1 %v2128_v61, %s3250_s4  ;;  %2048 = vrot.lane.b32.xlu0 %v6320_v58, %s3249_s0  ;;  %v1296_v61 = vadd.f32 %v6333_v5, %v1282_v45  ;;  %v2089_v58 = vsel %vm181_vm0, %v2087_v38, %v6338_v6  ;;  %v1362_v60 = vadd.f32 %v5237_v18, %v1316_v49  ;;  %v6350_v6 = vld [vmem:[#allocation99_spill] sm:$0xff] }
 0x246   : > { %v1462_v41 = vadd.f32 %v5293_v50, %v1407_v4  ;;  %v6352_v4 = vld [vmem:[#allocation94_spill] sm:$0xff] }
 0x247   : > { %v1525_v46 = vpop.permute.xlu1 %1524  ;;  %v1500_v22 = vpop.permute.xlu0 %1499  ;;  %v1337_v24 = vadd.f32 %v6339_v14, %v1296_v61  ;;  %v1408_v29 = vadd.f32 %v5251_v51, %v1362_v60  ;;  %v6342_v51 = vld [vmem:[#allocation87_spill] sm:$0xff]  ;;  %v6353_v53 = vrot.slane %v6352_v4, 4 }
 0x248   : > { %v1508_v42 = vadd.f32 %v1500_v22, %v1462_v41  ;;  %v6344_v22 = vld [vmem:[#allocation40_spill] sm:$0xff] }
 0x249   : > { %2094 = vrot.lane.b32.xlu1 %v6331_v47, %s3249_s0  ;;  %2131 = vrot.lane.b32.xlu0 %v2127_v2, %s3250_s4  ;;  %v1383_v39 = vadd.f32 %v5253_v36, %v1337_v24  ;;  %v1463_v3 = vadd.f32 %v5328_v0, %v1408_v29  ;;  %v6343_v36 = vrot.slane %v6342_v51, 4  ;;  %v2143_v0 = vmul.f32 %v5225_v1, %v2140_v48  ;;  %v6345_v47 = vld [vmem:[#allocation93_spill] sm:$0xff]  ;;  %v6351_v24 = vld [vmem:[#allocation143_spill] sm:$0xff] }
 0x24a   : > { %v943_v63 = vadd.f32 %v6344_v22, %v897_v43  ;;  %v6355_v29 = vld [vmem:[#allocation57_spill] sm:$0xff] }
 0x24b   : > { %v1546_v9 = vpop.permute.xlu1 %1545  ;;  %v1504_v10 = vpop.permute.xlu0 %1503  ;;  %v1429_v55 = vadd.f32 %v5264_v12, %v1383_v39  ;;  %v1509_v17 = vadd.f32 %v1502_v7, %v1463_v3  ;;  %v6359_v43 = vld [vmem:[#allocation101_spill] sm:$0xff] }
 0x24c   : > { %v1510_v2 = vadd.f32 %v1504_v10, %v1464_v27  ;;  %v1554_v45 = vadd.f32 %v1546_v9, %v1508_v42  ;;  %v6357_v42 = vld [vmem:[#allocation105_spill] sm:$0xff]  ;;  %v6360_v51 = vrot.slane %v6359_v43, 2  ;;  %v6381_v43 = vld [vmem:[#allocation98_spill] sm:$0xff] }
 0x24d   : > { %2172 = vrot.lane.b32.xlu1 %v2169_v40, %s3250_s4  ;;  %2092 = vrot.lane.b32.xlu0 %v2089_v58, %s3249_s0  ;;  %v1443_v50 = vadd.f32 %v5278_v26, %v1429_v55  ;;  %v6346_v26 = vld [vmem:[#allocation82_spill] sm:$0xff]  ;;  %v6349_v40 = vld [vmem:[#allocation103_spill] sm:$0xff]  ;;  %v2182_v58 = vmul.f32 %v6350_v6, %v4992_v62 }
 0x24e   : > { %v2207_v7 = vmul.f32 %v6346_v26, %v4992_v62  ;;  %v2570_v38 = vrot.slane %v1554_v45, 1  ;;  %v2253_v34 = vmul.f32 %v6349_v40, %v4992_v62  ;;  %v6374_v40 = vld [vmem:[#allocation30_spill] sm:$0xff] }
 0x24f   : > { %v1550_v44 = vpop.permute.xlu1 %1549  ;;  %v5397_v18 = vpop.permute.xlu0 %1526  ;;  %v1484_v30 = vadd.f32 %v5345_v52, %v1443_v50  ;;  %v6347_v52 = vld [vmem:[#allocation60_spill] sm:$0xff]  ;;  %v2188_v27 = vrot.slane %v2182_v58, 2  ;;  %v6361_v50 = vld [vmem:[#allocation62_spill] sm:$0xff] }
 0x250   : > { %v1556_v20 = vadd.f32 %v1550_v44, %v1510_v2  ;;  %v989_v23 = vadd.f32 %v6347_v52, %v943_v63  ;;  %v2213_v56 = vrot.slane %v2207_v7, 4  ;;  %v2259_v41 = vrot.slane %v2253_v34, 6  ;;  %v6356_v44 = vld [vmem:[#allocation106_spill] sm:$0xff]  ;;  %v6363_v63 = vld [vmem:[#allocation107_spill] sm:$0xff] }
 0x251   : > { %2147 = vrot.lane.b32.xlu1 %v2141_v57, %s3250_s4  ;;  %2096 = vrot.lane.b32.xlu0 %v6343_v36, %s3249_s0  ;;  %v1530_v8 = vadd.f32 %v1525_v46, %v1484_v30  ;;  %v2228_v57 = vmul.f32 %v6356_v44, %v4992_v62  ;;  %v6358_v2 = vrot.slane %v6357_v42, 6  ;;  %v2190_v36 = vsel %vm613_vm5, %v2188_v27, %v6360_v51  ;;  %s5462_s0 = sld [smem:[#allocation5 + $0x36]]  ;;  %v6367_v7 = vld [vmem:[#allocation74_spill] sm:$0xff]  ;;  %v6379_v44 = vld [vmem:[#allocation116_spill] sm:$0xff]  ;;  %v6380_v42 = vld [vmem:[#allocation33_spill] sm:$0xff] }
 0x252   : > { %v2573_v59 = vrot.slane %v1556_v20, 1  ;;  %v1003_v60 = vadd.f32 %v6351_v24, %v989_v23  ;;  %v2215_v32 = vsel %vm181_vm0, %v2213_v56, %v6353_v53  ;;  %v6364_v30 = vrot.slane %v6363_v63, 4  ;;  %v6370_v23 = vld [vmem:[#allocation108_spill] sm:$0xff]  ;;  %v6375_v53 = vld [vmem:[#allocation43_spill] sm:$0xff] }
 0x253   : > { %v5408_v13 = vpop.permute.xlu1 %1572  ;;  %v1548_v12 = vpop.permute.xlu0 %1547  ;;  %v2261_v19 = vsel %vm686_vm6, %v2259_v41, %v6358_v2  ;;  %v2234_v45 = vrot.slane %v2228_v57, 4  ;;  %v1597_v34 = vmul.f32 %v6374_v40, %v4992_v62  ;;  %v6378_v41 = vld [vmem:[#allocation85_spill] sm:$0xff]  ;;  %v2287_v57 = vstv %s3019_s11 }
 0x254   : > { %v1555_v11 = vadd.f32 %v1548_v12, %v1509_v17  ;;  %v1044_v39 = vadd.f32 %v6355_v29, %v1003_v60  ;;  %v1650_v27 = vmul.f32 %v6378_v41, %v4992_v62  ;;  %v1589_v51 = vmul.f32 %v6381_v43, %v4992_v62 }
 0x255   : > { %2151 = vrot.lane.b32.xlu1 %v2143_v0, %s3250_s4  ;;  %2174 = vrot.lane.b32.xlu0 %v6345_v47, %s3250_s4  ;;  %v6362_v0 = vld [vmem:[#allocation66_spill] sm:$0xff] }
 0x256   : > { %v2571_v49 = vrot.slane %v1555_v11, 1  ;;  %v1090_v17 = vadd.f32 %v6361_v50, %v1044_v39  ;;  %v2236_v11 = vsel %vm181_vm0, %v2234_v45, %v6364_v30  ;;  %v6365_v47 = vld [vmem:[#allocation102_spill] sm:$0xff] }
 0x257   : > { %v5418_v5 = vpop.permute.xlu1 %1692  ;;  %v1571_v61 = vpop.permute.xlu0 %1570  ;;  %v6366_v26 = vrot.slane %v6365_v47, 2  ;;  %v2273_v6 = vstv %s5462_s0 }
 0x258   : > { %v5423_v21 = vsel %vm2569_vm7, %v2571_v49, %v2573_v59  ;;  %v2572_v9 = vsel %vm2569_vm7, %v2570_v38, %v2571_v49  ;;  %v1576_v10 = vadd.f32 %v1571_v61, %v1530_v8  ;;  %v1136_v22 = vadd.f32 %v6362_v0, %v1090_v17  ;;  %v6368_v38 = vld [vmem:[#allocation83_spill] sm:$0xff] }
 0x259   : > { %2220 = vrot.lane.b32.xlu1 %v6348_v16, %s3250_s4  ;;  %2149 = vrot.lane.b32.xlu0 %v2142_v31, %s3250_s4  ;;  %v1614_v59 = vmul.f32 %v6368_v38, %v4992_v62  ;;  %v6369_v31 = vld [vmem:[#allocation67_spill] sm:$0xff]  ;;  %v6373_v16 = vld [vmem:[#allocation149_spill] sm:$0xff]  ;;  %v2275_v4 = vmul.f32 %v5167_v25, %v2273_v6  ;;  %v1591_v17 = vmul.f32 %v5225_v1, %v6381_v43 }
 0x25a   : > { %v5429_v46 = vadd.f32 %v2572_v9, %v1576_v10  ;;  %v1150_v8 = vadd.f32 %v6367_v7, %v1136_v22  ;;  %v6371_v9 = vrot.slane %v6370_v23, 4  ;;  %v6372_v10 = vld [vmem:[#allocation115_spill] sm:$0xff]  ;;  %v2289_v22 = vmul.f32 %v5167_v25, %v2287_v57  ;;  %v6385_v7 = vld [vmem:[#allocation80_spill] sm:$0xff] }
 0x25b   : > { %v5435_v48 = vpop.permute.xlu1 %1708  ;;  %v5437_v14 = vpop.permute.xlu0 %1690  ;;  %v1620_v58 = vrot.slane %v1614_v59, 2  ;;  %v2274_v63 = vmul.f32 %v2273_v6, %v4992_v62  ;;  %v6386_v59 = vstv %s4204_s3  ;;  %v6395_v43 = vld [vmem:[#allocation91_spill] sm:$0xff]  ;;  %s3026_s3 = sld [smem:[#allocation5 + $0x3e]] }
 0x25c   : > { %v1191_v52 = vadd.f32 %v6369_v31, %v1150_v8  ;;  %v1633_v8 = vmul.f32 %v6385_v7, %v4992_v62  ;;  %v1583_v31 = vmul.f32 %v6386_v59, %v4992_v62  ;;  %v6400_v59 = vld [vmem:[#allocation111_spill] sm:$0xff] }
 0x25d   : > { %2195 = vrot.lane.b32.xlu1 %v6354_v28, %s3250_s4  ;;  %2218 = vrot.lane.b32.xlu0 %v2215_v32, %s3250_s4  ;;  %v6376_v28 = vld [vmem:[#allocation42_spill] sm:$0xff] }
 0x25e   : > { %v1237_v56 = vadd.f32 %v6373_v16, %v1191_v52  ;;  %v6377_v29 = vrot.slane %v6376_v28, 2  ;;  %v1656_v52 = vrot.slane %v1650_v27, 4  ;;  %v6388_v16 = vld [vmem:[#allocation109_spill] sm:$0xff]  ;;  %v1639_v41 = vrot.slane %v1633_v8, 4  ;;  %v6399_v8 = vld [vmem:[#allocation100_spill] sm:$0xff] }
 0x25f   : > { %v5449_v55 = vpop.permute.xlu1 %1731  ;;  %v5451_v3 = vpop.permute.xlu0 %1706 }
 0x260   : > { %v1283_v32 = vadd.f32 %v6375_v53, %v1237_v56  ;;  %v1622_v39 = vsel %vm613_vm5, %v1620_v58, %v6377_v29  ;;  %v2329_v56 = vmul.f32 %v6388_v16, %v4992_v62 }
 0x261   : > { %2264 = vrot.lane.b32.xlu1 %v2261_v19, %s3250_s4  ;;  %2193 = vrot.lane.b32.xlu0 %v2190_v36, %s3250_s4  ;;  %v1603_v19 = vrot.slane %v1597_v34, 2  ;;  %v6382_v36 = vld [vmem:[#allocation37_spill] sm:$0xff]  ;;  %v1628_v38 = vadd.f32 %v1622_v39, %v1589_v51  ;;  %v6389_v34 = vld [vmem:[#allocation95_spill] sm:$0xff]  ;;  %v2288_v39 = vmul.f32 %v2287_v57, %v4992_v62  ;;  %v6396_v51 = vrot.slane %v6395_v43, 4 }
 0x262   : > { %v1297_v2 = vadd.f32 %v6380_v42, %v1283_v32  ;;  %v2308_v50 = vmul.f32 %v6382_v36, %v4992_v62  ;;  %v6390_v6 = vrot.slane %v6389_v34, 4 }
 0x263   : > { %v5464_v20 = vpop.permute.xlu1 %1752  ;;  %v5466_v12 = vpop.permute.xlu0 %1710  ;;  %v1641_v36 = vsel %vm181_vm0, %v1639_v41, %v6396_v51 }
 0x264   : > { %v1338_v30 = vadd.f32 %v5218_v35, %v1297_v2  ;;  %v6387_v35 = vld [vmem:[#allocation81_spill] sm:$0xff]  ;;  %v1658_v58 = vsel %vm181_vm0, %v1656_v52, %v6390_v6  ;;  %v6402_v52 = vld [vmem:[#allocation92_spill] sm:$0xff] }
 0x265   : > { %2239 = vrot.lane.b32.xlu1 %v2236_v11, %s3250_s4  ;;  %2197 = vrot.lane.b32.xlu0 %v6366_v26, %s3250_s4  ;;  %v6383_v11 = vld [vmem:[#allocation90_spill] sm:$0xff]  ;;  %v1664_v27 = vadd.f32 %v1658_v58, %v1628_v38 }
 0x266   : > { %v6384_v47 = vrot.slane %v6383_v11, 2  ;;  %v1384_v23 = vadd.f32 %v5235_v15, %v1338_v30  ;;  %v6404_v58 = vld [vmem:[#allocation50_spill] sm:$0xff] }
 0x267   : > { %v5479_v49 = vpop.permute.xlu1 %1756  ;;  %v5481_v61 = vpop.permute.xlu0 %1733 }
 0x268   : > { %v1605_v26 = vsel %vm613_vm5, %v1603_v19, %v6384_v47  ;;  %v1430_v15 = vadd.f32 %v5295_v54, %v1384_v23  ;;  %v6403_v23 = vrot.slane %v6402_v52, 6 }
 0x269   : > { %2243 = vrot.lane.b32.xlu1 %v6371_v9, %s3250_s4  ;;  %2266 = vrot.lane.b32.xlu0 %v6372_v10, %s3250_s4  ;;  %v1669_v9 = vmul.f32 %v6387_v35, %v4992_v62  ;;  %v2314_v10 = vrot.slane %v2308_v50, 2  ;;  %v1610_v40 = vadd.f32 %v1605_v26, %v1583_v31  ;;  %v1715_v62 = vadd.f32 %v5451_v3, %v1664_v27 }
 0x26a   : > { %v1444_v19 = vadd.f32 %v5312_v33, %v1430_v15  ;;  %v2335_v50 = vrot.slane %v2329_v56, 2  ;;  %v2290_v26 = vmul.f32 %v5225_v1, %v2287_v57  ;;  %v1697_v33 = vadd.f32 %v5418_v5, %v6399_v8 }
 0x26b   : > { %v5493_v24 = vpop.permute.xlu1 %1779  ;;  %v5495_v60 = vpop.permute.xlu0 %1754  ;;  %v1646_v54 = vadd.f32 %v1641_v36, %v1610_v40  ;;  %v1761_v38 = vadd.f32 %v5464_v20, %v1715_v62  ;;  %v6401_v31 = vrot.slane %v6400_v59, 2 }
 0x26c   : > { %v1485_v7 = vadd.f32 %v5326_v37, %v1444_v19  ;;  %v1738_v5 = vadd.f32 %v5481_v61, %v1697_v33  ;;  %v6407_v61 = vld [vmem:[#allocation48_spill] sm:$0xff]  ;;  %v6411_v19 = vld [vmem:[#allocation114_spill] sm:$0xff] }
 0x26d   : > { %2280 = vrot.lane.b32.xlu1 %v2275_v4, %s3251_s18  ;;  %2241 = vrot.lane.b32.xlu0 %v6379_v44, %s3250_s4  ;;  %v6391_v4 = vld [vmem:[#allocation41_spill] sm:$0xff]  ;;  %v6393_v44 = vld [vmem:[#allocation110_spill] sm:$0xff]  ;;  %v2337_v3 = vsel %vm613_vm5, %v2335_v50, %v6401_v31  ;;  %s3025_s4 = sld [smem:[#allocation5 + $0x37]] }
 0x26e   : > { %v6392_v53 = vrot.slane %v6391_v4, 2  ;;  %v6394_v42 = vrot.slane %v6393_v44, 2  ;;  %v1531_v57 = vadd.f32 %v5397_v18, %v1485_v7  ;;  %v1784_v34 = vadd.f32 %v5493_v24, %v1738_v5  ;;  %v6405_v18 = vld [vmem:[#allocation38_spill] sm:$0xff] }
 0x26f   : > { %v5514_v45 = vpop.permute.xlu1 %1800  ;;  %v5516_v0 = vpop.permute.xlu0 %1777  ;;  %v1716_v4 = vadd.f32 %v5435_v48, %v6404_v58 }
 0x270   : > { %v1630_v32 = vadd.f32 %v6392_v53, %v1591_v17  ;;  %v2316_v2 = vsel %vm613_vm5, %v2314_v10, %v6394_v42  ;;  %v1675_v17 = vrot.slane %v1669_v9, 6  ;;  %v1577_v56 = vadd.f32 %v5408_v13, %v1531_v57  ;;  %v5583_v53 = vld [vmem:[#allocation2 + $0x18] sm:$0xff] }
 0x271   : > { %2296 = vrot.lane.b32.xlu1 %v2289_v22, %s3251_s18  ;;  %2278 = vrot.lane.b32.xlu0 %v2274_v63, %s3251_s18  ;;  %v6397_v22 = vld [vmem:[#allocation96_spill] sm:$0xff]  ;;  %v1762_v27 = vadd.f32 %v5495_v60, %v1716_v4 }
 0x272   : > { %v6398_v63 = vrot.slane %v6397_v22, 4  ;;  %v1677_v35 = vsel %vm686_vm6, %v1675_v17, %v6403_v23  ;;  %v6418_v23 = vld [vmem:[#allocation117_spill] sm:$0xff] }
 0x273   : > { %v1824_v28 = vpop.permute.xlu1 %1823  ;;  %v1799_v29 = vpop.permute.xlu0 %1798  ;;  %v1682_v20 = vadd.f32 %v1677_v35, %v1646_v54  ;;  %v1808_v43 = vadd.f32 %v5514_v45, %v1762_v27  ;;  %v6419_v35 = vrot.slane %v6418_v23, 4  ;;  %v6435_v23 = vld [vmem:[#allocation133_spill] sm:$0xff] }
 0x274   : > { %v1666_v30 = vadd.f32 %v6398_v63, %v1630_v32  ;;  %v1807_v9 = vadd.f32 %v1799_v29, %v1761_v38  ;;  %v6408_v32 = vld [vmem:[#allocation112_spill] sm:$0xff]  ;;  %v2434_v38 = vstv %s3026_s3 }
 0x275   : > { %2319 = vrot.lane.b32.xlu1 %v2316_v2, %s3251_s18  ;;  %2294 = vrot.lane.b32.xlu0 %v2288_v39, %s3251_s18  ;;  %v2354_v13 = vmul.f32 %v5583_v53, %v6408_v32  ;;  %v5589_v39 = vadd.f32 %v5423_v21, %v1577_v56  ;;  %v6409_v2 = vld [vmem:[#allocation122_spill] sm:$0xff]  ;;  %v2400_v21 = vmul.f32 %v5583_v53, %v6411_v19  ;;  %v6413_v63 = vld [vmem:[#allocation52_spill] sm:$0xff] }
 0x276   : > { %v1717_v37 = vadd.f32 %v5466_v12, %v1666_v30  ;;  %v6406_v12 = vrot.slane %v6405_v18, 2  ;;  %v6414_v30 = vrot.slane %v6413_v63, 4  ;;  %v2435_v5 = vmul.f32 %v5583_v53, %v2434_v38  ;;  %v6422_v18 = vld [vmem:[#allocation129_spill] sm:$0xff] }
 0x277   : > { %v1838_v11 = vpop.permute.xlu1 %1837  ;;  %v1803_v47 = vpop.permute.xlu0 %1802  ;;  %v2360_v36 = vrot.slane %v2354_v13, 4 }
 0x278   : > { %v1763_v40 = vadd.f32 %v5479_v49, %v1717_v37  ;;  %v1696_v49 = vadd.f32 %v5437_v14, %v1682_v20  ;;  %v6410_v14 = vld [vmem:[#allocation120_spill] sm:$0xff] }
 0x279   : > { %2340 = vrot.lane.b32.xlu1 %v2337_v3, %s3251_s18  ;;  %2298 = vrot.lane.b32.xlu0 %v2290_v26, %s3251_s18  ;;  %v6415_v26 = vld [vmem:[#allocation124_spill] sm:$0xff] }
 0x27a   : > { %v1809_v24 = vadd.f32 %v1803_v47, %v1763_v40  ;;  %v1737_v41 = vadd.f32 %v5449_v55, %v1696_v49  ;;  %v6412_v55 = vld [vmem:[#allocation113_spill] sm:$0xff]  ;;  %v2362_v47 = vsel %vm181_vm0, %v2360_v36, %v6414_v30  ;;  %v2436_v49 = vmul.f32 %v5167_v25, %v2434_v38 }
 0x27b   : > { %v1854_v10 = vpop.permute.xlu1 %1853  ;;  %v1826_v16 = vpop.permute.xlu0 %1825  ;;  %v2375_v60 = vmul.f32 %v5583_v53, %v6412_v55 }
 0x27c   : > { %v5574_v6 = vadd.f32 %v1854_v10, %v1807_v9  ;;  %v1830_v29 = vadd.f32 %v1826_v16, %v1784_v34  ;;  %v1783_v51 = vadd.f32 %v5516_v0, %v1737_v41  ;;  %v2406_v0 = vrot.slane %v2400_v21, 6  ;;  %v6420_v10 = vld [vmem:[#allocation118_spill] sm:$0xff] }
 0x27d   : > { %2344 = vrot.lane.b32.xlu1 %v6406_v12, %s3251_s18  ;;  %2321 = vrot.lane.b32.xlu0 %v6407_v61, %s3251_s18  ;;  %v2381_v7 = vrot.slane %v2375_v60, 4  ;;  %v6421_v16 = vrot.slane %v6420_v10, 4  ;;  %v2437_v34 = vmul.f32 %v5225_v1, %v2434_v38  ;;  %v2420_v12 = vstv %s3025_s4  ;;  %v6423_v1 = vld [vmem:[#allocation127_spill] sm:$0xff]  ;;  %v6433_v38 = vld [vmem:[#allocation126_spill] sm:$0xff] }
 0x27e   : > { %v1829_v54 = vadd.f32 %v1824_v28, %v1783_v51  ;;  %v6416_v28 = vld [vmem:[#allocation121_spill] sm:$0xff]  ;;  %v2422_v13 = vmul.f32 %v5167_v25, %v2420_v12  ;;  %v6425_v25 = vld [vmem:[#allocation132_spill] sm:$0xff] }
 0x27f   : > { %v1858_v48 = vpop.permute.xlu1 %1857  ;;  %v1840_v15 = vpop.permute.xlu0 %1839  ;;  %v6417_v3 = vrot.slane %v6416_v28, 6  ;;  %v2383_v57 = vsel %vm181_vm0, %v2381_v7, %v6419_v35  ;;  %v6426_v51 = vld [vmem:[#allocation128_spill] sm:$0xff]  ;;  %v6436_v35 = vrot.slane %v6435_v23, 4 }
 0x280   : > { %v5593_v44 = vadd.f32 %v1858_v48, %v1809_v24  ;;  %v1844_v42 = vadd.f32 %v1840_v15, %v1830_v29  ;;  %v1843_v45 = vadd.f32 %v1838_v11, %v1829_v54  ;;  %v2455_v48 = vmul.f32 %v5583_v53, %v6423_v1  ;;  %v6424_v15 = vld [vmem:[#allocation123_spill] sm:$0xff]  ;;  %v6427_v54 = vld [vmem:[#allocation130_spill] sm:$0xff] }
 0x281   : > { %2367 = vrot.lane.b32.xlu1 %v6409_v2, %s3251_s18  ;;  %2342 = vrot.lane.b32.xlu0 %v6410_v14, %s3251_s18  ;;  %v2408_v52 = vsel %vm686_vm6, %v2406_v0, %v6417_v3  ;;  %v2476_v41 = vmul.f32 %v5583_v53, %v6424_v15  ;;  %v2421_v2 = vmul.f32 %v5583_v53, %v2420_v12 }
 0x282   : > { %v2461_v21 = vrot.slane %v2455_v48, 2  ;;  %v2522_v36 = vmul.f32 %v5583_v53, %v6426_v51 }
 0x283   : > { %v1881_v62 = vpop.permute.xlu1 %1880  ;;  %v1856_v50 = vpop.permute.xlu0 %1855 }
 0x284   : > { %v1885_v17 = vadd.f32 %v1881_v62, %v1844_v42  ;;  %v1863_v22 = vadd.f32 %v1856_v50, %v1808_v43  ;;  %v2482_v43 = vrot.slane %v2476_v41, 2 }
 0x285   : > { %2388 = vrot.lane.b32.xlu1 %v6415_v26, %s3251_s18  ;;  %2365 = vrot.lane.b32.xlu0 %v2362_v47, %s3251_s18  ;;  %v2528_v47 = vrot.slane %v2522_v36, 4 }
 0x287   : > { %v1927_v8 = vpop.permute.xlu1 %1926  ;;  %v1879_v33 = vpop.permute.xlu0 %1878 }
 0x288   : > { %v1931_v59 = vadd.f32 %v1927_v8, %v1885_v17  ;;  %v1884_v31 = vadd.f32 %v1879_v33, %v1843_v45  ;;  %v6428_v17 = vrot.slane %v6427_v54, 2  ;;  %v6431_v8 = vld [vmem:[#allocation131_spill] sm:$0xff] }
 0x289   : > { %2411 = vrot.lane.b32.xlu1 %v2408_v52, %s3251_s18  ;;  %2386 = vrot.lane.b32.xlu0 %v2383_v57, %s3251_s18  ;;  %v6432_v33 = vrot.slane %v6431_v8, 4  ;;  %v6437_v57 = vld [vmem:[#allocation139_spill] sm:$0xff] }
 0x28b   : > { %v1973_v11 = vpop.permute.xlu1 %1972  ;;  %v1925_v37 = vpop.permute.xlu0 %1924 }
 0x28c   : > { %v1977_v9 = vadd.f32 %v1973_v11, %v1931_v59  ;;  %v1930_v20 = vadd.f32 %v1925_v37, %v1884_v31  ;;  %v6434_v59 = vrot.slane %v6433_v38, 2  ;;  %v6438_v11 = vld [vmem:[#allocation134_spill] sm:$0xff] }
 0x28d   : > { %2441 = vrot.lane.b32.xlu1 %v2435_v5, %s3252_s17  ;;  %2390 = vrot.lane.b32.xlu0 %v6421_v16, %s3251_s18  ;;  %v2501_v37 = vmul.f32 %v5583_v53, %v6438_v11  ;;  %v6439_v16 = vld [vmem:[#allocation140_spill] sm:$0xff] }
 0x28f   : > { %v1987_v56 = vpop.permute.xlu1 %1986  ;;  %v1971_v40 = vpop.permute.xlu0 %1970 }
 0x290   : > { %v1991_v58 = vadd.f32 %v1987_v56, %v1977_v9  ;;  %v1976_v4 = vadd.f32 %v1971_v40, %v1930_v20  ;;  %v6440_v56 = vld [vmem:[#allocation138_spill] sm:$0xff]  ;;  %v2507_v40 = vrot.slane %v2501_v37, 4 }
 0x291   : > { %2445 = vrot.lane.b32.xlu1 %v2437_v34, %s3252_s17  ;;  %2413 = vrot.lane.b32.xlu0 %v6422_v18, %s3251_s18  ;;  %v6441_v34 = vld [vmem:[#allocation136_spill] sm:$0xff]  ;;  %s3255_s18 = smov 48  }
 0x293   : > { %v1902_v61 = vpop.permute.xlu1 %1901  ;;  %v1985_v32 = vpop.permute.xlu0 %1984 }
 0x294   : > { %v1909_v24 = vadd.f32 %v1902_v61, %v1863_v22  ;;  %v1990_v29 = vadd.f32 %v1985_v32, %v1976_v4  ;;  %v2463_v22 = vsel %vm613_vm5, %v2461_v21, %v6428_v17  ;;  %v6442_v32 = vld [vmem:[#allocation135_spill] sm:$0xff] }
 0x295   : > { %2427 = vrot.lane.b32.xlu1 %v2422_v13, %s3252_s17  ;;  %2443 = vrot.lane.b32.xlu0 %v2436_v49, %s3252_s17  ;;  %v6443_v13 = vrot.slane %v6442_v32, 4 }
 0x297   : > { %v2026_v27 = vpop.permute.xlu1 %2025  ;;  %v1900_v42 = vpop.permute.xlu0 %1899  ;;  %v2509_v49 = vsel %vm181_vm0, %v2507_v40, %v6443_v13 }
 0x298   : > { %v2031_v14 = vadd.f32 %v2026_v27, %v1990_v29  ;;  %v1908_v19 = vadd.f32 %v1900_v42, %v5574_v6  ;;  %v6429_v6 = vld [vmem:[#allocation125_spill] sm:$0xff] }
 0x299   : > { %2489 = vrot.lane.b32.xlu1 %v6425_v25, %s3252_s17  ;;  %2425 = vrot.lane.b32.xlu0 %v2421_v2, %s3252_s17  ;;  %v6430_v63 = vrot.slane %v6429_v6, 2  ;;  %v6445_v27 = vld [vmem:[#allocation137_spill] sm:$0xff] }
 0x29b   : > { %v1946_v55 = vpop.permute.xlu1 %1945  ;;  %v1904_v60 = vpop.permute.xlu0 %1903  ;;  %v2484_v30 = vsel %vm613_vm5, %v2482_v43, %v6430_v63 }
 0x29c   : > { %v1954_v62 = vadd.f32 %v1946_v55, %v1908_v19  ;;  %v1910_v50 = vadd.f32 %v1904_v60, %v5593_v44  ;;  %v2530_v44 = vsel %vm181_vm0, %v2528_v47, %v6432_v33 }
 0x29d   : > { %2466 = vrot.lane.b32.xlu1 %v2463_v22, %s3252_s17  ;;  %2487 = vrot.lane.b32.xlu0 %v2484_v30, %s3252_s17 }
 0x29f   : > { %v1950_v26 = vpop.permute.xlu1 %1949  ;;  %v2028_v45 = vpop.permute.xlu0 %2027 }
 0x2a0   : > { %v1956_v0 = vadd.f32 %v1950_v26, %v1910_v50  ;;  %v2032_v7 = vadd.f32 %v2028_v45, %v1991_v58  ;;  %v2547_v58 = vmul.f32 %v5583_v53, %v6441_v34  ;;  %v6446_v53 = vrot.slane %v6445_v27, 6 }
 0x2a1   : > { %2533 = vrot.lane.b32.xlu1 %v2530_v44, %s3252_s17  ;;  %2491 = vrot.lane.b32.xlu0 %v6434_v59, %s3252_s17 }
 0x2a2   : > { %v2553_v29 = vrot.slane %v2547_v58, 6 }
 0x2a3   : > { %v2074_v31 = vpop.permute.xlu1 %2073  ;;  %v1948_v28 = vpop.permute.xlu0 %1947 }
 0x2a4   : > { %v2078_v3 = vadd.f32 %v2074_v31, %v2032_v7  ;;  %v1955_v52 = vadd.f32 %v1948_v28, %v1909_v24  ;;  %v6444_v24 = vld [vmem:[#allocation141_spill] sm:$0xff]  ;;  %v2555_v42 = vsel %vm686_vm6, %v2553_v29, %v6446_v53 }
 0x2a5   : > { %2537 = vrot.lane.b32.xlu1 %v6436_v35, %s3252_s17  ;;  %2468 = vrot.lane.b32.xlu0 %v6437_v57, %s3252_s17 }
 0x2a7   : > { %v2003_v5 = vpop.permute.xlu1 %2002  ;;  %v2072_v9 = vpop.permute.xlu0 %2071 }
 0x2a8   : > { %v2010_v20 = vadd.f32 %v2003_v5, %v1955_v52  ;;  %v2077_v10 = vadd.f32 %v2072_v9, %v2031_v14 }
 0x2a9   : > { %2514 = vrot.lane.b32.xlu1 %v6439_v16, %s3252_s17  ;;  %2535 = vrot.lane.b32.xlu0 %v6440_v56, %s3252_s17 }
 0x2ab   : > { %v2118_v4 = vpop.permute.xlu1 %2117  ;;  %v2001_v18 = vpop.permute.xlu0 %2000 }
 0x2ac   : > { %v2123_v12 = vadd.f32 %v2118_v4, %v2077_v10  ;;  %v2009_v61 = vadd.f32 %v2001_v18, %v1954_v62 }
 0x2ad   : > { %2560 = vrot.lane.b32.xlu1 %v6444_v24, %s3252_s17  ;;  %2512 = vrot.lane.b32.xlu0 %v2509_v49, %s3252_s17 }
 0x2af   : > { %v2047_v1 = vpop.permute.xlu1 %2046  ;;  %v2005_v48 = vpop.permute.xlu0 %2004 }
 0x2b0   : > { %v2055_v15 = vadd.f32 %v2047_v1, %v2009_v61  ;;  %v2011_v41 = vadd.f32 %v2005_v48, %v1956_v0 }
 0x2b1   : > { %2558 = vrot.lane.b32.xlu0 %v2555_v42, %s3252_s17  ;;  %s3258_s17 = smov 96  }
 0x2b3   : > { %v2051_v2 = vpop.permute.xlu1 %2050  ;;  %v2120_v14 = vpop.permute.xlu0 %2119 }
 0x2b4   : > { %v2057_v19 = vadd.f32 %v2051_v2, %v2011_v41  ;;  %v2124_v25 = vadd.f32 %v2120_v14, %v2078_v3 }
 0x2b7   : > { %v2134_v21 = vpop.permute.xlu1 %2133  ;;  %v2049_v43 = vpop.permute.xlu0 %2048 }
 0x2b8   : > { %v2138_v51 = vadd.f32 %v2134_v21, %v2124_v25  ;;  %v2056_v36 = vadd.f32 %v2049_v43, %v2010_v20 }
 0x2bb   : > { %v2095_v55 = vpop.permute.xlu1 %2094  ;;  %v2132_v60 = vpop.permute.xlu0 %2131 }
 0x2bc   : > { %v2102_v62 = vadd.f32 %v2095_v55, %v2056_v36  ;;  %v2137_v50 = vadd.f32 %v2132_v60, %v2123_v12 }
 0x2bf   : > { %v2173_v54 = vpop.permute.xlu1 %2172  ;;  %v2093_v17 = vpop.permute.xlu0 %2092 }
 0x2c0   : > { %v2178_v22 = vadd.f32 %v2173_v54, %v2137_v50  ;;  %v2101_v6 = vadd.f32 %v2093_v17, %v2055_v15 }
 0x2c3   : > { %v2148_v63 = vpop.permute.xlu1 %2147  ;;  %v2097_v30 = vpop.permute.xlu0 %2096 }
 0x2c4   : > { %v2156_v47 = vadd.f32 %v2148_v63, %v2101_v6  ;;  %v2103_v26 = vadd.f32 %v2097_v30, %v2057_v19 }
 0x2c7   : > { %v2152_v45 = vpop.permute.xlu1 %2151  ;;  %v2175_v0 = vpop.permute.xlu0 %2174 }
 0x2c8   : > { %v2158_v7 = vadd.f32 %v2152_v45, %v2103_v26  ;;  %v2179_v8 = vadd.f32 %v2175_v0, %v2138_v51 }
 0x2cb   : > { %v2221_v33 = vpop.permute.xlu1 %2220  ;;  %v2150_v44 = vpop.permute.xlu0 %2149 }
 0x2cc   : > { %v2225_v38 = vadd.f32 %v2221_v33, %v2179_v8  ;;  %v2157_v59 = vadd.f32 %v2150_v44, %v2102_v62 }
 0x2cf   : > { %v2196_v31 = vpop.permute.xlu1 %2195  ;;  %v2219_v28 = vpop.permute.xlu0 %2218 }
 0x2d0   : > { %v2224_v3 = vadd.f32 %v2219_v28, %v2178_v22  ;;  %v2203_v19 = vadd.f32 %v2196_v31, %v2157_v59 }
 0x2d3   : > { %v2265_v52 = vpop.permute.xlu1 %2264  ;;  %v2194_v23 = vpop.permute.xlu0 %2193 }
 0x2d4   : > { %v2270_v35 = vadd.f32 %v2265_v52, %v2224_v3  ;;  %v2202_v2 = vadd.f32 %v2194_v23, %v2156_v47 }
 0x2d7   : > { %v2240_v57 = vpop.permute.xlu1 %2239  ;;  %v2198_v11 = vpop.permute.xlu0 %2197 }
 0x2d8   : > { %v2204_v14 = vadd.f32 %v2198_v11, %v2158_v7  ;;  %v2248_v25 = vadd.f32 %v2240_v57, %v2202_v2 }
 0x2db   : > { %v2244_v37 = vpop.permute.xlu1 %2243  ;;  %v2267_v5 = vpop.permute.xlu0 %2266 }
 0x2dc   : > { %v2250_v21 = vadd.f32 %v2244_v37, %v2204_v14  ;;  %v2271_v36 = vadd.f32 %v2267_v5, %v2225_v38  ;;  %v6448_v14 = vld [vmem:[#allocation26_spill] sm:$0xff] }
 0x2df   : > { %v2281_v9 = vpop.permute.xlu1 %2280  ;;  %v2242_v20 = vpop.permute.xlu0 %2241 }
 0x2e0   : > { %v2249_v55 = vadd.f32 %v2242_v20, %v2203_v19  ;;  %v2285_v50 = vadd.f32 %v2281_v9, %v2271_v36 }
 0x2e3   : > { %v2297_v10 = vpop.permute.xlu1 %2296  ;;  %v2279_v16 = vpop.permute.xlu0 %2278 }
 0x2e4   : > { %v2304_v54 = vadd.f32 %v2297_v10, %v2249_v55  ;;  %v2284_v0 = vadd.f32 %v2279_v16, %v2270_v35 }
 0x2e7   : > { %v2320_v56 = vpop.permute.xlu1 %2319  ;;  %v2295_v40 = vpop.permute.xlu0 %2294 }
 0x2e8   : > { %v2303_v60 = vadd.f32 %v2295_v40, %v2248_v25  ;;  %v2325_v59 = vadd.f32 %v2320_v56, %v2284_v0 }
 0x2eb   : > { %v2341_v34 = vpop.permute.xlu1 %2340  ;;  %v2299_v58 = vpop.permute.xlu0 %2298 }
 0x2ec   : > { %v2305_v62 = vadd.f32 %v2299_v58, %v2250_v21  ;;  %v2349_v17 = vadd.f32 %v2341_v34, %v2303_v60 }
 0x2ef   : > { %v2345_v4 = vpop.permute.xlu1 %2344  ;;  %v2322_v18 = vpop.permute.xlu0 %2321 }
 0x2f0   : > { %v2351_v22 = vadd.f32 %v2345_v4, %v2305_v62  ;;  %v2326_v30 = vadd.f32 %v2322_v18, %v2285_v50 }
 0x2f3   : > { %v2368_v12 = vpop.permute.xlu1 %2367  ;;  %v2343_v61 = vpop.permute.xlu0 %2342 }
 0x2f4   : > { %v2350_v26 = vadd.f32 %v2343_v61, %v2304_v54  ;;  %v2372_v7 = vadd.f32 %v2368_v12, %v2326_v30 }
 0x2f7   : > { %v2389_v32 = vpop.permute.xlu1 %2388  ;;  %v2366_v13 = vpop.permute.xlu0 %2365 }
 0x2f8   : > { %v2396_v8 = vadd.f32 %v2389_v32, %v2350_v26  ;;  %v2371_v57 = vadd.f32 %v2366_v13, %v2325_v59 }
 0x2fb   : > { %v2412_v49 = vpop.permute.xlu1 %2411  ;;  %v2387_v24 = vpop.permute.xlu0 %2386 }
 0x2fc   : > { %v2395_v45 = vadd.f32 %v2387_v24, %v2349_v17  ;;  %v2417_v20 = vadd.f32 %v2412_v49, %v2371_v57 }
 0x2ff   : > { %v2442_v29 = vpop.permute.xlu1 %2441  ;;  %v2391_v1 = vpop.permute.xlu0 %2390 }
 0x300   : > { %v2397_v47 = vadd.f32 %v2391_v1, %v2351_v22  ;;  %v2450_v33 = vadd.f32 %v2442_v29, %v2395_v45 }
 0x303   : > { %v2446_v48 = vpop.permute.xlu1 %2445  ;;  %v2414_v15 = vpop.permute.xlu0 %2413 }
 0x304   : > { %v2452_v44 = vadd.f32 %v2446_v48, %v2397_v47  ;;  %v2418_v28 = vadd.f32 %v2414_v15, %v2372_v7  ;;  %v2593_v48 = vstv %s2902_s12 }
 0x307   : > { %v2428_v41 = vpop.permute.xlu1 %2427  ;;  %v2444_v27 = vpop.permute.xlu0 %2443 }
 0x308   : > { %v2451_v3 = vadd.f32 %v2444_v27, %v2396_v8  ;;  %v2432_v11 = vadd.f32 %v2428_v41, %v2418_v28 }
 0x30b   : > { %v2490_v53 = vpop.permute.xlu1 %2489  ;;  %v2426_v42 = vpop.permute.xlu0 %2425 }
 0x30c   : > { %v2497_v37 = vadd.f32 %v2490_v53, %v2451_v3  ;;  %v2431_v34 = vadd.f32 %v2426_v42, %v2417_v20  ;;  %v6447_v53 = vlaneseq }
 0x30e   : > { %vm2596_vm8 = vcmp.lt.s32.totalorder %v6447_v53, 16  ;;  %vm2625_vm9 = vcmp.ge.s32.totalorder %v6447_v53, 16  ;;  %vm2626_vm10 = vcmp.lt.s32.totalorder %v6447_v53, 32  ;;  %vm5702_vm12 = vcmp.ge.s32.totalorder %v6447_v53, 32 }
 0x30f   : > { %v2467_v43 = vpop.permute.xlu1 %2466  ;;  %v2488_v51 = vpop.permute.xlu0 %2487  ;;  %vm2627_vm11 = vmand %vm2625_vm9, %vm2626_vm10  ;;  %vm5707_vm13 = vcmp.lt.s32.totalorder %v6447_v53, 48  ;;  %vm5716_vm15 = vcmp.ge.s32.totalorder %v6447_v53, 48  ;;  %vm5721_vm0 = vcmp.lt.s32.totalorder %v6447_v53, 64  ;;  %vm5730_vm2 = vcmp.ge.s32.totalorder %v6447_v53, 64 }
 0x310   : > { %v2496_v52 = vadd.f32 %v2488_v51, %v2450_v33  ;;  %v2472_v32 = vadd.f32 %v2467_v43, %v2431_v34  ;;  %vm2635_vm14 = vmand %vm5702_vm12, %vm5707_vm13  ;;  %vm5735_vm3 = vcmp.lt.s32.totalorder %v6447_v53, 80  ;;  %vm5744_vm5 = vcmp.ge.s32.totalorder %v6447_v53, 80 }
 0x311   : > { %vm2643_vm1 = vmand %vm5716_vm15, %vm5721_vm0  ;;  %vm5749_vm6 = vcmp.lt.s32.totalorder %v6447_v53, 96  ;;  %vm5763_vm9 = vcmp.lt.s32.totalorder %v6447_v53, 112  ;;  %vm2695_vm12 = vcmp.lt.s32.totalorder %v6447_v53, 128 }
 0x312   : > { %vm2665_vm4 = vmand %vm5730_vm2, %vm5735_vm3 }
 0x313   : > { %v2534_v6 = vpop.permute.xlu1 %2533  ;;  %v2492_v63 = vpop.permute.xlu0 %2491 }
 0x314   : > { %v2498_v23 = vadd.f32 %v2492_v63, %v2452_v44  ;;  %v2542_v5 = vadd.f32 %v2534_v6, %v2496_v52 }
 0x316   : > { %v2582_v58 = vrot.slane %v2542_v5, 1 }
 0x317   : > { %v2538_v38 = vpop.permute.xlu1 %2537  ;;  %v2469_v31 = vpop.permute.xlu0 %2468 }
 0x318   : > { %v2544_v9 = vadd.f32 %v2538_v38, %v2498_v23  ;;  %v2473_v35 = vadd.f32 %v2469_v31, %v2432_v11 }
 0x31a   : > { %v2585_v56 = vrot.slane %v2544_v9, 1 }
 0x31b   : > { %v2515_v10 = vpop.permute.xlu1 %2514  ;;  %v2536_v40 = vpop.permute.xlu0 %2535 }
 0x31c   : > { %v2543_v16 = vadd.f32 %v2536_v40, %v2497_v37  ;;  %v2519_v4 = vadd.f32 %v2515_v10, %v2473_v35 }
 0x31e   : > { %v2583_v18 = vrot.slane %v2543_v16, 1 }
 0x31f   : > { %v2561_v12 = vpop.permute.xlu1 %2560  ;;  %v2513_v61 = vpop.permute.xlu0 %2512 }
 0x320   : > { %v2565_v24 = vadd.f32 %v2561_v12, %v2519_v4  ;;  %v2586_v13 = vsel %vm2569_vm7, %v2583_v18, %v2585_v56  ;;  %v2584_v29 = vsel %vm2569_vm7, %v2582_v58, %v2583_v18  ;;  %v2518_v49 = vadd.f32 %v2513_v61, %v2472_v32  ;;  %vm2680_vm7 = vmand %vm5744_vm5, %vm5749_vm6 }
 0x322   : > { %v2590_v1 = vadd.f32 %v2586_v13, %v2565_v24  ;;  %v6472_v13 = vld [vmem:[#allocation25_spill] sm:$0xff] }
 0x323   : > { %v2559_v15 = vpop.permute.xlu0 %2558 }
 0x324   : > { %v2592_v41 = vadd.f32 %v2590_v1, %v5589_v39  ;;  %v2564_v27 = vadd.f32 %v2559_v15, %v2518_v49  ;;  %v2785_v1 = vsub.s32 1, %v6472_v13 }
 0x326   : > { %v2595_v42 = vadd.f32 %v2593_v48, %v2592_v41  ;;  %v2589_v2 = vadd.f32 %v2584_v29, %v2564_v27  ;;  %v2781_v29 = vsub.s32 0, %v6472_v13  ;;  %v2787_v41 = vld [vmem:[%s6469_s6] sm:$0xff] }
 0x328   : > { %v2706_v19 = vrot.slane %v2595_v42, %v6448_v14  ;;  %v2591_v25 = vadd.f32 %v2589_v2, %v5429_v46  ;;  %2698 = vst.msk [vmem:[#allocation3 + $0x1] sm:$0x1] %vm2596_vm8, %v2595_v42  ;;  %v2736_v60 = vcombine.high %v2595_v42, %v2595_v42 }
 0x32a   : > { %v2594_v21 = vadd.f32 %v2593_v48, %v2591_v25  ;;  %v2707_v43 = vcombine.high %v2706_v19, %v2706_v19  ;;  %v2714_v55 = vrot.slane %v2706_v19, %v6448_v14  ;;  %v2743_v6 = vrot.slane %v2736_v60, %v6448_v14 }
 0x32c   : > { %v2606_v51 = vrot.slane %v2594_v21, %v6448_v14  ;;  %v2721_v36 = vrot.slane %v2707_v43, %v6448_v14  ;;  %2598 = vst.msk [vmem:[#allocation3] sm:$0x1] %vm2596_vm8, %v2594_v21  ;;  %v2726_v62 = vcombine.high %v2714_v55, %v2714_v55  ;;  %v2645_v46 = vcombine.high %v2594_v21, %v2594_v21 }
 0x32d   : > { %v2750_v63 = vrot.slane %v2743_v6, %v6448_v14  ;;  %v2755_v26 = vcombine.high %v2743_v6, %v2743_v6  ;;  %vm5758_vm8 = vcmp.ge.s32.totalorder %v6447_v53, 96 }
 0x32e   : > { %2722 = vrot.lane.b32.xlu1 %v2721_v36, %s3253_s13  ;;  %v2607_v39 = vcombine.high %v2606_v51, %v2606_v51  ;;  %v2614_v54 = vrot.slane %v2606_v51, %v6448_v14  ;;  %v2731_v17 = vcombine.high %v2721_v36, %v2721_v36  ;;  %v2652_v45 = vrot.slane %v2645_v46, %v6448_v14  ;;  %vm2688_vm10 = vmand %vm5758_vm8, %vm5763_vm9 }
 0x32f   : > { %v2762_v47 = vrot.slane %v2755_v26, %v6448_v14  ;;  %v2767_v8 = vcombine.high %v2750_v63, %v2750_v63 }
 0x330   : > { %v2621_v50 = vrot.slane %v2607_v39, %v6448_v14  ;;  %v2629_v22 = vcombine.high %v2614_v54, %v2614_v54  ;;  %v2659_v0 = vrot.slane %v2652_v45, %v6448_v14  ;;  %v2667_v7 = vcombine.high %v2652_v45, %v2652_v45 }
 0x331   : > { %v2772_v44 = vcombine.high %v2762_v47, %v2762_v47 }
 0x332   : > { %2727 = vrot.lane.b32.xlu1 %v2726_v62, %s3254_s16  ;;  %2622 = vrot.lane.b32.xlu0 %v2621_v50, %s3253_s13  ;;  %v2637_v30 = vcombine.high %v2621_v50, %v2621_v50  ;;  %v2674_v33 = vrot.slane %v2667_v7, %v6448_v14  ;;  %v2682_v59 = vcombine.high %v2659_v0, %v2659_v0 }
 0x334   : > { %v2690_v38 = vcombine.high %v2674_v33, %v2674_v33 }
 0x336   : > { %2732 = vrot.lane.b32.xlu1 %v2731_v17, %s3255_s18  ;;  %2630 = vrot.lane.b32.xlu0 %v2629_v22, %s3254_s16 }
 0x33a   : > { %2751 = vrot.lane.b32.xlu1 %v2750_v63, %s3256_s29  ;;  %2638 = vrot.lane.b32.xlu0 %v2637_v30, %s3255_s18 }
 0x33e   : > { %2763 = vrot.lane.b32.xlu1 %v2762_v47, %s3257_s30  ;;  %2660 = vrot.lane.b32.xlu0 %v2659_v0, %s3256_s29 }
 0x342   : > { %2768 = vrot.lane.b32.xlu1 %v2767_v8, %s3258_s17  ;;  %2675 = vrot.lane.b32.xlu0 %v2674_v33, %s3257_s30 }
 0x346   : > { %2773 = vrot.lane.b32.xlu1 %v2772_v44, %s3259_s5  ;;  %2683 = vrot.lane.b32.xlu0 %v2682_v59, %s3258_s17 }
 0x34a   : > { %2691 = vrot.lane.b32.xlu0 %v2690_v38, %s3259_s5 }
 0x3a0   : > { %v2723_v3 = vpop.permute.xlu1 %2722 }
 0x3a1   : > { %2725 = vst.msk [vmem:[#allocation3 + $0x1] sm:$0x1] %vm2627_vm11, %v2723_v3 }
 0x3a4   : > { %v2728_v57 = vpop.permute.xlu1 %2727  ;;  %v2623_v11 = vpop.permute.xlu0 %2622 }
 0x3a5   : > { %2730 = vst.msk [vmem:[#allocation3 + $0x1] sm:$0x1] %vm2635_vm14, %v2728_v57 }
 0x3a6   : > { %2628 = vst.msk [vmem:[#allocation3] sm:$0x1] %vm2627_vm11, %v2623_v11  ;;  %vm2694_vm11 = vcmp.ge.s32.totalorder %v6447_v53, 112 }
 0x3a7   : > { %vm2696_vm13 = vmand %vm2694_vm11, %vm2695_vm12 }
 0x3a8   : > { %v2733_v9 = vpop.permute.xlu1 %2732  ;;  %v2631_v20 = vpop.permute.xlu0 %2630 }
 0x3a9   : > { %2735 = vst.msk [vmem:[#allocation3 + $0x1] sm:$0x1] %vm2643_vm1, %v2733_v9 }
 0x3aa   : > { %2636 = vst.msk [vmem:[#allocation3] sm:$0x1] %vm2635_vm14, %v2631_v20 }
 0x3ac   : > { %v2752_v35 = vpop.permute.xlu1 %2751  ;;  %v2639_v16 = vpop.permute.xlu0 %2638 }
 0x3ad   : > { %2754 = vst.msk [vmem:[#allocation3 + $0x1] sm:$0x1] %vm2665_vm4, %v2752_v35 }
 0x3ae   : > { %2644 = vst.msk [vmem:[#allocation3] sm:$0x1] %vm2643_vm1, %v2639_v16 }
 0x3b0   : > { %v2764_v56 = vpop.permute.xlu1 %2763  ;;  %v2661_v4 = vpop.permute.xlu0 %2660 }
 0x3b1   : > { %2766 = vst.msk [vmem:[#allocation3 + $0x1] sm:$0x1] %vm2680_vm7, %v2764_v56 }
 0x3b2   : > { %2666 = vst.msk [vmem:[#allocation3] sm:$0x1] %vm2665_vm4, %v2661_v4 }
 0x3b4   : > { %v2769_v18 = vpop.permute.xlu1 %2768  ;;  %v2676_v12 = vpop.permute.xlu0 %2675 }
 0x3b5   : > { %2771 = vst.msk [vmem:[#allocation3 + $0x1] sm:$0x1] %vm2688_vm10, %v2769_v18 }
 0x3b6   : > { %2681 = vst.msk [vmem:[#allocation3] sm:$0x1] %vm2680_vm7, %v2676_v12 }
 0x3b8   : > { %v2774_v61 = vpop.permute.xlu1 %2773  ;;  %v2684_v32 = vpop.permute.xlu0 %2683 }
 0x3b9   : > { %2776 = vst.msk [vmem:[#allocation3 + $0x1] sm:$0x1] %vm2696_vm13, %v2774_v61 }
 0x3ba   : > { %2689 = vst.msk [vmem:[#allocation3] sm:$0x1] %vm2688_vm10, %v2684_v32 }
 0x3bc   : > { %v2692_v24 = vpop.permute.xlu0 %2691 }
 0x3bd   : > { %2697 = vst.msk [vmem:[#allocation3] sm:$0x1] %vm2696_vm13, %v2692_v24 }
 0x3c4   : > { %v2777_v49 = vld [vmem:[#allocation3] sm:$0x3] }
 0x3c5   : > { %v2782_v48 = vrot.slane %v2777_v49, %v2781_v29  ;;  %v2786_v15 = vrot.slane %v2777_v49, %v2785_v1 }
 0x3c7   : > { %v2788_v27 = vcombine.low %v2782_v48, %v2786_v15 }
 0x3c9   : > { %v2790_v53 = vmul.f32 %v2788_v27, %v2787_v41 }
 0x3cb   : > { %2793 = vst [vmem:[%s171_s21] sm:$0xff] %v2790_v53 }
 0x3cc   : > { %3178 = shalt.err (!%p3175_p5)
}
 0x3cd   : > { %s3179_s26 = scalar_lea.hbm %s2807_s25, 128  ;;  %s3183_s11 = scalar_lea.hbm %s6475_s28, 256 }
 0x3ce   : > { %p3180_p2 = scmp.ne.s32.totalorder %s2807_s25, %s3179_s26  ;;  %p3184_p9 = scmp.lt.s32.totalorder %s2807_s25, %s6475_s28 }
 0x3cf   : > { %p3185_p1 = scmp.lt.s32.totalorder %s3183_s11, %s3179_s26 }
 0x3d0   : > { %p3181_p12 = pnand %p3180_p2, %p6476_p8 }
 0x3d1   : > { %p3186_p4 = por %p3185_p1, %p3184_p9 }
 0x3d2   : > { %p3182_p13 = pneg %p3181_p12 }
 0x3d4   : > { %p3187_p6 = pnand %p3186_p4, %p3182_p13 }
 0x3d6   : > { %3190 = shalt.err (!%p3187_p6)
}
 0x3d7   : > { %3045 = dma.vmem_to_hbm [thread:$0]  (%p6476_p8), %s2810_s22, 128, %s2807_s25, %s2795_s15  }
 0x3d8 PF: > { %s6477_s12 = sld [smem:[#allocation14_spill]] }
 0x3d9   : > { %s6478_s13 = sld [smem:[#allocation19_spill]] }
 0x3da   : > { %s6479_s16 = sld [smem:[#allocation17_spill]] }
 0x3de   : > { %s2821_s18 = sand.u32 1, %s6477_s12  }
 0x3df   : > { %p6480_p7 = scmp.ne.s32.totalorder %s6478_s13, 0  ;;  %s2822_s29 = scalar_lea.sflag [#allocation7], %s2821_s18 }
 0x3e0   : > { %p6481_p10 = scmp.ge.s32.totalorder %s6479_s16, 2 }
 0x3e2   : > { %p3056_p11 = pnand %p6481_p10, %p6480_p7 }
 0x3e4   : > { %p3057_p0 = pneg %p3056_p11 }
 0x3e6   : > { %3216 = dma.done.wait (%p3057_p0), %s2822_s29, 128  }
 0x3e7   : > { %3218 = vsyncadd (%p3057_p0), %s2822_s29, 4294967168  ;;  %s6482_s12 = sld [smem:[#allocation20_spill]] }
 0x3e8   : > { %s6483_s9 = sld [smem:[#allocation15_spill]] }
 0x3e9   : > { %s6484_s10 = sld [smem:[#allocation16_spill]] }
 0x3ea   : > { %s6485_s11 = sld [smem:[#allocation21_spill]] }
 0x3ed   : > { %p16_p3 = scmp.ge.s32.totalorder %s6482_s12, 4  }
 0x3ef   :  { %18 = sbr.rel (!%p16_p3) target bundleno = 10 (0xa), region = 82 }
 0x3f4   :  { %2827 = vsyncpa [#allocation6], 1 }
 0x3f5   :  { %2829 = vsyncpa [#allocation6 + $0x1], 1 }
 0x3f6   :  { %2830 = vsyncpa [#allocation7], 1 }
 0x3f7   :  { %2832 = vsyncpa [#allocation7 + $0x1], 1 }
 0x3f8   :  { %2833 = vsyncpa [#allocation8], 1 }
 0x3f9   :  { %2835 = vsyncpa [#allocation8 + $0x1], 1 }

</bundles_post_ra>
